<compile_context>
chip_gen: v6e
topology: v6e:2x2x1
jax: 0.10.0
libtpu: 0.0.40
codegen_flags: <defaults>
</compile_context>

<pallas_src>
import functools

import jax
import jax.numpy as jnp
from jax.experimental import pallas as pl
from jax.experimental.pallas import tpu as pltpu

# ---------------- model dimensions (MBM(d_in=32, d_lat=20)) ----------------
D_IN = 32                     # genes per cell (flattened input features)
D_LAT = 20                    # latent dim
D_PRIOR = D_LAT // 5          # 4   (BayesLinear output)
D_NN = D_LAT - D_PRIOR        # 16  (fc1_NN output)
HEADS = 8                     # AttentionWide heads
E = D_LAT                     # attention embedding dim (== d_lat)
EP = 32                       # latent/embedding dim zero-padded to a sublane multiple
D_FC2 = 64
D_OUT = 2
D_OUT_PAD = 128               # lane-dense output slab; wrapper slices [:, :2]


def _round_up(n, m):
    return ((n + m - 1) // m) * m


# --------------------------------- kernel ----------------------------------
def mbm_kernel(x_ref, w1_ref, b1_ref, wqkv_ref, bu_ref, w2_ref, w3_ref,
               out_ref, *, n_valid):
    f32 = jnp.float32
    x = x_ref[...]                                              # (Np, D_IN)
    n_pad = x.shape[0]

    # fused fc1_MBM + fc1_NN (+ relu); padded latent columns stay exactly 0.
    z = jnp.maximum(
        jnp.dot(x, w1_ref[...], preferred_element_type=f32) + b1_ref[...],
        0.0)                                                    # (Np, EP)

    # fused, head-batched q/k/v' projection; batch axis = (q, k, v') x heads.
    # The e**-0.5 score scale is folded into the q weights, and unifyheads is
    # folded into the v weights, both on the host.
    zb = jnp.broadcast_to(z[None, :, :], (3 * HEADS, n_pad, EP))
    qkv = jnp.einsum('hnd,hde->hne', zb, wqkv_ref[...],
                     preferred_element_type=f32)                # (3H, Np, EP)
    q = qkv[:HEADS]
    k = qkv[HEADS:2 * HEADS]
    v = qkv[2 * HEADS:]                 # already carries unifyheads weight

    # batched attention scores + softmax over keys (softmax(dim=2) in torch).
    s = jnp.einsum('hne,hme->hnm', q, k,
                   preferred_element_type=f32)                  # (H, Np, Np)
    if n_valid < n_pad:             # mask padded key rows (compiled only if padded)
        key_idx = jax.lax.broadcasted_iota(jnp.int32, (HEADS, n_pad, n_pad), 2)
        s = jnp.where(key_idx < n_valid, s, -1e30)
    s = s - jnp.max(s, axis=-1, keepdims=True)
    p = jnp.exp(s)
    p = p * pl.reciprocal(jnp.sum(p, axis=-1, keepdims=True), approx=True)

    # context (unifyheads already folded into v), reduce over heads (VPU adds).
    ctx = jnp.einsum('hnm,hme->hne', p, v,
                     preferred_element_type=f32)                # (H, Np, EP)
    attn = jnp.sum(ctx, axis=0) + bu_ref[...]                   # (Np, EP)

    # residual + fc2/relu + fc3 (output lanes padded to 128 -> unmasked stores)
    r = attn + z
    f2 = jnp.maximum(
        jnp.dot(r, w2_ref[...], preferred_element_type=f32), 0.0)   # (Np, 64)
    out_ref[...] = jnp.dot(f2, w3_ref[...],
                           preferred_element_type=f32)          # (Np, 128)


# --------------------------- host-side param glue ---------------------------
def pack_params(wmbm, bmbm, wnn, wk, wq, wv, wu, bu, w2, w3):
    """Fuse / zero-pad / pre-transpose PyTorch-convention weights for the kernel."""
    d_in = wmbm.shape[1]
    f32 = jnp.float32

    # fused fc1: columns [0:4]=BayesLinear (sampled), [4:20]=fc1_NN, [20:32]=0
    w1 = jnp.zeros((d_in, EP), f32)
    w1 = w1.at[:, :D_PRIOR].set(wmbm.T.astype(f32))
    w1 = w1.at[:, D_PRIOR:D_LAT].set(wnn.T.astype(f32))
    b1 = jnp.zeros((1, EP), f32).at[:, :D_PRIOR].set(bmbm.reshape(1, D_PRIOR))

    # q/k: torch Linear(e, e*h) weight (H*E, E) -> (H, EP_in, EP_out),
    # per-head transposed + zero padded; the full e**-0.5 score scale is
    # folded into the query weights.
    def heads_xw(w, scale=1.0):
        w3d = w.reshape(HEADS, E, E)                     # (H, e_out, e_in)
        out = jnp.zeros((HEADS, EP, EP), f32)
        return out.at[:, :E, :E].set(jnp.transpose(w3d, (0, 2, 1)) * scale)

    qk_scale = float(E) ** -0.5                          # (e**-0.25)**2
    wq_p = heads_xw(wq, qk_scale)
    wk_p = heads_xw(wk)

    # fold unifyheads (weight (E, H*E), head-major columns) into the value
    # projection:  v'_h = z @ (Wv_h^T @ Wu_h^T)
    wv_h = wv.reshape(HEADS, E, E)                              # Wv_h: (e_out, e_in)
    wu_h = jnp.transpose(wu.reshape(E, HEADS, E), (1, 0, 2))    # Wu_h: (e_out, e_in)
    wv_eff = jnp.einsum('hoj,hjd->hdo', wu_h, wv_h)             # (H, e_in, e_out)
    wv_p = jnp.zeros((HEADS, EP, EP), f32).at[:, :E, :E].set(wv_eff.astype(f32))

    wqkv = jnp.concatenate([wq_p, wk_p, wv_p], axis=0)          # (3H, EP, EP)

    bu_p = jnp.zeros((1, EP), f32).at[:, :E].set(bu.reshape(1, E))
    w2t = jnp.zeros((EP, D_FC2), f32).at[:E, :].set(w2.T.astype(f32))
    w3t = jnp.zeros((D_FC2, D_OUT_PAD), f32).at[:, :D_OUT].set(w3.T.astype(f32))
    return (w1, b1, wqkv, bu_p, w2t, w3t)


@jax.jit
def mbm_forward(x, packed):
    n = x.shape[0]
    n_pad = _round_up(max(n, 8), 8)
    if n_pad != n:
        x = jnp.pad(x, ((0, n_pad - n), (0, 0)))
    w1, b1, wqkv, bu_p, w2t, w3t = packed
    out = pl.pallas_call(
        functools.partial(mbm_kernel, n_valid=n),
        out_shape=jax.ShapeDtypeStruct((n_pad, D_OUT_PAD), jnp.float32),
        in_specs=[pl.BlockSpec(memory_space=pltpu.MemorySpace.VMEM)] * 7,
        out_specs=pl.BlockSpec(memory_space=pltpu.MemorySpace.VMEM),
    )(x, w1, b1, wqkv, bu_p, w2t, w3t)
    return out[:n, :D_OUT]


# -------------------------- pure-JAX reference -----------------------------
def reference_forward(x, raw):
    wmbm, bmbm, wnn, wk, wq, wv, wu, bu, w2, w3 = raw
    z = jnp.maximum(jnp.concatenate([x @ wmbm.T + bmbm, x @ wnn.T], axis=-1), 0.0)
    scale = float(E) ** 0.25
    acc = jnp.zeros((x.shape[0], E), jnp.float32)
    for h in range(HEADS):
        lo, hi = h * E, (h + 1) * E
        kh = (z @ wk[lo:hi].T) / scale
        qh = (z @ wq[lo:hi].T) / scale
        vh = z @ wv[lo:hi].T
        p = jax.nn.softmax(qh @ kh.T, axis=-1)
        acc = acc + (p @ vh) @ wu[:, lo:hi].T
    r = acc + bu.reshape(1, E) + z
    return jnp.maximum(r @ w2.T, 0.0) @ w3.T


# ----------------------------------- main -----------------------------------
if __name__ == "__main__":
    key = jax.random.PRNGKey(0)
    ks = jax.random.split(key, 14)

    N = 64   # cells per forward; AttentionWide attends over the whole batch
    x = jax.random.normal(ks[0], (N, D_IN), dtype=jnp.float32)

    # BayesLinear(d_in, d_prior): effective weight/bias = mu + exp(log_sigma)*eps,
    # sampled once on the host and handed to the kernel as plain tensors.
    wmbm_mu = 0.1 * jax.random.normal(ks[1], (D_PRIOR, D_IN), dtype=jnp.float32)
    wmbm = wmbm_mu + jnp.exp(-5.0) * jax.random.normal(ks[2], (D_PRIOR, D_IN), dtype=jnp.float32)
    bmbm_mu = 0.1 * jax.random.normal(ks[3], (1, D_PRIOR), dtype=jnp.float32)
    bmbm = bmbm_mu + jnp.exp(-5.0) * jax.random.normal(ks[4], (1, D_PRIOR), dtype=jnp.float32)

    wnn = 0.1 * jax.random.normal(ks[5], (D_NN, D_IN), dtype=jnp.float32)
    wk = 0.1 * jax.random.normal(ks[6], (HEADS * E, E), dtype=jnp.float32)
    wq = 0.1 * jax.random.normal(ks[7], (HEADS * E, E), dtype=jnp.float32)
    wv = 0.1 * jax.random.normal(ks[8], (HEADS * E, E), dtype=jnp.float32)
    wu = 0.1 * jax.random.normal(ks[9], (E, HEADS * E), dtype=jnp.float32)
    bu = 0.1 * jax.random.normal(ks[10], (1, E), dtype=jnp.float32)
    w2 = 0.1 * jax.random.normal(ks[11], (D_FC2, D_LAT), dtype=jnp.float32)
    w3 = 0.1 * jax.random.normal(ks[12], (D_OUT, D_FC2), dtype=jnp.float32)

    raw = (wmbm, bmbm, wnn, wk, wq, wv, wu, bu, w2, w3)
    packed = pack_params(*raw)

    out = mbm_forward(x, packed)
    jax.block_until_ready(out)
    assert out.shape == (N, D_OUT) and out.dtype == jnp.float32

    ref = reference_forward(x, raw)
    max_err = float(jnp.max(jnp.abs(out - ref)))
    assert jnp.allclose(out, ref, rtol=2e-2, atol=2e-2), max_err

    print("KERNEL_OK")
</pallas_src>

<mosaic_0001>
module attributes {stable_mosaic.version = 11 : i64} {
  func.func @mbm_kernel(%arg0: memref<64x32xf32, #tpu.memory_space<vmem>>, %arg1: memref<32x32xf32, #tpu.memory_space<vmem>>, %arg2: memref<1x32xf32, #tpu.memory_space<vmem>>, %arg3: memref<24x32x32xf32, #tpu.memory_space<vmem>>, %arg4: memref<1x32xf32, #tpu.memory_space<vmem>>, %arg5: memref<32x64xf32, #tpu.memory_space<vmem>>, %arg6: memref<64x128xf32, #tpu.memory_space<vmem>>, %arg7: memref<64x128xf32, #tpu.memory_space<vmem>>) attributes {dimension_semantics = [], scalar_prefetch = 0 : i64, scratch_operands = 0 : i64, tpu.core_type = #tpu.core_type<tc>} {
    %c0 = arith.constant 0 : index
    %c0_0 = arith.constant 0 : index
    %0 = vector.load %arg0[%c0, %c0_0] : memref<64x32xf32, #tpu.memory_space<vmem>>, vector<64x32xf32>
    %c0_1 = arith.constant 0 : index
    %c0_2 = arith.constant 0 : index
    %1 = vector.load %arg1[%c0_1, %c0_2] : memref<32x32xf32, #tpu.memory_space<vmem>>, vector<32x32xf32>
    %cst = arith.constant dense<0.000000e+00> : vector<64x32xf32>
    %2 = tpu.matmul %0, %1, %cst {dimension_numbers = #tpu.dot_dimension_numbers<[1], [0], [0], [1], [0, 0, 1, 1], [], []>} : vector<64x32xf32>, vector<32x32xf32>, vector<64x32xf32> -> vector<64x32xf32>
    %c0_3 = arith.constant 0 : index
    %c0_4 = arith.constant 0 : index
    %3 = vector.load %arg2[%c0_3, %c0_4] : memref<1x32xf32, #tpu.memory_space<vmem>>, vector<1x32xf32>
    %4 = vector.broadcast %3 : vector<1x32xf32> to vector<64x32xf32>
    %5 = arith.addf %2, %4 : vector<64x32xf32>
    %cst_5 = arith.constant 0.000000e+00 : f32
    %6 = vector.broadcast %cst_5 : f32 to vector<64x32xf32>
    %7 = arith.maximumf %5, %6 : vector<64x32xf32>
    %8 = vector.shape_cast %7 : vector<64x32xf32> to vector<1x64x32xf32>
    %9 = vector.shape_cast %8 : vector<1x64x32xf32> to vector<1x64x32xf32>
    %10 = vector.broadcast %9 : vector<1x64x32xf32> to vector<24x64x32xf32>
    %c0_6 = arith.constant 0 : index
    %c0_7 = arith.constant 0 : index
    %c0_8 = arith.constant 0 : index
    %11 = vector.load %arg3[%c0_6, %c0_7, %c0_8] : memref<24x32x32xf32, #tpu.memory_space<vmem>>, vector<24x32x32xf32>
    "tpu.trace_start"() <{level = 10 : i32, message = "hnd,hde->hne"}> : () -> ()
    %cst_9 = arith.constant dense<0.000000e+00> : vector<24x64x32xf32>
    %12 = tpu.matmul %10, %11, %cst_9 {dimension_numbers = #tpu.dot_dimension_numbers<[2], [1], [1], [2], [0, 0, 0, 1, 1, 2], [0], [0]>} : vector<24x64x32xf32>, vector<24x32x32xf32>, vector<24x64x32xf32> -> vector<24x64x32xf32>
    "tpu.trace_stop"() : () -> ()
    %13 = vector.extract_strided_slice %12 {offsets = [0, 0, 0], sizes = [8, 64, 32], strides = [1, 1, 1]} : vector<24x64x32xf32> to vector<8x64x32xf32>
    %14 = vector.extract_strided_slice %12 {offsets = [8, 0, 0], sizes = [8, 64, 32], strides = [1, 1, 1]} : vector<24x64x32xf32> to vector<8x64x32xf32>
    %15 = vector.extract_strided_slice %12 {offsets = [16, 0, 0], sizes = [8, 64, 32], strides = [1, 1, 1]} : vector<24x64x32xf32> to vector<8x64x32xf32>
    "tpu.trace_start"() <{level = 10 : i32, message = "hne,hme->hnm"}> : () -> ()
    %cst_10 = arith.constant dense<0.000000e+00> : vector<8x64x64xf32>
    %16 = tpu.matmul %13, %14, %cst_10 {dimension_numbers = #tpu.dot_dimension_numbers<[2], [2], [1], [1], [0, 0, 0, 1, 1, 1], [0], [0]>} : vector<8x64x32xf32>, vector<8x64x32xf32>, vector<8x64x64xf32> -> vector<8x64x64xf32>
    "tpu.trace_stop"() : () -> ()
    %cst_11 = arith.constant dense<0xFF800000> : vector<8x64xf32>
    %17 = vector.multi_reduction <maximumf>, %16, %cst_11 [2] : vector<8x64x64xf32> to vector<8x64xf32>
    %18 = vector.shape_cast %17 : vector<8x64xf32> to vector<8x64x1xf32>
    %19 = vector.broadcast %18 : vector<8x64x1xf32> to vector<8x64x64xf32>
    %20 = arith.subf %16, %19 : vector<8x64x64xf32>
    %21 = math.exp %20 : vector<8x64x64xf32>
    %cst_12 = arith.constant dense<0.000000e+00> : vector<8x64xf32>
    %22 = vector.multi_reduction <add>, %21, %cst_12 [2] : vector<8x64x64xf32> to vector<8x64xf32>
    %23 = vector.shape_cast %22 : vector<8x64xf32> to vector<8x64x1xf32>
    %24 = tpu.reciprocal %23 {approx = true} : vector<8x64x1xf32> -> vector<8x64x1xf32>
    %25 = vector.broadcast %24 : vector<8x64x1xf32> to vector<8x64x64xf32>
    %26 = arith.mulf %21, %25 : vector<8x64x64xf32>
    "tpu.trace_start"() <{level = 10 : i32, message = "hnm,hme->hne"}> : () -> ()
    %cst_13 = arith.constant dense<0.000000e+00> : vector<8x64x32xf32>
    %27 = tpu.matmul %26, %15, %cst_13 {dimension_numbers = #tpu.dot_dimension_numbers<[2], [1], [1], [2], [0, 0, 0, 1, 1, 2], [0], [0]>} : vector<8x64x64xf32>, vector<8x64x32xf32>, vector<8x64x32xf32> -> vector<8x64x32xf32>
    "tpu.trace_stop"() : () -> ()
    %cst_14 = arith.constant dense<0.000000e+00> : vector<64x32xf32>
    %28 = vector.multi_reduction <add>, %27, %cst_14 [0] : vector<8x64x32xf32> to vector<64x32xf32>
    %c0_15 = arith.constant 0 : index
    %c0_16 = arith.constant 0 : index
    %29 = vector.load %arg4[%c0_15, %c0_16] : memref<1x32xf32, #tpu.memory_space<vmem>>, vector<1x32xf32>
    %30 = vector.broadcast %29 : vector<1x32xf32> to vector<64x32xf32>
    %31 = arith.addf %28, %30 : vector<64x32xf32>
    %32 = arith.addf %31, %7 : vector<64x32xf32>
    %c0_17 = arith.constant 0 : index
    %c0_18 = arith.constant 0 : index
    %33 = vector.load %arg5[%c0_17, %c0_18] : memref<32x64xf32, #tpu.memory_space<vmem>>, vector<32x64xf32>
    %cst_19 = arith.constant dense<0.000000e+00> : vector<64x64xf32>
    %34 = tpu.matmul %32, %33, %cst_19 {dimension_numbers = #tpu.dot_dimension_numbers<[1], [0], [0], [1], [0, 0, 1, 1], [], []>} : vector<64x32xf32>, vector<32x64xf32>, vector<64x64xf32> -> vector<64x64xf32>
    %cst_20 = arith.constant 0.000000e+00 : f32
    %35 = vector.broadcast %cst_20 : f32 to vector<64x64xf32>
    %36 = arith.maximumf %34, %35 : vector<64x64xf32>
    %c0_21 = arith.constant 0 : index
    %c0_22 = arith.constant 0 : index
    %37 = vector.load %arg6[%c0_21, %c0_22] : memref<64x128xf32, #tpu.memory_space<vmem>>, vector<64x128xf32>
    %cst_23 = arith.constant dense<0.000000e+00> : vector<64x128xf32>
    %38 = tpu.matmul %36, %37, %cst_23 {dimension_numbers = #tpu.dot_dimension_numbers<[1], [0], [0], [1], [0, 0, 1, 1], [], []>} : vector<64x64xf32>, vector<64x128xf32>, vector<64x128xf32> -> vector<64x128xf32>
    %c0_24 = arith.constant 0 : index
    %c0_25 = arith.constant 0 : index
    %39 = vector.load %arg7[%c0_24, %c0_25] : memref<64x128xf32, #tpu.memory_space<vmem>>, vector<64x128xf32>
    tpu.vector_store %arg7[%c0_24, %c0_25], %38 {strides = array<i32>} : memref<64x128xf32, #tpu.memory_space<vmem>>, vector<64x128xf32>,
    return
  }
}

</mosaic_0001>

<bundles_post_ra>
// kernel: mbm_forward.1
= control target key start
LH: loop header
LB: loop body
LE: loop exit
PB: predicated region body
PF: predicated region fallthrough
CT: control target
= control target key end

     0   :  { %12 = vsyncpa [#allocation3], 0  ;;  %s10681_s0 = inlined_call_operand.vmem [shape: f32[64,32], index: 0, kind: input, shape index: {}]   ;;  %s10682_s1 = inlined_call_operand.vmem [shape: f32[32,32], index: 1, kind: input, shape index: {}]   ;;  %s10683_s2 = inlined_call_operand.vmem [shape: f32[1,32], index: 2, kind: input, shape index: {}]   ;;  %s10684_s3 = inlined_call_operand.hbm [shape: f32[24,32,32], index: 3, kind: input, shape index: {}]   ;;  %s10685_s4 = inlined_call_operand.vmem [shape: f32[1,32], index: 4, kind: input, shape index: {}]   ;;  %s10686_s5 = inlined_call_operand.hbm [shape: f32[32,64], index: 5, kind: input, shape index: {}]   ;;  %s10687_s6 = inlined_call_operand.vmem [shape: f32[64,128], index: 6, kind: input, shape index: {}]   ;;  %s10688_s7 = inlined_call_operand.vmem [shape: f32[64,128], index: 7, kind: output, shape index: {}]  }
   0x1   :  { %13 = vsyncpa [#allocation5], 0  ;;  %s8549_s24 = smov [#allocation2]  }
   0x2   :  { %s25_s25 = sshll.u32 %s8549_s24, 4  ;;  %s26_s25 = int_to_ptr.vmem [resolvable:$true] %s25_s25 }
   0x3   :  { %s8513_s26 = scalar_lea.vmem %s26_s25, 12288  ;;  %p8518_p1 = scmp.lt.s32.totalorder %s26_s25, %s26_s25 }
   0x4   :  { %p8514_p0 = scmp.ne.s32.totalorder %s26_s25, %s8513_s26  ;;  %p8519_p2 = scmp.lt.s32.totalorder %s8513_s26, %s8513_s26 }
   0x6   :  { %p8520_p3 = por %p8519_p2, %p8518_p1 }
   0x8   :  { %p8521_p4 = pnand %p8520_p3, %p8514_p0 }
   0xa   :  { %8524 = shalt.err (!%p8521_p4)
}
   0xb   :  { %s8550_s27 = smov 128   ;;  %s8551_s28 = smov 8  }
   0xc   :  { %31 = dma.hbm_to_vmem [thread:$0]  %s10684_s3, 12288, %s26_s25, [#allocation3], %s8550_s27, %s8550_s27, %s8551_s28  }
   0xd   :  { %s8552_s8 = smov [#allocation4]  }
   0xe   :  { %s39_s9 = sshll.u32 %s8552_s8, 4  ;;  %s40_s9 = int_to_ptr.vmem [resolvable:$true] %s39_s9 }
   0xf   :  { %s8533_s10 = scalar_lea.vmem %s40_s9, 512  ;;  %p8538_p6 = scmp.lt.s32.totalorder %s40_s9, %s40_s9 }
  0x10   :  { %p8534_p5 = scmp.ne.s32.totalorder %s40_s9, %s8533_s10  ;;  %p8539_p7 = scmp.lt.s32.totalorder %s8533_s10, %s8533_s10 }
  0x12   :  { %p8540_p8 = por %p8539_p7, %p8538_p6 }
  0x14   :  { %p8541_p9 = pnand %p8540_p8, %p8534_p5 }
  0x16   :  { %8544 = shalt.err (!%p8541_p9)
}
  0x17   :  { %45 = dma.hbm_to_vmem [thread:$0]  %s10686_s5, 512, %s40_s9, [#allocation5], %s8550_s27, %s8550_s27, %s8551_s28  }
  0x18   :  { %8545 = dma.done.wait [#allocation3], 12288  }
  0x19   :  { %8546 = vsyncadd [#allocation3], 4294955008 }
  0x1a   :  { %8547 = dma.done.wait [#allocation5], 512  }
  0x1b   :  { %8548 = vsyncadd [#allocation5], 4294966784  ;;  %v65_v0 = vld [vmem:[%s10682_s1 + $0x18] sm:$0xff]  ;;  %v64_v1 = vld [vmem:[%s10682_s1 + $0x10] sm:$0xff]  ;;  %vm73_vm0 = vcmask 261120   ;;  %vm4075_vm1 = vcmask 523264  }
  0x1c   :  { %7241 = vmatprep.subr.mxu0 %v65_v0  ;;  %8237 = vmatprep.subr.mxu1 %v65_v0  ;;  %v54_v2 = vld [vmem:[%s10681_s0] sm:$0xff]  ;;  %v63_v3 = vld [vmem:[%s10682_s1 + $0x8] sm:$0xff]  ;;  %v56_v6 = vld [vmem:[%s10681_s0 + $0x10] sm:$0xff] }
  0x1d   :  { %7242 = vmatpush3.msra.mxu0 %v65_v0  ;;  %8241 = vmatpush3.msra.mxu1 %v65_v0  ;;  %v62_v4 = vld [vmem:[%s10682_s1] sm:$0xff]  ;;  %v55_v5 = vld [vmem:[%s10681_s0 + $0x8] sm:$0xff]  ;;  %v214_v9 = vld [vmem:[#allocation2 + $0x18] sm:$0xff] }
  0x1e   :  { %7243 = vmatprep.subr.mxu0 %v64_v1  ;;  %7249 = vmatprep.mubr.msk.f32.mxu0 %vm73_vm0, %v54_v2  ;;  %v58_v7 = vld [vmem:[%s10681_s0 + $0x20] sm:$0xff]  ;;  %v59_v8 = vld [vmem:[%s10681_s0 + $0x28] sm:$0xff]  ;;  %v60_v10 = vld [vmem:[%s10681_s0 + $0x30] sm:$0xff] }
  0x1f   :  { %7244 = vmatpush3.msra.mxu0 %v64_v1  ;;  %8238 = vmatprep.subr.mxu1 %v64_v1  ;;  %v57_v11 = vld [vmem:[%s10681_s0 + $0x18] sm:$0xff]  ;;  %v213_v14 = vld [vmem:[#allocation2 + $0x10] sm:$0xff]  ;;  %v212_v16 = vld [vmem:[#allocation2 + $0x8] sm:$0xff] }
  0x20   :  { %7245 = vmatprep.subr.mxu0 %v63_v3  ;;  %8242 = vmatpush3.msra.mxu1 %v64_v1  ;;  %v61_v12 = vld [vmem:[%s10681_s0 + $0x38] sm:$0xff]  ;;  %v217_v15 = vld [vmem:[#allocation2 + $0x30] sm:$0xff]  ;;  %v216_v17 = vld [vmem:[#allocation2 + $0x28] sm:$0xff] }
  0x21   :  { %7246 = vmatpush3.msra.mxu0 %v63_v3  ;;  %8239 = vmatprep.subr.mxu1 %v63_v3  ;;  %v218_v13 = vld [vmem:[#allocation2 + $0x38] sm:$0xff]  ;;  %v211_v18 = vld [vmem:[#allocation2] sm:$0xff]  ;;  %v221_v37 = vld [vmem:[#allocation2 + $0x50] sm:$0xff] }
  0x22   :  { %7247 = vmatprep.subr.mxu0 %v62_v4  ;;  %8243 = vmatpush3.msra.mxu1 %v63_v3  ;;  %v215_v19 = vld [vmem:[#allocation2 + $0x20] sm:$0xff]  ;;  %v222_v20 = vld [vmem:[#allocation2 + $0x58] sm:$0xff]  ;;  %v225_v38 = vld [vmem:[#allocation2 + $0x70] sm:$0xff] }
  0x23   :  { %7248 = vmatpush3.msra.mxu0 %v62_v4  ;;  %8240 = vmatprep.subr.mxu1 %v62_v4  ;;  %v226_v21 = vld [vmem:[#allocation2 + $0x78] sm:$0xff]  ;;  %v6247_v22 = vld [vmem:[%s10683_s2] ss:$0 sm:$0xff]  ;;  %v220_v45 = vld [vmem:[#allocation2 + $0x48] sm:$0xff] }
  0x24   :  { %7250 = vmatmul.mubr.msk.f32.vlgmr.msra.gmra.mxu0 %vm73_vm0, %v55_v5  ;;  %8244 = vmatpush3.msra.mxu1 %v62_v4  ;;  %v219_v49 = vld [vmem:[#allocation2 + $0x40] sm:$0xff]  ;;  %v224_v50 = vld [vmem:[#allocation2 + $0x68] sm:$0xff]  ;;  %v230_v53 = vld [vmem:[#allocation2 + $0x98] sm:$0xff] }
  0x25   :  { %7252 = vmatprep.mubr.msk.f32.mxu0 %vm73_vm0, %v56_v6  ;;  %7255 = vmatprep.mubr.msk.f32.mxu1 %vm73_vm0, %v58_v7  ;;  %v223_v52 = vld [vmem:[#allocation2 + $0x60] sm:$0xff]  ;;  %v229_v54 = vld [vmem:[#allocation2 + $0x90] sm:$0xff]  ;;  %v234_v55 = vld [vmem:[#allocation2 + $0xb8] sm:$0xff] }
  0x26   :  { %7256 = vmatmul.mubr.msk.f32.vlgmr.msra.gmra.mxu1 %vm73_vm0, %v59_v8  ;;  %7261 = vmatprep.subr.mxu1 %v214_v9  ;;  %v228_v56 = vld [vmem:[#allocation2 + $0x88] sm:$0xff]  ;;  %v233_v57 = vld [vmem:[#allocation2 + $0xb0] sm:$0xff]  ;;  %v227_v58 = vld [vmem:[#allocation2 + $0x80] sm:$0xff] }
  0x27   :  { %7258 = vmatprep.mubr.msk.f32.mxu1 %vm73_vm0, %v60_v10  ;;  %7262 = vmatpush3.msra.mxu1 %v214_v9  ;;  %v232_v59 = vld [vmem:[#allocation2 + $0xa8] sm:$0xff]  ;;  %v231_v60 = vld [vmem:[#allocation2 + $0xa0] sm:$0xff]  ;;  %v238_v61 = vld [vmem:[#allocation2 + $0xd8] sm:$0xff] }
  0x28   :  { %7253 = vmatmul.mubr.msk.f32.gmra.mxu0 %vm73_vm0, %v57_v11  ;;  %7281 = vmatprep.subr.mxu0 %v218_v13  ;;  %v237_v62 = vld [vmem:[#allocation2 + $0xd0] sm:$0xff]  ;;  %v242_v63 = vld [vmem:[#allocation2 + $0xf8] sm:$0xff]  ;;  %v236_v0 = vld [vmem:[#allocation2 + $0xc8] sm:$0xff] }
  0x29   :  { %7282 = vmatpush3.msra.mxu0 %v218_v13  ;;  %7263 = vmatprep.subr.mxu1 %v213_v14  ;;  %v241_v1 = vld [vmem:[#allocation2 + $0xf0] sm:$0xff]  ;;  %v235_v2 = vld [vmem:[#allocation2 + $0xc0] sm:$0xff]  ;;  %v240_v3 = vld [vmem:[#allocation2 + $0xe8] sm:$0xff] }
  0x2a   :  { %7259 = vmatmul.mubr.msk.f32.gmra.mxu1 %vm73_vm0, %v61_v12  ;;  %7283 = vmatprep.subr.mxu0 %v217_v15  ;;  %v239_v4 = vld [vmem:[#allocation2 + $0xe0] sm:$0xff]  ;;  %v246_v5 = vld [vmem:[#allocation2 + $0x118] sm:$0xff]  ;;  %v245_v6 = vld [vmem:[#allocation2 + $0x110] sm:$0xff] }
  0x2b   :  { %7264 = vmatpush3.msra.mxu1 %v213_v14  ;;  %7284 = vmatpush3.msra.mxu0 %v217_v15  ;;  %v250_v7 = vld [vmem:[#allocation2 + $0x138] sm:$0xff]  ;;  %v244_v8 = vld [vmem:[#allocation2 + $0x108] sm:$0xff]  ;;  %v249_v9 = vld [vmem:[#allocation2 + $0x130] sm:$0xff] }
  0x2c   :  { %7265 = vmatprep.subr.mxu1 %v212_v16  ;;  %7285 = vmatprep.subr.mxu0 %v216_v17  ;;  %v243_v10 = vld [vmem:[#allocation2 + $0x100] sm:$0xff]  ;;  %v248_v11 = vld [vmem:[#allocation2 + $0x128] sm:$0xff]  ;;  %v254_v13 = vld [vmem:[#allocation2 + $0x158] sm:$0xff] }
  0x2d   :  { %7266 = vmatpush3.msra.mxu1 %v212_v16  ;;  %7286 = vmatpush3.msra.mxu0 %v216_v17  ;;  %v247_v12 = vld [vmem:[#allocation2 + $0x120] sm:$0xff]  ;;  %v258_v14 = vld [vmem:[#allocation2 + $0x178] sm:$0xff]  ;;  %v253_v15 = vld [vmem:[#allocation2 + $0x150] sm:$0xff] }
  0x2e   :  { %7267 = vmatprep.subr.mxu1 %v211_v18  ;;  %7287 = vmatprep.subr.mxu0 %v215_v19  ;;  %v257_v16 = vld [vmem:[#allocation2 + $0x170] sm:$0xff]  ;;  %v252_v17 = vld [vmem:[#allocation2 + $0x148] sm:$0xff] }
  0x2f   :  { %7268 = vmatpush3.msra.mxu1 %v211_v18  ;;  %7288 = vmatpush3.msra.mxu0 %v215_v19  ;;  %v256_v18 = vld [vmem:[#allocation2 + $0x168] sm:$0xff]  ;;  %v251_v19 = vld [vmem:[#allocation2 + $0x140] sm:$0xff] }
  0x30   :  { %7301 = vmatprep.subr.mxu1 %v222_v20  ;;  %7321 = vmatprep.subr.mxu0 %v226_v21 }
  0xe4   :  { %v7251_v23 = vpop.f32.mrf.mxu0 }
  0xe5   :  { %v170_v24 = vadd.f32 %v7251_v23, %v6247_v22  ;;  %v261_v23 = vld [vmem:[#allocation2 + $0x190] sm:$0xff] }
  0xe6   :  { %v164_v25 = vpop.f32.mrf.mxu0  ;;  %v7257_v26 = vpop.f32.mrf.mxu1 }
  0xe7   :  { %v165_v27 = vadd.f32 %v6247_v22, %v164_v25  ;;  %v8648_v32 = vmax.f32 %v170_v24, 0.0  ;;  %v190_v44 = vadd.f32 %v7257_v26, %v6247_v22  ;;  %v265_v24 = vld [vmem:[#allocation2 + $0x1b0] sm:$0xff]  ;;  %v260_v25 = vld [vmem:[#allocation2 + $0x188] sm:$0xff] }
  0xe8   :  { %v7254_v28 = vpop.f32.mrf.mxu0  ;;  %v184_v29 = vpop.f32.mrf.mxu1  ;;  %v264_v26 = vld [vmem:[#allocation2 + $0x1a8] sm:$0xff] }
  0xe9   :  { %v8646_v30 = vmax.f32 %v165_v27, 0.0  ;;  %v185_v31 = vadd.f32 %v6247_v22, %v184_v29  ;;  %10775 = vst [vmem:[#allocation9_spill] sm:$0xff] %v8648_v32  ;;  %v180_v33 = vadd.f32 %v7254_v28, %v6247_v22  ;;  %v8676_v47 = vmax.f32 %v190_v44, 0.0  ;;  %v259_v27 = vld [vmem:[#allocation2 + $0x180] sm:$0xff]  ;;  %v270_v29 = vld [vmem:[#allocation2 + $0x1d8] sm:$0xff]  ;;  %v277_v44 = vld [vmem:[#allocation2 + $0x210] sm:$0xff] }
  0xea   :  { %v174_v34 = vpop.f32.mrf.mxu0  ;;  %v7260_v35 = vpop.f32.mrf.mxu1  ;;  %v263_v28 = vld [vmem:[#allocation2 + $0x1a0] sm:$0xff] }
  0xeb   :  { %10774 = vst [vmem:[#allocation8_spill] sm:$0xff] %v8646_v30  ;;  %v175_v36 = vadd.f32 %v6247_v22, %v174_v34  ;;  %7269 = vmatprep.mubr.msk.f32.mxu1 %vm73_vm0, %v8646_v30  ;;  %7289 = vmatprep.mubr.msk.f32.mxu0 %vm73_vm0, %v8646_v30  ;;  %v8660_v41 = vmax.f32 %v185_v31, 0.0  ;;  %v8662_v43 = vmax.f32 %v180_v33, 0.0  ;;  %10780 = vst [vmem:[#allocation14_spill] sm:$0xff] %v8676_v47  ;;  %v274_v31 = vld [vmem:[#allocation2 + $0x1f8] sm:$0xff]  ;;  %v269_v33 = vld [vmem:[#allocation2 + $0x1d0] sm:$0xff] }
  0xec   :  { %7270 = vmatmul.mubr.msk.f32.vlgmr.msra.gmra.mxu1 %vm73_vm0, %v8648_v32  ;;  %7290 = vmatmul.mubr.msk.f32.vlgmr.msra.gmra.mxu0 %vm73_vm0, %v8648_v32  ;;  %v194_v39 = vpop.f32.mrf.mxu1  ;;  %v200_v48 = vadd.f32 %v7260_v35, %v6247_v22  ;;  %v273_v34 = vld [vmem:[#allocation2 + $0x1f0] sm:$0xff]  ;;  %v268_v35 = vld [vmem:[#allocation2 + $0x1c8] sm:$0xff] }
  0xed   :  { %v8658_v40 = vmax.f32 %v175_v36, 0.0  ;;  %10777 = vst [vmem:[#allocation11_spill] sm:$0xff] %v8660_v41  ;;  %7302 = vmatpush3.msra.mxu1 %v222_v20  ;;  %v195_v42 = vadd.f32 %v6247_v22, %v194_v39  ;;  %7322 = vmatpush3.msra.mxu0 %v226_v21  ;;  %10778 = vst [vmem:[#allocation12_spill] sm:$0xff] %v8662_v43  ;;  %v255_v20 = vld [vmem:[#allocation2 + $0x160] sm:$0xff]  ;;  %v262_v21 = vld [vmem:[#allocation2 + $0x198] sm:$0xff] }
  0xee   :  { %7303 = vmatprep.subr.mxu1 %v221_v37  ;;  %7323 = vmatprep.subr.mxu0 %v225_v38  ;;  %v8688_v51 = vmax.f32 %v200_v48, 0.0  ;;  %v266_v22 = vld [vmem:[#allocation2 + $0x1b8] sm:$0xff]  ;;  %v272_v36 = vld [vmem:[#allocation2 + $0x1e8] sm:$0xff] }
  0xef   :  { %10776 = vst [vmem:[#allocation10_spill] sm:$0xff] %v8658_v40  ;;  %7272 = vmatprep.mubr.msk.f32.mxu1 %vm73_vm0, %v8658_v40  ;;  %7292 = vmatprep.mubr.msk.f32.mxu0 %vm73_vm0, %v8658_v40  ;;  %v8672_v46 = vmax.f32 %v195_v42, 0.0  ;;  %v278_v39 = vld [vmem:[#allocation2 + $0x218] sm:$0xff]  ;;  %v276_v48 = vld [vmem:[#allocation2 + $0x208] sm:$0xff] }
  0xf0   :  { %7273 = vmatmul.mubr.msk.f32.gmra.mxu1 %vm73_vm0, %v8662_v43  ;;  %7293 = vmatmul.mubr.msk.f32.gmra.mxu0 %vm73_vm0, %v8662_v43  ;;  %10781 = vst [vmem:[#allocation15_spill] sm:$0xff] %v8688_v51  ;;  %v282_v42 = vld [vmem:[#allocation2 + $0x238] sm:$0xff] }
  0xf1   :  { %10779 = vst [vmem:[#allocation13_spill] sm:$0xff] %v8672_v46  ;;  %7304 = vmatpush3.msra.mxu1 %v221_v37  ;;  %7275 = vmatprep.mubr.msk.f32.mxu1 %vm73_vm0, %v8660_v41  ;;  %v267_v37 = vld [vmem:[#allocation2 + $0x1c0] sm:$0xff] }
  0xf2   :  { %7295 = vmatprep.mubr.msk.f32.mxu0 %vm73_vm0, %v8660_v41  ;;  %7305 = vmatprep.subr.mxu1 %v220_v45 }
  0xf3   :  { %7306 = vmatpush3.msra.mxu1 %v220_v45  ;;  %7324 = vmatpush3.msra.mxu0 %v225_v38  ;;  %v271_v38 = vld [vmem:[#allocation2 + $0x1e0] sm:$0xff]  ;;  %v281_v45 = vld [vmem:[#allocation2 + $0x230] sm:$0xff] }
  0xf4   :  { %7276 = vmatmul.mubr.msk.f32.gmra.mxu1 %vm73_vm0, %v8676_v47  ;;  %7296 = vmatmul.mubr.msk.f32.gmra.mxu0 %vm73_vm0, %v8676_v47 }
  0xf5   :  { %7278 = vmatprep.mubr.msk.f32.mxu1 %vm73_vm0, %v8672_v46  ;;  %7298 = vmatprep.mubr.msk.f32.mxu0 %vm73_vm0, %v8672_v46 }
  0xf6   :  { %7307 = vmatprep.subr.mxu1 %v219_v49  ;;  %7325 = vmatprep.subr.mxu0 %v224_v50 }
  0xf7   :  { %7308 = vmatpush3.msra.mxu1 %v219_v49  ;;  %7326 = vmatpush3.msra.mxu0 %v224_v50  ;;  %v280_v49 = vld [vmem:[#allocation2 + $0x228] sm:$0xff]  ;;  %v275_v50 = vld [vmem:[#allocation2 + $0x200] sm:$0xff] }
  0xf8   :  { %7279 = vmatmul.mubr.msk.f32.gmra.mxu1 %vm73_vm0, %v8688_v51  ;;  %7299 = vmatmul.mubr.msk.f32.gmra.mxu0 %vm73_vm0, %v8688_v51 }
  0xf9   :  { %7309 = vmatprep.mubr.msk.f32.mxu1 %vm73_vm0, %v8646_v30  ;;  %7329 = vmatprep.mubr.msk.f32.mxu0 %vm73_vm0, %v8646_v30 }
  0xfa   :  { %7327 = vmatprep.subr.mxu0 %v223_v52  ;;  %7341 = vmatprep.subr.mxu1 %v230_v53 }
  0xfb   :  { %7328 = vmatpush3.msra.mxu0 %v223_v52  ;;  %v279_v52 = vld [vmem:[#allocation2 + $0x220] sm:$0xff] }
  0xfc   :  { %7310 = vmatmul.mubr.msk.f32.vlgmr.msra.gmra.mxu1 %vm73_vm0, %v8648_v32  ;;  %7330 = vmatmul.mubr.msk.f32.vlgmr.msra.gmra.mxu0 %vm73_vm0, %v8648_v32 }
  0xfd   :  { %7342 = vmatpush3.msra.mxu1 %v230_v53  ;;  %7312 = vmatprep.mubr.msk.f32.mxu1 %vm73_vm0, %v8658_v40  ;;  %v286_v53 = vld [vmem:[#allocation2 + $0x258] sm:$0xff] }
  0xfe   :  { %7332 = vmatprep.mubr.msk.f32.mxu0 %vm73_vm0, %v8658_v40  ;;  %7343 = vmatprep.subr.mxu1 %v229_v54 }
  0xff   :  { %7361 = vmatprep.subr.mxu0 %v234_v55  ;;  %7344 = vmatpush3.msra.mxu1 %v229_v54  ;;  %v290_v54 = vld [vmem:[#allocation2 + $0x278] sm:$0xff] }
 0x100   :  { %7313 = vmatmul.mubr.msk.f32.gmra.mxu1 %vm73_vm0, %v8662_v43  ;;  %7333 = vmatmul.mubr.msk.f32.gmra.mxu0 %vm73_vm0, %v8662_v43 }
 0x101   :  { %7362 = vmatpush3.msra.mxu0 %v234_v55  ;;  %7315 = vmatprep.mubr.msk.f32.mxu1 %vm73_vm0, %v8660_v41  ;;  %v285_v55 = vld [vmem:[#allocation2 + $0x250] sm:$0xff] }
 0x102   :  { %7335 = vmatprep.mubr.msk.f32.mxu0 %vm73_vm0, %v8660_v41  ;;  %7345 = vmatprep.subr.mxu1 %v228_v56 }
 0x103   :  { %7363 = vmatprep.subr.mxu0 %v233_v57  ;;  %7346 = vmatpush3.msra.mxu1 %v228_v56  ;;  %v289_v56 = vld [vmem:[#allocation2 + $0x270] sm:$0xff] }
 0x104   :  { %7316 = vmatmul.mubr.msk.f32.gmra.mxu1 %vm73_vm0, %v8676_v47  ;;  %7336 = vmatmul.mubr.msk.f32.gmra.mxu0 %vm73_vm0, %v8676_v47 }
 0x105   :  { %7364 = vmatpush3.msra.mxu0 %v233_v57  ;;  %7318 = vmatprep.mubr.msk.f32.mxu1 %vm73_vm0, %v8672_v46  ;;  %v284_v57 = vld [vmem:[#allocation2 + $0x248] sm:$0xff] }
 0x106   :  { %7338 = vmatprep.mubr.msk.f32.mxu0 %vm73_vm0, %v8672_v46  ;;  %7347 = vmatprep.subr.mxu1 %v227_v58 }
 0x107   :  { %7365 = vmatprep.subr.mxu0 %v232_v59  ;;  %7348 = vmatpush3.msra.mxu1 %v227_v58  ;;  %v288_v58 = vld [vmem:[#allocation2 + $0x268] sm:$0xff] }
 0x108   :  { %7319 = vmatmul.mubr.msk.f32.gmra.mxu1 %vm73_vm0, %v8688_v51  ;;  %7339 = vmatmul.mubr.msk.f32.gmra.mxu0 %vm73_vm0, %v8688_v51 }
 0x109   :  { %7366 = vmatpush3.msra.mxu0 %v232_v59  ;;  %7349 = vmatprep.mubr.msk.f32.mxu1 %vm73_vm0, %v8646_v30  ;;  %v283_v59 = vld [vmem:[#allocation2 + $0x240] sm:$0xff] }
 0x10a   :  { %7369 = vmatprep.mubr.msk.f32.mxu0 %vm73_vm0, %v8646_v30  ;;  %7367 = vmatprep.subr.mxu0 %v231_v60 }
 0x10b   :  { %7368 = vmatpush3.msra.mxu0 %v231_v60  ;;  %7381 = vmatprep.subr.mxu1 %v238_v61  ;;  %v287_v60 = vld [vmem:[#allocation2 + $0x260] sm:$0xff] }
 0x10c   :  { %7350 = vmatmul.mubr.msk.f32.vlgmr.msra.gmra.mxu1 %vm73_vm0, %v8648_v32  ;;  %7370 = vmatmul.mubr.msk.f32.vlgmr.msra.gmra.mxu0 %vm73_vm0, %v8648_v32 }
 0x10d   :  { %7382 = vmatpush3.msra.mxu1 %v238_v61  ;;  %7352 = vmatprep.mubr.msk.f32.mxu1 %vm73_vm0, %v8658_v40  ;;  %v294_v61 = vld [vmem:[#allocation2 + $0x298] sm:$0xff] }
 0x10e   :  { %7372 = vmatprep.mubr.msk.f32.mxu0 %vm73_vm0, %v8658_v40  ;;  %7383 = vmatprep.subr.mxu1 %v237_v62 }
 0x10f   :  { %7401 = vmatprep.subr.mxu0 %v242_v63  ;;  %7384 = vmatpush3.msra.mxu1 %v237_v62  ;;  %v298_v62 = vld [vmem:[#allocation2 + $0x2b8] sm:$0xff] }
 0x110   :  { %7353 = vmatmul.mubr.msk.f32.gmra.mxu1 %vm73_vm0, %v8662_v43  ;;  %7373 = vmatmul.mubr.msk.f32.gmra.mxu0 %vm73_vm0, %v8662_v43 }
 0x111   :  { %7402 = vmatpush3.msra.mxu0 %v242_v63  ;;  %7355 = vmatprep.mubr.msk.f32.mxu1 %vm73_vm0, %v8660_v41  ;;  %v293_v63 = vld [vmem:[#allocation2 + $0x290] sm:$0xff] }
 0x112   :  { %7375 = vmatprep.mubr.msk.f32.mxu0 %vm73_vm0, %v8660_v41  ;;  %7385 = vmatprep.subr.mxu1 %v236_v0 }
 0x113   :  { %7403 = vmatprep.subr.mxu0 %v241_v1  ;;  %7386 = vmatpush3.msra.mxu1 %v236_v0  ;;  %v297_v0 = vld [vmem:[#allocation2 + $0x2b0] sm:$0xff] }
 0x114   :  { %7356 = vmatmul.mubr.msk.f32.gmra.mxu1 %vm73_vm0, %v8676_v47  ;;  %7376 = vmatmul.mubr.msk.f32.gmra.mxu0 %vm73_vm0, %v8676_v47 }
 0x115   :  { %7404 = vmatpush3.msra.mxu0 %v241_v1  ;;  %7358 = vmatprep.mubr.msk.f32.mxu1 %vm73_vm0, %v8672_v46  ;;  %v292_v1 = vld [vmem:[#allocation2 + $0x288] sm:$0xff] }
 0x116   :  { %7378 = vmatprep.mubr.msk.f32.mxu0 %vm73_vm0, %v8672_v46  ;;  %7387 = vmatprep.subr.mxu1 %v235_v2 }
 0x117   :  { %7405 = vmatprep.subr.mxu0 %v240_v3  ;;  %7388 = vmatpush3.msra.mxu1 %v235_v2  ;;  %v296_v2 = vld [vmem:[#allocation2 + $0x2a8] sm:$0xff] }
 0x118   :  { %7359 = vmatmul.mubr.msk.f32.gmra.mxu1 %vm73_vm0, %v8688_v51  ;;  %7379 = vmatmul.mubr.msk.f32.gmra.mxu0 %vm73_vm0, %v8688_v51 }
 0x119   :  { %7406 = vmatpush3.msra.mxu0 %v240_v3  ;;  %7389 = vmatprep.mubr.msk.f32.mxu1 %vm73_vm0, %v8646_v30  ;;  %v291_v3 = vld [vmem:[#allocation2 + $0x280] sm:$0xff] }
 0x11a   :  { %7409 = vmatprep.mubr.msk.f32.mxu0 %vm73_vm0, %v8646_v30  ;;  %7407 = vmatprep.subr.mxu0 %v239_v4 }
 0x11b   :  { %7408 = vmatpush3.msra.mxu0 %v239_v4  ;;  %7421 = vmatprep.subr.mxu1 %v246_v5  ;;  %v295_v4 = vld [vmem:[#allocation2 + $0x2a0] sm:$0xff] }
 0x11c   :  { %7390 = vmatmul.mubr.msk.f32.vlgmr.msra.gmra.mxu1 %vm73_vm0, %v8648_v32  ;;  %7410 = vmatmul.mubr.msk.f32.vlgmr.msra.gmra.mxu0 %vm73_vm0, %v8648_v32 }
 0x11d   :  { %7422 = vmatpush3.msra.mxu1 %v246_v5  ;;  %7392 = vmatprep.mubr.msk.f32.mxu1 %vm73_vm0, %v8658_v40  ;;  %v302_v5 = vld [vmem:[#allocation2 + $0x2d8] sm:$0xff] }
 0x11e   :  { %7412 = vmatprep.mubr.msk.f32.mxu0 %vm73_vm0, %v8658_v40  ;;  %7423 = vmatprep.subr.mxu1 %v245_v6 }
 0x11f   :  { %7441 = vmatprep.subr.mxu0 %v250_v7  ;;  %7424 = vmatpush3.msra.mxu1 %v245_v6  ;;  %v306_v6 = vld [vmem:[#allocation2 + $0x2f8] sm:$0xff] }
 0x120   :  { %7393 = vmatmul.mubr.msk.f32.gmra.mxu1 %vm73_vm0, %v8662_v43  ;;  %7413 = vmatmul.mubr.msk.f32.gmra.mxu0 %vm73_vm0, %v8662_v43 }
 0x121   :  { %7442 = vmatpush3.msra.mxu0 %v250_v7  ;;  %7395 = vmatprep.mubr.msk.f32.mxu1 %vm73_vm0, %v8660_v41  ;;  %v301_v7 = vld [vmem:[#allocation2 + $0x2d0] sm:$0xff] }
 0x122   :  { %7415 = vmatprep.mubr.msk.f32.mxu0 %vm73_vm0, %v8660_v41  ;;  %7425 = vmatprep.subr.mxu1 %v244_v8 }
 0x123   :  { %7443 = vmatprep.subr.mxu0 %v249_v9  ;;  %7426 = vmatpush3.msra.mxu1 %v244_v8  ;;  %v305_v8 = vld [vmem:[#allocation2 + $0x2f0] sm:$0xff] }
 0x124   :  { %7396 = vmatmul.mubr.msk.f32.gmra.mxu1 %vm73_vm0, %v8676_v47  ;;  %7416 = vmatmul.mubr.msk.f32.gmra.mxu0 %vm73_vm0, %v8676_v47 }
 0x125   :  { %7444 = vmatpush3.msra.mxu0 %v249_v9  ;;  %7398 = vmatprep.mubr.msk.f32.mxu1 %vm73_vm0, %v8672_v46  ;;  %v300_v9 = vld [vmem:[#allocation2 + $0x2c8] sm:$0xff] }
 0x126   :  { %7418 = vmatprep.mubr.msk.f32.mxu0 %vm73_vm0, %v8672_v46  ;;  %7427 = vmatprep.subr.mxu1 %v243_v10 }
 0x127   :  { %7445 = vmatprep.subr.mxu0 %v248_v11  ;;  %7428 = vmatpush3.msra.mxu1 %v243_v10  ;;  %v304_v10 = vld [vmem:[#allocation2 + $0x2e8] sm:$0xff] }
 0x128   :  { %7399 = vmatmul.mubr.msk.f32.gmra.mxu1 %vm73_vm0, %v8688_v51  ;;  %7419 = vmatmul.mubr.msk.f32.gmra.mxu0 %vm73_vm0, %v8688_v51 }
 0x129   :  { %7446 = vmatpush3.msra.mxu0 %v248_v11  ;;  %7429 = vmatprep.mubr.msk.f32.mxu1 %vm73_vm0, %v8646_v30  ;;  %v299_v11 = vld [vmem:[#allocation2 + $0x2c0] sm:$0xff] }
 0x12a   :  { %7449 = vmatprep.mubr.msk.f32.mxu0 %vm73_vm0, %v8646_v30  ;;  %7447 = vmatprep.subr.mxu0 %v247_v12 }
 0x12b   :  { %7448 = vmatpush3.msra.mxu0 %v247_v12  ;;  %7461 = vmatprep.subr.mxu1 %v254_v13  ;;  %v303_v12 = vld [vmem:[#allocation2 + $0x2e0] sm:$0xff] }
 0x12c   :  { %7430 = vmatmul.mubr.msk.f32.vlgmr.msra.gmra.mxu1 %vm73_vm0, %v8648_v32  ;;  %7450 = vmatmul.mubr.msk.f32.vlgmr.msra.gmra.mxu0 %vm73_vm0, %v8648_v32 }
 0x12d   :  { %7432 = vmatprep.mubr.msk.f32.mxu1 %vm73_vm0, %v8658_v40  ;;  %7452 = vmatprep.mubr.msk.f32.mxu0 %vm73_vm0, %v8658_v40 }
 0x12e   :  { %7481 = vmatprep.subr.mxu0 %v258_v14  ;;  %7462 = vmatpush3.msra.mxu1 %v254_v13 }
 0x12f   :  { %7482 = vmatpush3.msra.mxu0 %v258_v14  ;;  %7463 = vmatprep.subr.mxu1 %v253_v15 }
 0x130   :  { %7433 = vmatmul.mubr.msk.f32.gmra.mxu1 %vm73_vm0, %v8662_v43  ;;  %7453 = vmatmul.mubr.msk.f32.gmra.mxu0 %vm73_vm0, %v8662_v43 }
 0x131   :  { %7435 = vmatprep.mubr.msk.f32.mxu1 %vm73_vm0, %v8660_v41  ;;  %7455 = vmatprep.mubr.msk.f32.mxu0 %vm73_vm0, %v8660_v41 }
 0x132   :  { %7483 = vmatprep.subr.mxu0 %v257_v16  ;;  %7464 = vmatpush3.msra.mxu1 %v253_v15 }
 0x133   :  { %7484 = vmatpush3.msra.mxu0 %v257_v16  ;;  %7465 = vmatprep.subr.mxu1 %v252_v17 }
 0x134   :  { %7436 = vmatmul.mubr.msk.f32.gmra.mxu1 %vm73_vm0, %v8676_v47  ;;  %7456 = vmatmul.mubr.msk.f32.gmra.mxu0 %vm73_vm0, %v8676_v47 }
 0x135   :  { %7438 = vmatprep.mubr.msk.f32.mxu1 %vm73_vm0, %v8672_v46  ;;  %7458 = vmatprep.mubr.msk.f32.mxu0 %vm73_vm0, %v8672_v46 }
 0x136   :  { %7485 = vmatprep.subr.mxu0 %v256_v18  ;;  %7466 = vmatpush3.msra.mxu1 %v252_v17 }
 0x137   :  { %7486 = vmatpush3.msra.mxu0 %v256_v18  ;;  %7467 = vmatprep.subr.mxu1 %v251_v19 }
 0x138   :  { %7439 = vmatmul.mubr.msk.f32.gmra.mxu1 %vm73_vm0, %v8688_v51  ;;  %7459 = vmatmul.mubr.msk.f32.gmra.mxu0 %vm73_vm0, %v8688_v51 }
 0x139   :  { %7469 = vmatprep.mubr.msk.f32.mxu1 %vm73_vm0, %v8646_v30  ;;  %7489 = vmatprep.mubr.msk.f32.mxu0 %vm73_vm0, %v8646_v30 }
 0x13a   :  { %7487 = vmatprep.subr.mxu0 %v255_v20  ;;  %7468 = vmatpush3.msra.mxu1 %v251_v19 }
 0x13b   :  { %7488 = vmatpush3.msra.mxu0 %v255_v20  ;;  %7501 = vmatprep.subr.mxu1 %v262_v21 }
 0x13c   :  { %7470 = vmatmul.mubr.msk.f32.vlgmr.msra.gmra.mxu1 %vm73_vm0, %v8648_v32  ;;  %7490 = vmatmul.mubr.msk.f32.vlgmr.msra.gmra.mxu0 %vm73_vm0, %v8648_v32 }
 0x13d   :  { %7472 = vmatprep.mubr.msk.f32.mxu1 %vm73_vm0, %v8658_v40  ;;  %7492 = vmatprep.mubr.msk.f32.mxu0 %vm73_vm0, %v8658_v40 }
 0x13e   :  { %7521 = vmatprep.subr.mxu0 %v266_v22  ;;  %7502 = vmatpush3.msra.mxu1 %v262_v21 }
 0x13f   :  { %7522 = vmatpush3.msra.mxu0 %v266_v22  ;;  %7503 = vmatprep.subr.mxu1 %v261_v23 }
 0x140   :  { %7473 = vmatmul.mubr.msk.f32.gmra.mxu1 %vm73_vm0, %v8662_v43  ;;  %7493 = vmatmul.mubr.msk.f32.gmra.mxu0 %vm73_vm0, %v8662_v43 }
 0x141   :  { %7475 = vmatprep.mubr.msk.f32.mxu1 %vm73_vm0, %v8660_v41  ;;  %7495 = vmatprep.mubr.msk.f32.mxu0 %vm73_vm0, %v8660_v41 }
 0x142   :  { %7523 = vmatprep.subr.mxu0 %v265_v24  ;;  %7504 = vmatpush3.msra.mxu1 %v261_v23 }
 0x143   :  { %7524 = vmatpush3.msra.mxu0 %v265_v24  ;;  %7505 = vmatprep.subr.mxu1 %v260_v25 }
 0x144   :  { %7476 = vmatmul.mubr.msk.f32.gmra.mxu1 %vm73_vm0, %v8676_v47  ;;  %7496 = vmatmul.mubr.msk.f32.gmra.mxu0 %vm73_vm0, %v8676_v47 }
 0x145   :  { %7478 = vmatprep.mubr.msk.f32.mxu1 %vm73_vm0, %v8672_v46  ;;  %7498 = vmatprep.mubr.msk.f32.mxu0 %vm73_vm0, %v8672_v46 }
 0x146   :  { %7525 = vmatprep.subr.mxu0 %v264_v26  ;;  %7506 = vmatpush3.msra.mxu1 %v260_v25 }
 0x147   :  { %7526 = vmatpush3.msra.mxu0 %v264_v26  ;;  %7507 = vmatprep.subr.mxu1 %v259_v27 }
 0x148   :  { %7479 = vmatmul.mubr.msk.f32.gmra.mxu1 %vm73_vm0, %v8688_v51  ;;  %7499 = vmatmul.mubr.msk.f32.gmra.mxu0 %vm73_vm0, %v8688_v51 }
 0x149   :  { %7509 = vmatprep.mubr.msk.f32.mxu1 %vm73_vm0, %v8646_v30  ;;  %7529 = vmatprep.mubr.msk.f32.mxu0 %vm73_vm0, %v8646_v30 }
 0x14a   :  { %7527 = vmatprep.subr.mxu0 %v263_v28  ;;  %7508 = vmatpush3.msra.mxu1 %v259_v27 }
 0x14b   :  { %7528 = vmatpush3.msra.mxu0 %v263_v28  ;;  %7541 = vmatprep.subr.mxu1 %v270_v29 }
 0x14c   :  { %7510 = vmatmul.mubr.msk.f32.vlgmr.msra.gmra.mxu1 %vm73_vm0, %v8648_v32  ;;  %7530 = vmatmul.mubr.msk.f32.vlgmr.msra.gmra.mxu0 %vm73_vm0, %v8648_v32 }
 0x14d   :  { %7512 = vmatprep.mubr.msk.f32.mxu1 %vm73_vm0, %v8658_v40  ;;  %7532 = vmatprep.mubr.msk.f32.mxu0 %vm73_vm0, %v8658_v40 }
 0x14e   :  { %7561 = vmatprep.subr.mxu0 %v274_v31  ;;  %7542 = vmatpush3.msra.mxu1 %v270_v29 }
 0x14f   :  { %7562 = vmatpush3.msra.mxu0 %v274_v31  ;;  %7543 = vmatprep.subr.mxu1 %v269_v33 }
 0x150   :  { %7513 = vmatmul.mubr.msk.f32.gmra.mxu1 %vm73_vm0, %v8662_v43  ;;  %7533 = vmatmul.mubr.msk.f32.gmra.mxu0 %vm73_vm0, %v8662_v43 }
 0x151   :  { %7515 = vmatprep.mubr.msk.f32.mxu1 %vm73_vm0, %v8660_v41  ;;  %7535 = vmatprep.mubr.msk.f32.mxu0 %vm73_vm0, %v8660_v41 }
 0x152   :  { %7563 = vmatprep.subr.mxu0 %v273_v34  ;;  %7544 = vmatpush3.msra.mxu1 %v269_v33 }
 0x153   :  { %7564 = vmatpush3.msra.mxu0 %v273_v34  ;;  %7545 = vmatprep.subr.mxu1 %v268_v35 }
 0x154   :  { %7516 = vmatmul.mubr.msk.f32.gmra.mxu1 %vm73_vm0, %v8676_v47  ;;  %7536 = vmatmul.mubr.msk.f32.gmra.mxu0 %vm73_vm0, %v8676_v47 }
 0x155   :  { %7518 = vmatprep.mubr.msk.f32.mxu1 %vm73_vm0, %v8672_v46  ;;  %7538 = vmatprep.mubr.msk.f32.mxu0 %vm73_vm0, %v8672_v46 }
 0x156   :  { %7565 = vmatprep.subr.mxu0 %v272_v36  ;;  %7546 = vmatpush3.msra.mxu1 %v268_v35 }
 0x157   :  { %7566 = vmatpush3.msra.mxu0 %v272_v36  ;;  %7547 = vmatprep.subr.mxu1 %v267_v37 }
 0x158   :  { %7519 = vmatmul.mubr.msk.f32.gmra.mxu1 %vm73_vm0, %v8688_v51  ;;  %7539 = vmatmul.mubr.msk.f32.gmra.mxu0 %vm73_vm0, %v8688_v51 }
 0x159   :  { %7549 = vmatprep.mubr.msk.f32.mxu1 %vm73_vm0, %v8646_v30  ;;  %7569 = vmatprep.mubr.msk.f32.mxu0 %vm73_vm0, %v8646_v30 }
 0x15a   :  { %7567 = vmatprep.subr.mxu0 %v271_v38  ;;  %7548 = vmatpush3.msra.mxu1 %v267_v37 }
 0x15b   :  { %7568 = vmatpush3.msra.mxu0 %v271_v38  ;;  %7581 = vmatprep.subr.mxu1 %v278_v39 }
 0x15c   :  { %7550 = vmatmul.mubr.msk.f32.vlgmr.msra.gmra.mxu1 %vm73_vm0, %v8648_v32  ;;  %7570 = vmatmul.mubr.msk.f32.vlgmr.msra.gmra.mxu0 %vm73_vm0, %v8648_v32 }
 0x15d   :  { %7552 = vmatprep.mubr.msk.f32.mxu1 %vm73_vm0, %v8658_v40  ;;  %7572 = vmatprep.mubr.msk.f32.mxu0 %vm73_vm0, %v8658_v40 }
 0x15e   :  { %7601 = vmatprep.subr.mxu0 %v282_v42  ;;  %7582 = vmatpush3.msra.mxu1 %v278_v39 }
 0x15f   :  { %7602 = vmatpush3.msra.mxu0 %v282_v42  ;;  %7583 = vmatprep.subr.mxu1 %v277_v44 }
 0x160   :  { %7553 = vmatmul.mubr.msk.f32.gmra.mxu1 %vm73_vm0, %v8662_v43  ;;  %7573 = vmatmul.mubr.msk.f32.gmra.mxu0 %vm73_vm0, %v8662_v43 }
 0x161   :  { %7555 = vmatprep.mubr.msk.f32.mxu1 %vm73_vm0, %v8660_v41  ;;  %7575 = vmatprep.mubr.msk.f32.mxu0 %vm73_vm0, %v8660_v41 }
 0x162   :  { %7603 = vmatprep.subr.mxu0 %v281_v45  ;;  %7584 = vmatpush3.msra.mxu1 %v277_v44 }
 0x163   :  { %7604 = vmatpush3.msra.mxu0 %v281_v45  ;;  %7585 = vmatprep.subr.mxu1 %v276_v48 }
 0x164   :  { %7556 = vmatmul.mubr.msk.f32.gmra.mxu1 %vm73_vm0, %v8676_v47  ;;  %7576 = vmatmul.mubr.msk.f32.gmra.mxu0 %vm73_vm0, %v8676_v47 }
 0x165   :  { %7558 = vmatprep.mubr.msk.f32.mxu1 %vm73_vm0, %v8672_v46  ;;  %7578 = vmatprep.mubr.msk.f32.mxu0 %vm73_vm0, %v8672_v46 }
 0x166   :  { %7605 = vmatprep.subr.mxu0 %v280_v49  ;;  %7586 = vmatpush3.msra.mxu1 %v276_v48 }
 0x167   :  { %7606 = vmatpush3.msra.mxu0 %v280_v49  ;;  %7587 = vmatprep.subr.mxu1 %v275_v50 }
 0x168   :  { %7559 = vmatmul.mubr.msk.f32.gmra.mxu1 %vm73_vm0, %v8688_v51  ;;  %7579 = vmatmul.mubr.msk.f32.gmra.mxu0 %vm73_vm0, %v8688_v51 }
 0x169   :  { %7589 = vmatprep.mubr.msk.f32.mxu1 %vm73_vm0, %v8646_v30  ;;  %7609 = vmatprep.mubr.msk.f32.mxu0 %vm73_vm0, %v8646_v30 }
 0x16a   :  { %7607 = vmatprep.subr.mxu0 %v279_v52  ;;  %7588 = vmatpush3.msra.mxu1 %v275_v50 }
 0x16b   :  { %7608 = vmatpush3.msra.mxu0 %v279_v52  ;;  %7621 = vmatprep.subr.mxu1 %v286_v53 }
 0x16c   :  { %7590 = vmatmul.mubr.msk.f32.vlgmr.msra.gmra.mxu1 %vm73_vm0, %v8648_v32  ;;  %7610 = vmatmul.mubr.msk.f32.vlgmr.msra.gmra.mxu0 %vm73_vm0, %v8648_v32 }
 0x16d   :  { %7592 = vmatprep.mubr.msk.f32.mxu1 %vm73_vm0, %v8658_v40  ;;  %7612 = vmatprep.mubr.msk.f32.mxu0 %vm73_vm0, %v8658_v40 }
 0x16e   :  { %7641 = vmatprep.subr.mxu0 %v290_v54  ;;  %7622 = vmatpush3.msra.mxu1 %v286_v53 }
 0x16f   :  { %7642 = vmatpush3.msra.mxu0 %v290_v54  ;;  %7623 = vmatprep.subr.mxu1 %v285_v55 }
 0x170   :  { %7593 = vmatmul.mubr.msk.f32.gmra.mxu1 %vm73_vm0, %v8662_v43  ;;  %7613 = vmatmul.mubr.msk.f32.gmra.mxu0 %vm73_vm0, %v8662_v43 }
 0x171   :  { %7595 = vmatprep.mubr.msk.f32.mxu1 %vm73_vm0, %v8660_v41  ;;  %7615 = vmatprep.mubr.msk.f32.mxu0 %vm73_vm0, %v8660_v41 }
 0x172   :  { %7643 = vmatprep.subr.mxu0 %v289_v56  ;;  %7624 = vmatpush3.msra.mxu1 %v285_v55 }
 0x173   :  { %7644 = vmatpush3.msra.mxu0 %v289_v56  ;;  %7625 = vmatprep.subr.mxu1 %v284_v57 }
 0x174   :  { %7596 = vmatmul.mubr.msk.f32.gmra.mxu1 %vm73_vm0, %v8676_v47  ;;  %7616 = vmatmul.mubr.msk.f32.gmra.mxu0 %vm73_vm0, %v8676_v47 }
 0x175   :  { %7598 = vmatprep.mubr.msk.f32.mxu1 %vm73_vm0, %v8672_v46  ;;  %7618 = vmatprep.mubr.msk.f32.mxu0 %vm73_vm0, %v8672_v46 }
 0x176   :  { %7645 = vmatprep.subr.mxu0 %v288_v58  ;;  %7626 = vmatpush3.msra.mxu1 %v284_v57 }
 0x177   :  { %7646 = vmatpush3.msra.mxu0 %v288_v58  ;;  %7627 = vmatprep.subr.mxu1 %v283_v59 }
 0x178   :  { %7599 = vmatmul.mubr.msk.f32.gmra.mxu1 %vm73_vm0, %v8688_v51  ;;  %7619 = vmatmul.mubr.msk.f32.gmra.mxu0 %vm73_vm0, %v8688_v51 }
 0x179   :  { %7629 = vmatprep.mubr.msk.f32.mxu1 %vm73_vm0, %v8646_v30  ;;  %7649 = vmatprep.mubr.msk.f32.mxu0 %vm73_vm0, %v8646_v30 }
 0x17a   :  { %7647 = vmatprep.subr.mxu0 %v287_v60  ;;  %7628 = vmatpush3.msra.mxu1 %v283_v59 }
 0x17b   :  { %7648 = vmatpush3.msra.mxu0 %v287_v60  ;;  %7661 = vmatprep.subr.mxu1 %v294_v61 }
 0x17c   :  { %7630 = vmatmul.mubr.msk.f32.vlgmr.msra.gmra.mxu1 %vm73_vm0, %v8648_v32  ;;  %7650 = vmatmul.mubr.msk.f32.vlgmr.msra.gmra.mxu0 %vm73_vm0, %v8648_v32 }
 0x17d   :  { %7632 = vmatprep.mubr.msk.f32.mxu1 %vm73_vm0, %v8658_v40  ;;  %7652 = vmatprep.mubr.msk.f32.mxu0 %vm73_vm0, %v8658_v40 }
 0x17e   :  { %7681 = vmatprep.subr.mxu0 %v298_v62  ;;  %7662 = vmatpush3.msra.mxu1 %v294_v61 }
 0x17f   :  { %7682 = vmatpush3.msra.mxu0 %v298_v62  ;;  %7663 = vmatprep.subr.mxu1 %v293_v63 }
 0x180   :  { %7633 = vmatmul.mubr.msk.f32.gmra.mxu1 %vm73_vm0, %v8662_v43  ;;  %7653 = vmatmul.mubr.msk.f32.gmra.mxu0 %vm73_vm0, %v8662_v43 }
 0x181   :  { %7635 = vmatprep.mubr.msk.f32.mxu1 %vm73_vm0, %v8660_v41  ;;  %7655 = vmatprep.mubr.msk.f32.mxu0 %vm73_vm0, %v8660_v41 }
 0x182   :  { %7683 = vmatprep.subr.mxu0 %v297_v0  ;;  %7664 = vmatpush3.msra.mxu1 %v293_v63 }
 0x183   :  { %7684 = vmatpush3.msra.mxu0 %v297_v0  ;;  %7665 = vmatprep.subr.mxu1 %v292_v1 }
 0x184   :  { %7636 = vmatmul.mubr.msk.f32.gmra.mxu1 %vm73_vm0, %v8676_v47  ;;  %7656 = vmatmul.mubr.msk.f32.gmra.mxu0 %vm73_vm0, %v8676_v47 }
 0x185   :  { %7638 = vmatprep.mubr.msk.f32.mxu1 %vm73_vm0, %v8672_v46  ;;  %7658 = vmatprep.mubr.msk.f32.mxu0 %vm73_vm0, %v8672_v46 }
 0x186   :  { %7685 = vmatprep.subr.mxu0 %v296_v2  ;;  %7666 = vmatpush3.msra.mxu1 %v292_v1 }
 0x187   :  { %7686 = vmatpush3.msra.mxu0 %v296_v2  ;;  %7667 = vmatprep.subr.mxu1 %v291_v3 }
 0x188   :  { %7639 = vmatmul.mubr.msk.f32.gmra.mxu1 %vm73_vm0, %v8688_v51  ;;  %7659 = vmatmul.mubr.msk.f32.gmra.mxu0 %vm73_vm0, %v8688_v51 }
 0x189   :  { %7669 = vmatprep.mubr.msk.f32.mxu1 %vm73_vm0, %v8646_v30  ;;  %7689 = vmatprep.mubr.msk.f32.mxu0 %vm73_vm0, %v8646_v30 }
 0x18a   :  { %7687 = vmatprep.subr.mxu0 %v295_v4  ;;  %7668 = vmatpush3.msra.mxu1 %v291_v3 }
 0x18b   :  { %7688 = vmatpush3.msra.mxu0 %v295_v4  ;;  %7701 = vmatprep.subr.mxu1 %v302_v5 }
 0x18c   :  { %7670 = vmatmul.mubr.msk.f32.vlgmr.msra.gmra.mxu1 %vm73_vm0, %v8648_v32  ;;  %7690 = vmatmul.mubr.msk.f32.vlgmr.msra.gmra.mxu0 %vm73_vm0, %v8648_v32 }
 0x18d   :  { %7672 = vmatprep.mubr.msk.f32.mxu1 %vm73_vm0, %v8658_v40  ;;  %7692 = vmatprep.mubr.msk.f32.mxu0 %vm73_vm0, %v8658_v40 }
 0x18e   :  { %7721 = vmatprep.subr.mxu0 %v306_v6  ;;  %7702 = vmatpush3.msra.mxu1 %v302_v5 }
 0x18f   :  { %7722 = vmatpush3.msra.mxu0 %v306_v6  ;;  %7703 = vmatprep.subr.mxu1 %v301_v7 }
 0x190   :  { %7673 = vmatmul.mubr.msk.f32.gmra.mxu1 %vm73_vm0, %v8662_v43  ;;  %7693 = vmatmul.mubr.msk.f32.gmra.mxu0 %vm73_vm0, %v8662_v43 }
 0x191   :  { %7675 = vmatprep.mubr.msk.f32.mxu1 %vm73_vm0, %v8660_v41  ;;  %7695 = vmatprep.mubr.msk.f32.mxu0 %vm73_vm0, %v8660_v41 }
 0x192   :  { %7723 = vmatprep.subr.mxu0 %v305_v8  ;;  %7704 = vmatpush3.msra.mxu1 %v301_v7 }
 0x193   :  { %7724 = vmatpush3.msra.mxu0 %v305_v8  ;;  %7705 = vmatprep.subr.mxu1 %v300_v9 }
 0x194   :  { %7676 = vmatmul.mubr.msk.f32.gmra.mxu1 %vm73_vm0, %v8676_v47  ;;  %7696 = vmatmul.mubr.msk.f32.gmra.mxu0 %vm73_vm0, %v8676_v47 }
 0x195   :  { %7678 = vmatprep.mubr.msk.f32.mxu1 %vm73_vm0, %v8672_v46  ;;  %7698 = vmatprep.mubr.msk.f32.mxu0 %vm73_vm0, %v8672_v46 }
 0x196   :  { %7725 = vmatprep.subr.mxu0 %v304_v10  ;;  %7706 = vmatpush3.msra.mxu1 %v300_v9 }
 0x197   :  { %7726 = vmatpush3.msra.mxu0 %v304_v10  ;;  %7707 = vmatprep.subr.mxu1 %v299_v11 }
 0x198   :  { %7679 = vmatmul.mubr.msk.f32.gmra.mxu1 %vm73_vm0, %v8688_v51  ;;  %7699 = vmatmul.mubr.msk.f32.gmra.mxu0 %vm73_vm0, %v8688_v51 }
 0x199   :  { %7709 = vmatprep.mubr.msk.f32.mxu1 %vm73_vm0, %v8646_v30  ;;  %7729 = vmatprep.mubr.msk.f32.mxu0 %vm73_vm0, %v8646_v30 }
 0x19a   :  { %7727 = vmatprep.subr.mxu0 %v303_v12  ;;  %7708 = vmatpush3.msra.mxu1 %v299_v11 }
 0x19b   :  { %7728 = vmatpush3.msra.mxu0 %v303_v12 }
 0x19c   :  { %7710 = vmatmul.mubr.msk.f32.vlgmr.msra.gmra.mxu1 %vm73_vm0, %v8648_v32  ;;  %7730 = vmatmul.mubr.msk.f32.vlgmr.msra.gmra.mxu0 %vm73_vm0, %v8648_v32 }
 0x19d   :  { %7712 = vmatprep.mubr.msk.f32.mxu1 %vm73_vm0, %v8658_v40  ;;  %7732 = vmatprep.mubr.msk.f32.mxu0 %vm73_vm0, %v8658_v40 }
 0x1a0   :  { %7713 = vmatmul.mubr.msk.f32.gmra.mxu1 %vm73_vm0, %v8662_v43  ;;  %7733 = vmatmul.mubr.msk.f32.gmra.mxu0 %vm73_vm0, %v8662_v43 }
 0x1a1   :  { %7715 = vmatprep.mubr.msk.f32.mxu1 %vm73_vm0, %v8660_v41  ;;  %7735 = vmatprep.mubr.msk.f32.mxu0 %vm73_vm0, %v8660_v41 }
 0x1a4   :  { %7716 = vmatmul.mubr.msk.f32.gmra.mxu1 %vm73_vm0, %v8676_v47  ;;  %7736 = vmatmul.mubr.msk.f32.gmra.mxu0 %vm73_vm0, %v8676_v47 }
 0x1a5   :  { %7718 = vmatprep.mubr.msk.f32.mxu1 %vm73_vm0, %v8672_v46  ;;  %7738 = vmatprep.mubr.msk.f32.mxu0 %vm73_vm0, %v8672_v46 }
 0x1a8   :  { %7719 = vmatmul.mubr.msk.f32.gmra.mxu1 %vm73_vm0, %v8688_v51  ;;  %7739 = vmatmul.mubr.msk.f32.gmra.mxu0 %vm73_vm0, %v8688_v51 }
 0x1ac   :  { %v9046_v13 = vpop.f32.mrf.mxu1  ;;  %v9048_v14 = vpop.f32.mrf.mxu0 }
 0x1ae   :  { %v397_v15 = vpop.f32.mrf.mxu1  ;;  %v502_v16 = vpop.f32.mrf.mxu0 }
 0x1af   :  { %7757 = vmatprep.mubr.msk.f32.mxu1 %vm73_vm0, %v397_v15  ;;  %7785 = vmatprep.mubr.msk.f32.mxu0 %vm73_vm0, %v502_v16 }
 0x1b0   :  { %v9052_v17 = vpop.f32.mrf.mxu1  ;;  %v9054_v18 = vpop.f32.mrf.mxu0 }
 0x1b2   :  { %v9056_v19 = vpop.f32.mrf.mxu1  ;;  %v9058_v20 = vpop.f32.mrf.mxu0 }
 0x1b4   :  { %v9060_v21 = vpop.f32.mrf.mxu1  ;;  %v9062_v22 = vpop.f32.mrf.mxu0 }
 0x1b6   :  { %v9064_v23 = vpop.f32.mrf.mxu1  ;;  %v9066_v24 = vpop.f32.mrf.mxu0 }
 0x1b8   :  { %v9068_v25 = vpop.f32.mrf.mxu1  ;;  %v9070_v26 = vpop.f32.mrf.mxu0 }
 0x1ba   :  { %v9072_v27 = vpop.f32.mrf.mxu1  ;;  %v9074_v28 = vpop.f32.mrf.mxu0 }
 0x1bc   :  { %v9076_v29 = vpop.f32.mrf.mxu1  ;;  %v9078_v31 = vpop.f32.mrf.mxu0 }
 0x1be   :  { %v9080_v33 = vpop.f32.mrf.mxu1  ;;  %v9082_v34 = vpop.f32.mrf.mxu0 }
 0x1c0   :  { %v9084_v35 = vpop.f32.mrf.mxu1  ;;  %v9086_v36 = vpop.f32.mrf.mxu0 }
 0x1c2   :  { %v9088_v37 = vpop.f32.mrf.mxu1  ;;  %v9090_v38 = vpop.f32.mrf.mxu0 }
 0x1c4   :  { %v9092_v39 = vpop.f32.mrf.mxu1  ;;  %v9094_v42 = vpop.f32.mrf.mxu0 }
 0x1c6   :  { %v9096_v44 = vpop.f32.mrf.mxu1  ;;  %v9098_v45 = vpop.f32.mrf.mxu0 }
 0x1c8   :  { %v9100_v48 = vpop.f32.mrf.mxu1  ;;  %v9102_v49 = vpop.f32.mrf.mxu0 }
 0x1ca   :  { %v9104_v50 = vpop.f32.mrf.mxu1  ;;  %v9106_v52 = vpop.f32.mrf.mxu0 }
 0x1cc   :  { %v9108_v53 = vpop.f32.mrf.mxu1  ;;  %v9110_v54 = vpop.f32.mrf.mxu0 }
 0x1ce   :  { %v9112_v55 = vpop.f32.mrf.mxu1  ;;  %v9114_v56 = vpop.f32.mrf.mxu0 }
 0x1d0   :  { %v9116_v57 = vpop.f32.mrf.mxu1  ;;  %v9118_v58 = vpop.f32.mrf.mxu0 }
 0x1d2   :  { %v9120_v59 = vpop.f32.mrf.mxu1  ;;  %v9122_v60 = vpop.f32.mrf.mxu0 }
 0x1d4   :  { %v9124_v61 = vpop.f32.mrf.mxu1  ;;  %v9126_v62 = vpop.f32.mrf.mxu0 }
 0x1d6   :  { %v9128_v63 = vpop.f32.mrf.mxu1  ;;  %v9130_v0 = vpop.f32.mrf.mxu0 }
 0x1d8   :  { %v9132_v1 = vpop.f32.mrf.mxu1  ;;  %v9134_v2 = vpop.f32.mrf.mxu0 }
 0x1d9   :  { %10782 = vst [vmem:[#allocation16_spill] sm:$0xff] %v9132_v1  ;;  %10783 = vst [vmem:[#allocation17_spill] sm:$0xff] %v9134_v2 }
 0x1da   :  { %v9136_v3 = vpop.f32.mrf.mxu1  ;;  %v9138_v4 = vpop.f32.mrf.mxu0 }
 0x1db   :  { %10784 = vst [vmem:[#allocation18_spill] sm:$0xff] %v9136_v3  ;;  %10785 = vst [vmem:[#allocation19_spill] sm:$0xff] %v9138_v4 }
 0x1dc   :  { %v9140_v5 = vpop.f32.mrf.mxu1  ;;  %v9142_v6 = vpop.f32.mrf.mxu0 }
 0x1dd   :  { %10786 = vst [vmem:[#allocation20_spill] sm:$0xff] %v9140_v5  ;;  %10787 = vst [vmem:[#allocation21_spill] sm:$0xff] %v9142_v6 }
 0x1de   :  { %v9144_v7 = vpop.f32.mrf.mxu1  ;;  %v9146_v8 = vpop.f32.mrf.mxu0 }
 0x1df   :  { %10788 = vst [vmem:[#allocation22_spill] sm:$0xff] %v9144_v7  ;;  %10789 = vst [vmem:[#allocation23_spill] sm:$0xff] %v9146_v8 }
 0x1e0   :  { %v9148_v9 = vpop.f32.mrf.mxu1  ;;  %v9150_v10 = vpop.f32.mrf.mxu0 }
 0x1e1   :  { %10790 = vst [vmem:[#allocation24_spill] sm:$0xff] %v9148_v9  ;;  %10791 = vst [vmem:[#allocation25_spill] sm:$0xff] %v9150_v10 }
 0x1e2   :  { %v9152_v11 = vpop.f32.mrf.mxu1  ;;  %v9154_v12 = vpop.f32.mrf.mxu0 }
 0x1e3   :  { %10792 = vst [vmem:[#allocation26_spill] sm:$0xff] %v9152_v11  ;;  %10793 = vst [vmem:[#allocation27_spill] sm:$0xff] %v9154_v12 }
 0x1e4   :  { %v9156_v15 = vpop.f32.mrf.mxu1  ;;  %v9158_v16 = vpop.f32.mrf.mxu0 }
 0x1e5   :  { %10794 = vst [vmem:[#allocation28_spill] sm:$0xff] %v9156_v15  ;;  %10795 = vst [vmem:[#allocation29_spill] sm:$0xff] %v9158_v16 }
 0x1e6   :  { %v9160_v51 = vpop.f32.mrf.mxu1  ;;  %v9162_v46 = vpop.f32.mrf.mxu0 }
 0x1e7   :  { %10796 = vst [vmem:[#allocation30_spill] sm:$0xff] %v9160_v51  ;;  %10797 = vst [vmem:[#allocation31_spill] sm:$0xff] %v9162_v46 }
 0x1e8   :  { %v9164_v47 = vpop.f32.mrf.mxu1  ;;  %v9166_v41 = vpop.f32.mrf.mxu0 }
 0x1e9   :  { %10798 = vst [vmem:[#allocation32_spill] sm:$0xff] %v9164_v47  ;;  %10799 = vst [vmem:[#allocation33_spill] sm:$0xff] %v9166_v41 }
 0x1ea   :  { %v9168_v43 = vpop.f32.mrf.mxu1  ;;  %v9170_v40 = vpop.f32.mrf.mxu0 }
 0x1eb   :  { %10800 = vst [vmem:[#allocation34_spill] sm:$0xff] %v9168_v43  ;;  %10801 = vst [vmem:[#allocation35_spill] sm:$0xff] %v9170_v40 }
 0x1ec   :  { %v7431_v32 = vpop.f32.mrf.mxu1  ;;  %v7451_v30 = vpop.f32.mrf.mxu0 }
 0x1ee   :  { %v1237_v10 = vpop.f32.mrf.mxu1  ;;  %v1342_v9 = vpop.f32.mrf.mxu0 }
 0x1f0   :  { %v7434_v12 = vpop.f32.mrf.mxu1  ;;  %v7454_v15 = vpop.f32.mrf.mxu0 }
 0x1f2   :  { %v1247_v11 = vpop.f32.mrf.mxu1  ;;  %v1352_v16 = vpop.f32.mrf.mxu0 }
 0x1f4   :  { %v7437_v6 = vpop.f32.mrf.mxu1  ;;  %v7457_v51 = vpop.f32.mrf.mxu0 }
 0x1f6   :  { %v1257_v5 = vpop.f32.mrf.mxu1  ;;  %v1362_v46 = vpop.f32.mrf.mxu0 }
 0x1f8   :  { %v7440_v8 = vpop.f32.mrf.mxu1  ;;  %v7460_v47 = vpop.f32.mrf.mxu0 }
 0x1f9   :  { %7741 = vmatprep.subr.msk.mxu1 %vm73_vm0, %v7440_v8  ;;  %7769 = vmatprep.subr.msk.mxu0 %vm73_vm0, %v7460_v47 }
 0x1fa   :  { %v1267_v41 = vpop.f32.mrf.mxu1  ;;  %v1372_v40 = vpop.f32.mrf.mxu0  ;;  %7742 = vmatpush3.xpose.msk.msra.mxu1 %vm73_vm0, %v7440_v8  ;;  %7770 = vmatpush3.xpose.msk.msra.mxu0 %vm73_vm0, %v7460_v47 }
 0x1fb   :  { %7743 = vmatprep.subr.msk.mxu1 %vm73_vm0, %v1267_v41  ;;  %7771 = vmatprep.subr.msk.mxu0 %vm73_vm0, %v1372_v40 }
 0x1fc   :  { %v9178_v43 = vpop.f32.mrf.mxu1  ;;  %v9180_v7 = vpop.f32.mrf.mxu0 }
 0x1fe   :  { %v9182_v2 = vpop.f32.mrf.mxu1  ;;  %v9184_v1 = vpop.f32.mrf.mxu0  ;;  %7744 = vmatpush3.xpose.msk.msra.mxu1 %vm73_vm0, %v1267_v41  ;;  %7772 = vmatpush3.xpose.msk.msra.mxu0 %vm73_vm0, %v1372_v40 }
 0x1ff   :  { %7745 = vmatprep.subr.msk.mxu1 %vm73_vm0, %v7437_v6  ;;  %7773 = vmatprep.subr.msk.mxu0 %vm73_vm0, %v7457_v51 }
 0x200   :  { %v9190_v47 = vpop.f32.mrf.mxu1  ;;  %v9192_v8 = vpop.f32.mrf.mxu0 }
 0x202   :  { %7746 = vmatpush3.xpose.msk.msra.mxu1 %vm73_vm0, %v7437_v6  ;;  %7774 = vmatpush3.xpose.msk.msra.mxu0 %vm73_vm0, %v7457_v51  ;;  %v9198_v4 = vpop.f32.mrf.mxu1  ;;  %v9200_v41 = vpop.f32.mrf.mxu0 }
 0x203   :  { %7747 = vmatprep.subr.msk.mxu1 %vm73_vm0, %v1257_v5  ;;  %7775 = vmatprep.subr.msk.mxu0 %vm73_vm0, %v1362_v46 }
 0x204   :  { %v7477_v40 = vpop.f32.mrf.mxu1  ;;  %v7497_v6 = vpop.f32.mrf.mxu0 }
 0x206   :  { %7748 = vmatpush3.xpose.msk.msra.mxu1 %vm73_vm0, %v1257_v5  ;;  %7776 = vmatpush3.xpose.msk.msra.mxu0 %vm73_vm0, %v1362_v46  ;;  %v1467_v51 = vpop.f32.mrf.mxu1  ;;  %v1572_v3 = vpop.f32.mrf.mxu0 }
 0x207   :  { %7749 = vmatprep.subr.msk.mxu1 %vm73_vm0, %v7434_v12  ;;  %7777 = vmatprep.subr.msk.mxu0 %vm73_vm0, %v7454_v15 }
 0x208   :  { %v7480_v46 = vpop.f32.mrf.mxu1  ;;  %v7500_v5 = vpop.f32.mrf.mxu0 }
 0x20a   :  { %7750 = vmatpush3.xpose.msk.msra.mxu1 %vm73_vm0, %v7434_v12  ;;  %7778 = vmatpush3.xpose.msk.msra.mxu0 %vm73_vm0, %v7454_v15  ;;  %v1477_v12 = vpop.f32.mrf.mxu1  ;;  %v1582_v15 = vpop.f32.mrf.mxu0 }
 0x20b   :  { %7751 = vmatprep.subr.msk.mxu1 %vm73_vm0, %v1247_v11  ;;  %7779 = vmatprep.subr.msk.mxu0 %vm73_vm0, %v1352_v16 }
 0x20e   :  { %7752 = vmatpush3.xpose.msk.msra.mxu1 %vm73_vm0, %v1247_v11  ;;  %7780 = vmatpush3.xpose.msk.msra.mxu0 %vm73_vm0, %v1352_v16  ;;  %v9222_v11 = vpop.f32.mrf.mxu1  ;;  %v9224_v16 = vpop.f32.mrf.mxu0 }
 0x20f   :  { %7753 = vmatprep.subr.msk.mxu1 %vm73_vm0, %v7431_v32  ;;  %7781 = vmatprep.subr.msk.mxu0 %vm73_vm0, %v7451_v30 }
 0x212   :  { %7754 = vmatpush3.xpose.msk.msra.mxu1 %vm73_vm0, %v7431_v32  ;;  %7782 = vmatpush3.xpose.msk.msra.mxu0 %vm73_vm0, %v7451_v30  ;;  %v9238_v30 = vpop.f32.mrf.mxu1  ;;  %v9240_v32 = vpop.f32.mrf.mxu0 }
 0x213   :  { %7755 = vmatprep.subr.msk.mxu1 %vm73_vm0, %v1237_v10  ;;  %7783 = vmatprep.subr.msk.mxu0 %vm73_vm0, %v1342_v9 }
 0x216   :  { %7756 = vmatpush3.xpose.msk.msra.mxu1 %vm73_vm0, %v1237_v10  ;;  %7784 = vmatpush3.xpose.msk.msra.mxu0 %vm73_vm0, %v1342_v9 }
 0x217   :  { %7797 = vmatprep.subr.msk.mxu1 %vm73_vm0, %v7480_v46  ;;  %7825 = vmatprep.subr.msk.mxu0 %vm73_vm0, %v7500_v5 }
 0x219   :  { %7758 = vmatmul.mubr.msk.f32.vlgmr.msra.gmra.mxu1 %vm73_vm0, %v9046_v13  ;;  %7786 = vmatmul.mubr.msk.f32.vlgmr.msra.gmra.mxu0 %vm73_vm0, %v9048_v14  ;;  %v9254_v13 = vpop.f32.mrf.mxu1  ;;  %v9256_v14 = vpop.f32.mrf.mxu0 }
 0x21a   :  { %7760 = vmatprep.mubr.msk.f32.mxu1 %vm73_vm0, %v9056_v19  ;;  %7788 = vmatprep.mubr.msk.f32.mxu0 %vm73_vm0, %v9058_v20 }
 0x21b   :  { %7798 = vmatpush3.xpose.msk.msra.mxu1 %vm73_vm0, %v7480_v46  ;;  %7826 = vmatpush3.xpose.msk.msra.mxu0 %vm73_vm0, %v7500_v5  ;;  %v10814_v46 = vld [vmem:[#allocation26_spill] sm:$0xff]  ;;  %v10815_v5 = vld [vmem:[#allocation27_spill] sm:$0xff] }
 0x21c   :  { %7799 = vmatprep.subr.msk.mxu1 %vm73_vm0, %v1477_v12  ;;  %7827 = vmatprep.subr.msk.mxu0 %vm73_vm0, %v1582_v15 }
 0x21d   :  { %7761 = vmatmul.mubr.msk.f32.gmra.mxu1 %vm73_vm0, %v9052_v17  ;;  %7789 = vmatmul.mubr.msk.f32.gmra.mxu0 %vm73_vm0, %v9054_v18  ;;  %v9270_v17 = vpop.f32.mrf.mxu1  ;;  %v9272_v18 = vpop.f32.mrf.mxu0 }
 0x21e   :  { %7763 = vmatprep.mubr.msk.f32.mxu1 %vm73_vm0, %v9064_v23  ;;  %7791 = vmatprep.mubr.msk.f32.mxu0 %vm73_vm0, %v9066_v24 }
 0x21f   :  { %7800 = vmatpush3.xpose.msk.msra.mxu1 %vm73_vm0, %v1477_v12  ;;  %7828 = vmatpush3.xpose.msk.msra.mxu0 %vm73_vm0, %v1582_v15  ;;  %v7517_v19 = vpop.f32.mrf.mxu1  ;;  %v7537_v20 = vpop.f32.mrf.mxu0 }
 0x220   :  { %7801 = vmatprep.subr.msk.mxu1 %vm73_vm0, %v7477_v40  ;;  %7829 = vmatprep.subr.msk.mxu0 %vm73_vm0, %v7497_v6 }
 0x221   :  { %7764 = vmatmul.mubr.msk.f32.gmra.mxu1 %vm73_vm0, %v9060_v21  ;;  %7792 = vmatmul.mubr.msk.f32.gmra.mxu0 %vm73_vm0, %v9062_v22  ;;  %v1677_v21 = vpop.f32.mrf.mxu1  ;;  %v1782_v22 = vpop.f32.mrf.mxu0 }
 0x222   :  { %7766 = vmatprep.mubr.msk.f32.mxu1 %vm73_vm0, %v9072_v27  ;;  %7794 = vmatprep.mubr.msk.f32.mxu0 %vm73_vm0, %v9074_v28 }
 0x223   :  { %7802 = vmatpush3.xpose.msk.msra.mxu1 %vm73_vm0, %v7477_v40  ;;  %7830 = vmatpush3.xpose.msk.msra.mxu0 %vm73_vm0, %v7497_v6  ;;  %v7520_v23 = vpop.f32.mrf.mxu1  ;;  %v7540_v24 = vpop.f32.mrf.mxu0  ;;  %v10811_v40 = vld [vmem:[#allocation21_spill] sm:$0xff] }
 0x224   :  { %7803 = vmatprep.subr.msk.mxu1 %vm73_vm0, %v1467_v51  ;;  %7831 = vmatprep.subr.msk.mxu0 %vm73_vm0, %v1572_v3 }
 0x225   :  { %7767 = vmatmul.mubr.msk.f32.gmra.mxu1 %vm73_vm0, %v9068_v25  ;;  %7795 = vmatmul.mubr.msk.f32.gmra.mxu0 %vm73_vm0, %v9070_v26  ;;  %v1687_v25 = vpop.f32.mrf.mxu1  ;;  %v1792_v26 = vpop.f32.mrf.mxu0 }
 0x226   :  { %7813 = vmatprep.mubr.msk.f32.mxu1 %vm73_vm0, %v9080_v33  ;;  %7841 = vmatprep.mubr.msk.f32.mxu0 %vm73_vm0, %v9082_v34 }
 0x227   :  { %7804 = vmatpush3.xpose.msk.msra.mxu1 %vm73_vm0, %v1467_v51  ;;  %7832 = vmatpush3.xpose.msk.msra.mxu0 %vm73_vm0, %v1572_v3  ;;  %v9320_v27 = vpop.f32.mrf.mxu0 }
 0x228   :  { %7805 = vmatprep.subr.msk.mxu1 %vm73_vm0, %v9190_v47  ;;  %7833 = vmatprep.subr.msk.mxu0 %vm73_vm0, %v9192_v8 }
 0x229   :  { %v9334_v33 = vpop.f32.mrf.mxu0 }
 0x22b   :  { %7806 = vmatpush3.xpose.msk.msra.mxu1 %vm73_vm0, %v9190_v47  ;;  %7834 = vmatpush3.xpose.msk.msra.mxu0 %vm73_vm0, %v9192_v8 }
 0x22c   :  { %7807 = vmatprep.subr.msk.mxu1 %vm73_vm0, %v9198_v4  ;;  %7835 = vmatprep.subr.msk.mxu0 %vm73_vm0, %v9200_v41 }
 0x22f   :  { %7808 = vmatpush3.xpose.msk.msra.mxu1 %vm73_vm0, %v9198_v4  ;;  %7836 = vmatpush3.xpose.msk.msra.mxu0 %vm73_vm0, %v9200_v41  ;;  %v10810_v41 = vld [vmem:[#allocation20_spill] sm:$0xff] }
 0x230   :  { %7809 = vmatprep.subr.msk.mxu1 %vm73_vm0, %v9178_v43  ;;  %7837 = vmatprep.subr.msk.mxu0 %vm73_vm0, %v9180_v7 }
 0x233   :  { %7810 = vmatpush3.xpose.msk.msra.mxu1 %vm73_vm0, %v9178_v43  ;;  %7838 = vmatpush3.xpose.msk.msra.mxu0 %vm73_vm0, %v9180_v7  ;;  %v9318_v43 = vpop.f32.mrf.mxu1 }
 0x234   :  { %7811 = vmatprep.subr.msk.mxu1 %vm73_vm0, %v9182_v2  ;;  %7839 = vmatprep.subr.msk.mxu0 %vm73_vm0, %v9184_v1 }
 0x235   :  { %v9332_v28 = vpop.f32.mrf.mxu1 }
 0x237   :  { %7812 = vmatpush3.xpose.msk.msra.mxu1 %vm73_vm0, %v9182_v2  ;;  %7840 = vmatpush3.xpose.msk.msra.mxu0 %vm73_vm0, %v9184_v1 }
 0x238   :  { %7853 = vmatprep.subr.msk.mxu1 %vm73_vm0, %v7520_v23  ;;  %7881 = vmatprep.subr.msk.mxu0 %vm73_vm0, %v7540_v24 }
 0x23a   :  { %7814 = vmatmul.mubr.msk.f32.vlgmr.msra.gmra.mxu1 %vm73_vm0, %v9076_v29  ;;  %7842 = vmatmul.mubr.msk.f32.vlgmr.msra.gmra.mxu0 %vm73_vm0, %v9078_v31  ;;  %v9348_v29 = vpop.f32.mrf.mxu1  ;;  %v9350_v31 = vpop.f32.mrf.mxu0 }
 0x23b   :  { %7816 = vmatprep.mubr.msk.f32.mxu1 %vm73_vm0, %v9088_v37  ;;  %7844 = vmatprep.mubr.msk.f32.mxu0 %vm73_vm0, %v9090_v38 }
 0x23c   :  { %7854 = vmatpush3.xpose.msk.msra.mxu1 %vm73_vm0, %v7520_v23  ;;  %7882 = vmatpush3.xpose.msk.msra.mxu0 %vm73_vm0, %v7540_v24  ;;  %v9364_v34 = vpop.f32.mrf.mxu1 }
 0x23d   :  { %7855 = vmatprep.subr.msk.mxu1 %vm73_vm0, %v1687_v25  ;;  %7883 = vmatprep.subr.msk.mxu0 %vm73_vm0, %v1792_v26 }
 0x23e   :  { %7817 = vmatmul.mubr.msk.f32.gmra.mxu1 %vm73_vm0, %v9084_v35  ;;  %7845 = vmatmul.mubr.msk.f32.gmra.mxu0 %vm73_vm0, %v9086_v36  ;;  %v9366_v35 = vpop.f32.mrf.mxu0  ;;  %v7557_v36 = vpop.f32.mrf.mxu1 }
 0x23f   :  { %7819 = vmatprep.mubr.msk.f32.mxu1 %vm73_vm0, %v9096_v44  ;;  %7847 = vmatprep.mubr.msk.f32.mxu0 %vm73_vm0, %v9098_v45 }
 0x240   :  { %7856 = vmatpush3.xpose.msk.msra.mxu1 %vm73_vm0, %v1687_v25  ;;  %7884 = vmatpush3.xpose.msk.msra.mxu0 %vm73_vm0, %v1792_v26  ;;  %v7577_v37 = vpop.f32.mrf.mxu0  ;;  %v1887_v38 = vpop.f32.mrf.mxu1  ;;  %v10832_v25 = vld [vmem:[#allocation32_spill] sm:$0xff]  ;;  %v10833_v26 = vld [vmem:[#allocation33_spill] sm:$0xff] }
 0x241   :  { %7857 = vmatprep.subr.msk.mxu1 %vm73_vm0, %v7517_v19  ;;  %7885 = vmatprep.subr.msk.mxu0 %vm73_vm0, %v7537_v20 }
 0x242   :  { %7820 = vmatmul.mubr.msk.f32.gmra.mxu1 %vm73_vm0, %v9092_v39  ;;  %7848 = vmatmul.mubr.msk.f32.gmra.mxu0 %vm73_vm0, %v9094_v42  ;;  %v1992_v39 = vpop.f32.mrf.mxu0  ;;  %v7560_v42 = vpop.f32.mrf.mxu1 }
 0x243   :  { %7822 = vmatprep.mubr.msk.f32.mxu1 %vm73_vm0, %v9104_v50  ;;  %7850 = vmatprep.mubr.msk.f32.mxu0 %vm73_vm0, %v9106_v52 }
 0x244   :  { %7858 = vmatpush3.xpose.msk.msra.mxu1 %vm73_vm0, %v7517_v19  ;;  %7886 = vmatpush3.xpose.msk.msra.mxu0 %vm73_vm0, %v7537_v20  ;;  %v7580_v44 = vpop.f32.mrf.mxu0  ;;  %v1897_v45 = vpop.f32.mrf.mxu1 }
 0x245   :  { %7859 = vmatprep.subr.msk.mxu1 %vm73_vm0, %v1677_v21  ;;  %7887 = vmatprep.subr.msk.mxu0 %vm73_vm0, %v1782_v22 }
 0x246   :  { %7823 = vmatmul.mubr.msk.f32.gmra.mxu1 %vm73_vm0, %v9100_v48  ;;  %7851 = vmatmul.mubr.msk.f32.gmra.mxu0 %vm73_vm0, %v9102_v49  ;;  %v2002_v48 = vpop.f32.mrf.mxu0  ;;  %v9412_v49 = vpop.f32.mrf.mxu1 }
 0x247   :  { %7869 = vmatprep.mubr.msk.f32.mxu1 %vm73_vm0, %v9112_v55  ;;  %7897 = vmatprep.mubr.msk.f32.mxu0 %vm73_vm0, %v9114_v56  ;;  %v10802_v56 = vld [vmem:[#allocation18_spill] sm:$0xff] }
 0x248   :  { %7860 = vmatpush3.xpose.msk.msra.mxu1 %vm73_vm0, %v1677_v21  ;;  %7888 = vmatpush3.xpose.msk.msra.mxu0 %vm73_vm0, %v1782_v22  ;;  %v9414_v50 = vpop.f32.mrf.mxu0  ;;  %v9426_v52 = vpop.f32.mrf.mxu1  ;;  %v10828_v21 = vld [vmem:[#allocation34_spill] sm:$0xff]  ;;  %v10829_v22 = vld [vmem:[#allocation35_spill] sm:$0xff] }
 0x249   :  { %7861 = vmatprep.subr.msk.mxu1 %vm73_vm0, %v9254_v13  ;;  %7889 = vmatprep.subr.msk.mxu0 %vm73_vm0, %v9256_v14 }
 0x24a   :  { %v9428_v55 = vpop.f32.mrf.mxu0 }
 0x24c   :  { %7862 = vmatpush3.xpose.msk.msra.mxu1 %vm73_vm0, %v9254_v13  ;;  %7890 = vmatpush3.xpose.msk.msra.mxu0 %vm73_vm0, %v9256_v14 }
 0x24d   :  { %7863 = vmatprep.subr.msk.mxu1 %vm73_vm0, %v9270_v17  ;;  %7891 = vmatprep.subr.msk.mxu0 %vm73_vm0, %v9272_v18 }
 0x250   :  { %7864 = vmatpush3.xpose.msk.msra.mxu1 %vm73_vm0, %v9270_v17  ;;  %7892 = vmatpush3.xpose.msk.msra.mxu0 %vm73_vm0, %v9272_v18  ;;  %v10824_v17 = vld [vmem:[#allocation28_spill] sm:$0xff]  ;;  %v10825_v18 = vld [vmem:[#allocation29_spill] sm:$0xff] }
 0x251   :  { %7865 = vmatprep.subr.msk.mxu1 %vm73_vm0, %v9222_v11  ;;  %7893 = vmatprep.subr.msk.mxu0 %vm73_vm0, %v9224_v16 }
 0x254   :  { %7866 = vmatpush3.xpose.msk.msra.mxu1 %vm73_vm0, %v9222_v11  ;;  %7894 = vmatpush3.xpose.msk.msra.mxu0 %vm73_vm0, %v9224_v16  ;;  %v10818_v11 = vld [vmem:[#allocation24_spill] sm:$0xff]  ;;  %v10819_v16 = vld [vmem:[#allocation25_spill] sm:$0xff] }
 0x255   :  { %7867 = vmatprep.subr.msk.mxu1 %vm73_vm0, %v9238_v30  ;;  %7895 = vmatprep.subr.msk.mxu0 %vm73_vm0, %v9240_v32 }
 0x258   :  { %7868 = vmatpush3.xpose.msk.msra.mxu1 %vm73_vm0, %v9238_v30  ;;  %7896 = vmatpush3.xpose.msk.msra.mxu0 %vm73_vm0, %v9240_v32  ;;  %v10820_v30 = vld [vmem:[#allocation30_spill] sm:$0xff]  ;;  %v10821_v32 = vld [vmem:[#allocation31_spill] sm:$0xff] }
 0x259   :  { %7909 = vmatprep.subr.msk.mxu1 %vm73_vm0, %v7560_v42  ;;  %7937 = vmatprep.subr.msk.mxu0 %vm73_vm0, %v7580_v44 }
 0x25b   :  { %7870 = vmatmul.mubr.msk.f32.vlgmr.msra.gmra.mxu1 %vm73_vm0, %v9108_v53  ;;  %7898 = vmatmul.mubr.msk.f32.vlgmr.msra.gmra.mxu0 %vm73_vm0, %v9110_v54  ;;  %v9442_v53 = vpop.f32.mrf.mxu1  ;;  %v9444_v54 = vpop.f32.mrf.mxu0 }
 0x25c   :  { %7872 = vmatprep.mubr.msk.f32.mxu1 %vm73_vm0, %v9120_v59  ;;  %7900 = vmatprep.mubr.msk.f32.mxu0 %vm73_vm0, %v9122_v60  ;;  %v10804_v60 = vld [vmem:[#allocation16_spill] sm:$0xff] }
 0x25d   :  { %7910 = vmatpush3.xpose.msk.msra.mxu1 %vm73_vm0, %v7560_v42  ;;  %7938 = vmatpush3.xpose.msk.msra.mxu0 %vm73_vm0, %v7580_v44  ;;  %v9460_v59 = vpop.f32.mrf.mxu0 }
 0x25e   :  { %7911 = vmatprep.subr.msk.mxu1 %vm73_vm0, %v1897_v45  ;;  %7939 = vmatprep.subr.msk.mxu0 %vm73_vm0, %v2002_v48 }
 0x25f   :  { %7873 = vmatmul.mubr.msk.f32.gmra.mxu1 %vm73_vm0, %v9116_v57  ;;  %7901 = vmatmul.mubr.msk.f32.gmra.mxu0 %vm73_vm0, %v9118_v58  ;;  %v10803_v57 = vld [vmem:[#allocation19_spill] sm:$0xff]  ;;  %v9458_v58 = vpop.f32.mrf.mxu1  ;;  %v7617_v1 = vpop.f32.mrf.mxu0 }
 0x260   :  { %7875 = vmatprep.mubr.msk.f32.mxu1 %vm73_vm0, %v9128_v63  ;;  %7903 = vmatprep.mubr.msk.f32.mxu0 %vm73_vm0, %v9130_v0  ;;  %v10807_v63 = vld [vmem:[#allocation23_spill] sm:$0xff] }
 0x261   :  { %7912 = vmatpush3.xpose.msk.msra.mxu1 %vm73_vm0, %v1897_v45  ;;  %7940 = vmatpush3.xpose.msk.msra.mxu0 %vm73_vm0, %v2002_v48  ;;  %v7597_v0 = vpop.f32.mrf.mxu1  ;;  %v2202_v3 = vpop.f32.mrf.mxu0 }
 0x262   :  { %7913 = vmatprep.subr.msk.mxu1 %vm73_vm0, %v7557_v36  ;;  %7941 = vmatprep.subr.msk.mxu0 %vm73_vm0, %v7577_v37 }
 0x263   :  { %7876 = vmatmul.mubr.msk.f32.gmra.mxu1 %vm73_vm0, %v9124_v61  ;;  %7904 = vmatmul.mubr.msk.f32.gmra.mxu0 %vm73_vm0, %v9126_v62  ;;  %v10805_v61 = vld [vmem:[#allocation17_spill] sm:$0xff]  ;;  %v10806_v62 = vld [vmem:[#allocation22_spill] sm:$0xff]  ;;  %v2097_v2 = vpop.f32.mrf.mxu1  ;;  %v7620_v7 = vpop.f32.mrf.mxu0 }
 0x264   :  { %7878 = vmatprep.mubr.msk.f32.mxu1 %vm73_vm0, %v10802_v56  ;;  %7906 = vmatprep.mubr.msk.f32.mxu0 %vm73_vm0, %v10803_v57 }
 0x265   :  { %7914 = vmatpush3.xpose.msk.msra.mxu1 %vm73_vm0, %v7557_v36  ;;  %7942 = vmatpush3.xpose.msk.msra.mxu0 %vm73_vm0, %v7577_v37  ;;  %v7600_v4 = vpop.f32.mrf.mxu1  ;;  %v2212_v10 = vpop.f32.mrf.mxu0 }
 0x266   :  { %7915 = vmatprep.subr.msk.mxu1 %vm73_vm0, %v1887_v38  ;;  %7943 = vmatprep.subr.msk.mxu0 %vm73_vm0, %v1992_v39 }
 0x267   :  { %7879 = vmatmul.mubr.msk.f32.gmra.mxu1 %vm73_vm0, %v10804_v60  ;;  %7907 = vmatmul.mubr.msk.f32.gmra.mxu0 %vm73_vm0, %v10805_v61  ;;  %v2107_v9 = vpop.f32.mrf.mxu1  ;;  %v9506_v8 = vpop.f32.mrf.mxu0 }
 0x268   :  { %7925 = vmatprep.mubr.msk.f32.mxu1 %vm73_vm0, %v10806_v62  ;;  %7953 = vmatprep.mubr.msk.f32.mxu0 %vm73_vm0, %v10807_v63  ;;  %10809 = vst [vmem:[#allocation19_spill] sm:$0xff] %v9506_v8 }
 0x269   :  { %7916 = vmatpush3.xpose.msk.msra.mxu1 %vm73_vm0, %v1887_v38  ;;  %7944 = vmatpush3.xpose.msk.msra.mxu0 %vm73_vm0, %v1992_v39  ;;  %v9504_v47 = vpop.f32.mrf.mxu1  ;;  %v9518_v51 = vpop.f32.mrf.mxu0 }
 0x26a   :  { %7917 = vmatprep.subr.msk.mxu1 %vm73_vm0, %v9348_v29  ;;  %7945 = vmatprep.subr.msk.mxu0 %vm73_vm0, %v9350_v31  ;;  %10808 = vst [vmem:[#allocation18_spill] sm:$0xff] %v9504_v47  ;;  %10813 = vst [vmem:[#allocation17_spill] sm:$0xff] %v9518_v51 }
 0x26b   :  { %v9516_v6 = vpop.f32.mrf.mxu1  ;;  %v9526_v15 = vpop.f32.mrf.mxu0 }
 0x26c   :  { %10812 = vst [vmem:[#allocation16_spill] sm:$0xff] %v9516_v6  ;;  %10817 = vst [vmem:[#allocation23_spill] sm:$0xff] %v9526_v15 }
 0x26d   :  { %7918 = vmatpush3.xpose.msk.msra.mxu1 %vm73_vm0, %v9348_v29  ;;  %7946 = vmatpush3.xpose.msk.msra.mxu0 %vm73_vm0, %v9350_v31  ;;  %v9524_v12 = vpop.f32.mrf.mxu1  ;;  %v9538_v14 = vpop.f32.mrf.mxu0 }
 0x26e   :  { %7919 = vmatprep.subr.msk.mxu1 %vm73_vm0, %v9364_v34  ;;  %7947 = vmatprep.subr.msk.mxu0 %vm73_vm0, %v9366_v35  ;;  %10816 = vst [vmem:[#allocation22_spill] sm:$0xff] %v9524_v12  ;;  %10823 = vst [vmem:[#allocation21_spill] sm:$0xff] %v9538_v14 }
 0x26f   :  { %v9536_v13 = vpop.f32.mrf.mxu1  ;;  %v9548_v20 = vpop.f32.mrf.mxu0 }
 0x270   :  { %10822 = vst [vmem:[#allocation20_spill] sm:$0xff] %v9536_v13  ;;  %10827 = vst [vmem:[#allocation27_spill] sm:$0xff] %v9548_v20 }
 0x271   :  { %7920 = vmatpush3.xpose.msk.msra.mxu1 %vm73_vm0, %v9364_v34  ;;  %7948 = vmatpush3.xpose.msk.msra.mxu0 %vm73_vm0, %v9366_v35  ;;  %v9546_v19 = vpop.f32.mrf.mxu1  ;;  %v9562_v24 = vpop.f32.mrf.mxu0 }
 0x272   :  { %7921 = vmatprep.subr.msk.mxu1 %vm73_vm0, %v9318_v43  ;;  %7949 = vmatprep.subr.msk.mxu0 %vm73_vm0, %v9320_v27  ;;  %10826 = vst [vmem:[#allocation26_spill] sm:$0xff] %v9546_v19  ;;  %10831 = vst [vmem:[#allocation25_spill] sm:$0xff] %v9562_v24 }
 0x273   :  { %v9560_v23 = vpop.f32.mrf.mxu1 }
 0x274   :  { %10830 = vst [vmem:[#allocation24_spill] sm:$0xff] %v9560_v23 }
 0x275   :  { %7922 = vmatpush3.xpose.msk.msra.mxu1 %vm73_vm0, %v9318_v43  ;;  %7950 = vmatpush3.xpose.msk.msra.mxu0 %vm73_vm0, %v9320_v27  ;;  %v9574_v43 = vpop.f32.mrf.mxu1  ;;  %v9576_v27 = vpop.f32.mrf.mxu0 }
 0x276   :  { %7923 = vmatprep.subr.msk.mxu1 %vm73_vm0, %v9332_v28  ;;  %7951 = vmatprep.subr.msk.mxu0 %vm73_vm0, %v9334_v33  ;;  %10834 = vst [vmem:[#allocation30_spill] sm:$0xff] %v9574_v43  ;;  %10835 = vst [vmem:[#allocation31_spill] sm:$0xff] %v9576_v27 }
 0x279   :  { %7924 = vmatpush3.xpose.msk.msra.mxu1 %vm73_vm0, %v9332_v28  ;;  %7952 = vmatpush3.xpose.msk.msra.mxu0 %vm73_vm0, %v9334_v33  ;;  %v9582_v28 = vpop.f32.mrf.mxu1  ;;  %v9584_v33 = vpop.f32.mrf.mxu0 }
 0x27a   :  { %7965 = vmatprep.subr.mxu1 %v7600_v4  ;;  %7993 = vmatprep.subr.mxu0 %v7620_v7  ;;  %10836 = vst [vmem:[#allocation28_spill] sm:$0xff] %v9582_v28  ;;  %10837 = vst [vmem:[#allocation29_spill] sm:$0xff] %v9584_v33 }
 0x27b   :  { %v9586_v29 = vpop.f32.mrf.mxu1  ;;  %v9588_v31 = vpop.f32.mrf.mxu0 }
 0x27c   :  { %7926 = vmatmul.mubr.msk.f32.vlgmr.msra.gmra.mxu1 %vm73_vm0, %v10810_v41  ;;  %7954 = vmatmul.mubr.msk.f32.vlgmr.msra.gmra.mxu0 %vm73_vm0, %v10811_v40  ;;  %10838 = vst [vmem:[#allocation34_spill] sm:$0xff] %v9586_v29  ;;  %10839 = vst [vmem:[#allocation35_spill] sm:$0xff] %v9588_v31 }
 0x27d   :  { %7928 = vmatprep.mubr.msk.f32.mxu1 %vm73_vm0, %v10814_v46  ;;  %7956 = vmatprep.mubr.msk.f32.mxu0 %vm73_vm0, %v10815_v5  ;;  %v9590_v34 = vpop.f32.mrf.mxu1  ;;  %v9592_v35 = vpop.f32.mrf.mxu0 }
 0x27e   :  { %7966 = vmatpush3.msra.mxu1 %v7600_v4  ;;  %7994 = vmatpush3.msra.mxu0 %v7620_v7  ;;  %10840 = vst [vmem:[#allocation32_spill] sm:$0xff] %v9590_v34  ;;  %10841 = vst [vmem:[#allocation33_spill] sm:$0xff] %v9592_v35 }
 0x27f   :  { %7967 = vmatprep.subr.mxu1 %v2107_v9  ;;  %7995 = vmatprep.subr.mxu0 %v2212_v10  ;;  %v9594_v36 = vpop.f32.mrf.mxu1  ;;  %v9596_v37 = vpop.f32.mrf.mxu0 }
 0x280   :  { %7968 = vmatpush3.msra.mxu1 %v2107_v9  ;;  %7996 = vmatpush3.msra.mxu0 %v2212_v10  ;;  %10842 = vst [vmem:[#allocation36_spill] sm:$0xff] %v9594_v36  ;;  %10843 = vst [vmem:[#allocation37_spill] sm:$0xff] %v9596_v37 }
 0x281   :  { %7929 = vmatmul.mubr.msk.f32.gmra.mxu1 %vm73_vm0, %v10818_v11  ;;  %7957 = vmatmul.mubr.msk.f32.gmra.mxu0 %vm73_vm0, %v10819_v16  ;;  %v9598_v38 = vpop.f32.mrf.mxu1  ;;  %v9600_v39 = vpop.f32.mrf.mxu0 }
 0x282   :  { %7969 = vmatprep.subr.mxu1 %v7597_v0  ;;  %7997 = vmatprep.subr.mxu0 %v7617_v1  ;;  %10844 = vst [vmem:[#allocation38_spill] sm:$0xff] %v9598_v38  ;;  %10845 = vst [vmem:[#allocation39_spill] sm:$0xff] %v9600_v39 }
 0x283   :  { %7931 = vmatprep.mubr.msk.f32.mxu1 %vm73_vm0, %v10820_v30  ;;  %7959 = vmatprep.mubr.msk.f32.mxu0 %vm73_vm0, %v10821_v32  ;;  %v9602_v42 = vpop.f32.mrf.mxu1  ;;  %v9604_v44 = vpop.f32.mrf.mxu0 }
 0x284   :  { %7970 = vmatpush3.msra.mxu1 %v7597_v0  ;;  %7998 = vmatpush3.msra.mxu0 %v7617_v1  ;;  %10846 = vst [vmem:[#allocation40_spill] sm:$0xff] %v9602_v42  ;;  %10847 = vst [vmem:[#allocation41_spill] sm:$0xff] %v9604_v44 }
 0x285   :  { %7971 = vmatprep.subr.mxu1 %v2097_v2  ;;  %7999 = vmatprep.subr.mxu0 %v2202_v3  ;;  %v9606_v45 = vpop.f32.mrf.mxu1  ;;  %v9608_v48 = vpop.f32.mrf.mxu0 }
 0x286   :  { %7972 = vmatpush3.msra.mxu1 %v2097_v2  ;;  %8000 = vmatpush3.msra.mxu0 %v2202_v3  ;;  %10848 = vst [vmem:[#allocation42_spill] sm:$0xff] %v9606_v45  ;;  %10849 = vst [vmem:[#allocation43_spill] sm:$0xff] %v9608_v48 }
 0x287   :  { %7932 = vmatmul.mubr.msk.f32.gmra.mxu1 %vm73_vm0, %v10824_v17  ;;  %7960 = vmatmul.mubr.msk.f32.gmra.mxu0 %vm73_vm0, %v10825_v18 }
 0x288   :  { %7973 = vmatprep.subr.mxu1 %v9442_v53  ;;  %8001 = vmatprep.subr.mxu0 %v9444_v54 }
 0x289   :  { %7934 = vmatprep.mubr.msk.f32.mxu1 %vm73_vm0, %v10828_v21  ;;  %7962 = vmatprep.mubr.msk.f32.mxu0 %vm73_vm0, %v10829_v22 }
 0x28a   :  { %7974 = vmatpush3.msra.mxu1 %v9442_v53  ;;  %8002 = vmatpush3.msra.mxu0 %v9444_v54 }
 0x28b   :  { %7975 = vmatprep.subr.mxu1 %v9458_v58  ;;  %8003 = vmatprep.subr.mxu0 %v9460_v59 }
 0x28c   :  { %7976 = vmatpush3.msra.mxu1 %v9458_v58  ;;  %8004 = vmatpush3.msra.mxu0 %v9460_v59 }
 0x28d   :  { %7935 = vmatmul.mubr.msk.f32.gmra.mxu1 %vm73_vm0, %v10832_v25  ;;  %7963 = vmatmul.mubr.msk.f32.gmra.mxu0 %vm73_vm0, %v10833_v26 }
 0x28e   :  { %7977 = vmatprep.subr.mxu1 %v9412_v49  ;;  %8005 = vmatprep.subr.mxu0 %v9414_v50 }
 0x28f   :  { %7978 = vmatpush3.msra.mxu1 %v9412_v49  ;;  %8006 = vmatpush3.msra.mxu0 %v9414_v50  ;;  %v9610_v49 = vpop.f32.mrf.mxu1  ;;  %v9612_v50 = vpop.f32.mrf.mxu0 }
 0x290   :  { %7979 = vmatprep.subr.mxu1 %v9426_v52  ;;  %8007 = vmatprep.subr.mxu0 %v9428_v55  ;;  %10850 = vst [vmem:[#allocation44_spill] sm:$0xff] %v9610_v49  ;;  %10851 = vst [vmem:[#allocation45_spill] sm:$0xff] %v9612_v50 }
 0x291   :  { %7980 = vmatpush3.msra.mxu1 %v9426_v52  ;;  %8008 = vmatpush3.msra.mxu0 %v9428_v55  ;;  %v9614_v52 = vpop.f32.mrf.mxu1  ;;  %v9616_v55 = vpop.f32.mrf.mxu0 }
 0x292   :  { %8021 = vmatprep.subr.mxu1 %v9574_v43  ;;  %8049 = vmatprep.subr.mxu0 %v9576_v27  ;;  %10852 = vst [vmem:[#allocation46_spill] sm:$0xff] %v9614_v52  ;;  %10853 = vst [vmem:[#allocation47_spill] sm:$0xff] %v9616_v55 }
 0x293   :  { %v9618_v53 = vpop.f32.mrf.mxu1  ;;  %v9620_v54 = vpop.f32.mrf.mxu0 }
 0x294   :  { %10854 = vst [vmem:[#allocation48_spill] sm:$0xff] %v9618_v53  ;;  %10855 = vst [vmem:[#allocation49_spill] sm:$0xff] %v9620_v54 }
 0x295   :  { %v9622_v56 = vpop.f32.mrf.mxu1  ;;  %v9624_v57 = vpop.f32.mrf.mxu0 }
 0x296   :  { %10856 = vst [vmem:[#allocation50_spill] sm:$0xff] %v9622_v56  ;;  %10857 = vst [vmem:[#allocation51_spill] sm:$0xff] %v9624_v57 }
 0x297   :  { %v9626_v58 = vpop.f32.mrf.mxu1  ;;  %v9628_v59 = vpop.f32.mrf.mxu0 }
 0x298   :  { %10858 = vst [vmem:[#allocation52_spill] sm:$0xff] %v9626_v58  ;;  %10859 = vst [vmem:[#allocation53_spill] sm:$0xff] %v9628_v59 }
 0x299   :  { %v9630_v60 = vpop.f32.mrf.mxu1  ;;  %v9632_v61 = vpop.f32.mrf.mxu0 }
 0x29a   :  { %10860 = vst [vmem:[#allocation54_spill] sm:$0xff] %v9630_v60  ;;  %10861 = vst [vmem:[#allocation55_spill] sm:$0xff] %v9632_v61 }
 0x29b   :  { %v9634_v62 = vpop.f32.mrf.mxu1  ;;  %v9636_v63 = vpop.f32.mrf.mxu0 }
 0x29c   :  { %10862 = vst [vmem:[#allocation56_spill] sm:$0xff] %v9634_v62  ;;  %10863 = vst [vmem:[#allocation57_spill] sm:$0xff] %v9636_v63 }
 0x29d   :  { %v9638_v0 = vpop.f32.mrf.mxu1  ;;  %v9640_v1 = vpop.f32.mrf.mxu0 }
 0x29e   :  { %10864 = vst [vmem:[#allocation58_spill] sm:$0xff] %v9638_v0  ;;  %10865 = vst [vmem:[#allocation59_spill] sm:$0xff] %v9640_v1 }
 0x29f   :  { %v9642_v2 = vpop.f32.mrf.mxu1  ;;  %v9644_v3 = vpop.f32.mrf.mxu0 }
 0x2a0   :  { %10866 = vst [vmem:[#allocation60_spill] sm:$0xff] %v9642_v2  ;;  %10867 = vst [vmem:[#allocation61_spill] sm:$0xff] %v9644_v3 }
 0x2a1   :  { %v9646_v4 = vpop.f32.mrf.mxu1  ;;  %v9648_v7 = vpop.f32.mrf.mxu0 }
 0x2a2   :  { %10868 = vst [vmem:[#allocation62_spill] sm:$0xff] %v9646_v4  ;;  %10869 = vst [vmem:[#allocation63_spill] sm:$0xff] %v9648_v7 }
 0x2d9   :  { %v9650_v9 = vpop.f32.mrf.mxu1  ;;  %v9652_v10 = vpop.f32.mrf.mxu0 }
 0x2da   :  { %v4103_v41 = vsel %vm4075_vm1, %v9652_v10, -inf  ;;  %v4079_v40 = vsel %vm4075_vm1, %v9650_v9, -inf }
 0x2db   :  { %4104 = vmax.xlane.f32.xlu1 %v4103_v41  ;;  %v9658_v46 = vpop.f32.mrf.mxu0  ;;  %4080 = vmax.xlane.f32.xlu0 %v4079_v40  ;;  %v9660_v5 = vpop.f32.mrf.mxu1 }
 0x2dc   :  { %v4100_v16 = vsel %vm4075_vm1, %v9658_v46, -inf  ;;  %v4076_v30 = vsel %vm4075_vm1, %v9660_v5, -inf }
 0x2dd   :  { %v9662_v11 = vpop.f32.mrf.mxu1  ;;  %v9668_v32 = vpop.f32.mrf.mxu0 }
 0x2de   :  { %v4085_v18 = vsel %vm4075_vm1, %v9662_v11, -inf  ;;  %v4109_v26 = vsel %vm4075_vm1, %v9668_v32, -inf }
 0x2df   :  { %4101 = vmax.xlane.f32.xlu1 %v4100_v16  ;;  %4077 = vmax.xlane.f32.xlu0 %v4076_v30  ;;  %v9670_v17 = vpop.f32.mrf.mxu1  ;;  %v9676_v22 = vpop.f32.mrf.mxu0 }
 0x2e0   :  { %v4082_v21 = vsel %vm4075_vm1, %v9670_v17, -inf  ;;  %v4106_v41 = vsel %vm4075_vm1, %v9676_v22, -inf }
 0x2e1   :  { %v9678_v25 = vpop.f32.mrf.mxu1  ;;  %v9684_v40 = vpop.f32.mrf.mxu0 }
 0x2e2   :  { %v4091_v30 = vsel %vm4075_vm1, %v9678_v25, -inf  ;;  %v4115_v54 = vsel %vm4075_vm1, %v9684_v40, -inf }
 0x2e3   :  { %4086 = vmax.xlane.f32.xlu1 %v4085_v18  ;;  %4083 = vmax.xlane.f32.xlu0 %v4082_v21  ;;  %v9686_v16 = vpop.f32.mrf.mxu1  ;;  %v9692_v18 = vpop.f32.mrf.mxu0 }
 0x2e4   :  { %v4088_v57 = vsel %vm4075_vm1, %v9686_v16, -inf  ;;  %v4112_v61 = vsel %vm4075_vm1, %v9692_v18, -inf }
 0x2e5   :  { %v9694_v21 = vpop.f32.mrf.mxu1 }
 0x2e6   :  { %v4097_v56 = vsel %vm4075_vm1, %v9694_v21, -inf }
 0x2e7   :  { %4110 = vmax.xlane.f32.xlu1 %v4109_v26  ;;  %4107 = vmax.xlane.f32.xlu0 %v4106_v41  ;;  %v9700_v26 = vpop.f32.mrf.mxu0  ;;  %v9702_v41 = vpop.f32.mrf.mxu1 }
 0x2e8   :  { %v4094_v59 = vsel %vm4075_vm1, %v9702_v41, -inf }
 0x2eb   :  { %4092 = vmax.xlane.f32.xlu1 %v4091_v30  ;;  %4089 = vmax.xlane.f32.xlu0 %v4088_v57  ;;  %v9708_v30 = vpop.f32.mrf.mxu0  ;;  %v4121_v57 = vsel %vm4075_vm1, %v9700_v26, -inf }
 0x2ec   :  { %v4118_v53 = vsel %vm4075_vm1, %v9708_v30, -inf }
 0x2ef   :  { %4116 = vmax.xlane.f32.xlu1 %v4115_v54  ;;  %4113 = vmax.xlane.f32.xlu0 %v4112_v61 }
 0x2f3   :  { %4098 = vmax.xlane.f32.xlu1 %v4097_v56  ;;  %4095 = vmax.xlane.f32.xlu0 %v4094_v59 }
 0x2f7   :  { %4122 = vmax.xlane.f32.xlu1 %v4121_v57  ;;  %4119 = vmax.xlane.f32.xlu0 %v4118_v53 }
 0x2fa   :  { %v9714_v54 = vpop.f32.mrf.mxu1  ;;  %v9716_v61 = vpop.f32.mrf.mxu0 }
 0x2fb   :  { %v4127_v1 = vsel %vm4075_vm1, %v9714_v54, -inf  ;;  %v4151_v53 = vsel %vm4075_vm1, %v9716_v61, -inf }
 0x2fc   :  { %4128 = vmax.xlane.f32.xlu1 %v4127_v1  ;;  %v9720_v60 = vpop.f32.mrf.mxu1  ;;  %v9724_v59 = vpop.f32.mrf.mxu0 }
 0x2fd   :  { %v4124_v56 = vsel %vm4075_vm1, %v9720_v60, -inf  ;;  %v4148_v57 = vsel %vm4075_vm1, %v9724_v59, -inf }
 0x2fe   :  { %4125 = vmax.xlane.f32.xlu0 %v4124_v56  ;;  %v9726_v63 = vpop.f32.mrf.mxu1  ;;  %v9732_v58 = vpop.f32.mrf.mxu0 }
 0x2ff   :  { %v4133_v7 = vsel %vm4075_vm1, %v9726_v63, -inf }
 0x300   :  { %4152 = vmax.xlane.f32.xlu1 %v4151_v53  ;;  %v9734_v1 = vpop.f32.mrf.mxu1  ;;  %v9740_v0 = vpop.f32.mrf.mxu0  ;;  %v4157_v53 = vsel %vm4075_vm1, %v9732_v58, -inf }
 0x301   :  { %v4130_v56 = vsel %vm4075_vm1, %v9734_v1, -inf  ;;  %v4154_v4 = vsel %vm4075_vm1, %v9740_v0, -inf }
 0x302   :  { %4149 = vmax.xlane.f32.xlu0 %v4148_v57  ;;  %v9742_v62 = vpop.f32.mrf.mxu1  ;;  %v9748_v57 = vpop.f32.mrf.mxu0 }
 0x304   :  { %4134 = vmax.xlane.f32.xlu1 %v4133_v7  ;;  %v9750_v3 = vpop.f32.mrf.mxu1  ;;  %v4139_v7 = vsel %vm4075_vm1, %v9742_v62, -inf }
 0x305   :  { %v4136_v35 = vsel %vm4075_vm1, %v9750_v3, -inf }
 0x306   :  { %4131 = vmax.xlane.f32.xlu0 %v4130_v56  ;;  %v9756_v56 = vpop.f32.mrf.mxu0  ;;  %v9758_v2 = vpop.f32.mrf.mxu1 }
 0x307   :  { %v4160_v31 = vsel %vm4075_vm1, %v9756_v56, -inf }
 0x308   :  { %4158 = vmax.xlane.f32.xlu1 %v4157_v53  ;;  %v4163_v53 = vsel %vm4075_vm1, %v9748_v57, -inf  ;;  %v9766_v39 = vpop.f32.mrf.mxu1 }
 0x309   :  { %v4142_v34 = vsel %vm4075_vm1, %v9766_v39, -inf }
 0x30a   :  { %4155 = vmax.xlane.f32.xlu0 %v4154_v4  ;;  %v9764_v4 = vpop.f32.mrf.mxu0 }
 0x30c   :  { %4140 = vmax.xlane.f32.xlu1 %v4139_v7  ;;  %v4145_v7 = vsel %vm4075_vm1, %v9758_v2, -inf }
 0x30e   :  { %4137 = vmax.xlane.f32.xlu0 %v4136_v35  ;;  %v9772_v35 = vpop.f32.mrf.mxu0 }
 0x30f   :  { %v4166_v37 = vsel %vm4075_vm1, %v9772_v35, -inf }
 0x310   :  { %4164 = vmax.xlane.f32.xlu1 %v4163_v53  ;;  %v4169_v53 = vsel %vm4075_vm1, %v9764_v4, -inf }
 0x312   :  { %4161 = vmax.xlane.f32.xlu0 %v4160_v31 }
 0x314   :  { %4146 = vmax.xlane.f32.xlu1 %v4145_v7 }
 0x316   :  { %4143 = vmax.xlane.f32.xlu0 %v4142_v34 }
 0x318   :  { %4170 = vmax.xlane.f32.xlu1 %v4169_v53 }
 0x31a   :  { %4167 = vmax.xlane.f32.xlu0 %v4166_v37 }
 0x31b   :  { %v9778_v29 = vpop.f32.mrf.mxu0  ;;  %v9780_v31 = vpop.f32.mrf.mxu1 }
 0x31c   :  { %v4175_v7 = vsel %vm4075_vm1, %v9780_v31, -inf  ;;  %v4199_v37 = vsel %vm4075_vm1, %v9778_v29, -inf }
 0x31d   :  { %4176 = vmax.xlane.f32.xlu1 %v4175_v7  ;;  %v9784_v48 = vpop.f32.mrf.mxu1  ;;  %v9788_v38 = vpop.f32.mrf.mxu0 }
 0x31e   :  { %v4172_v34 = vsel %vm4075_vm1, %v9784_v48, -inf  ;;  %v4196_v44 = vsel %vm4075_vm1, %v9788_v38, -inf }
 0x31f   :  { %4173 = vmax.xlane.f32.xlu0 %v4172_v34  ;;  %v9790_v53 = vpop.f32.mrf.mxu1  ;;  %v9796_v36 = vpop.f32.mrf.mxu0 }
 0x320   :  { %v4181_v55 = vsel %vm4075_vm1, %v9790_v53, -inf }
 0x321   :  { %4200 = vmax.xlane.f32.xlu1 %v4199_v37  ;;  %v9798_v7 = vpop.f32.mrf.mxu1  ;;  %v9804_v45 = vpop.f32.mrf.mxu0  ;;  %v4205_v37 = vsel %vm4075_vm1, %v9796_v36, -inf }
 0x322   :  { %v4178_v34 = vsel %vm4075_vm1, %v9798_v7, -inf  ;;  %v4202_v52 = vsel %vm4075_vm1, %v9804_v45, -inf }
 0x323   :  { %4197 = vmax.xlane.f32.xlu0 %v4196_v44  ;;  %v9806_v42 = vpop.f32.mrf.mxu1  ;;  %v9812_v44 = vpop.f32.mrf.mxu0 }
 0x325   :  { %4182 = vmax.xlane.f32.xlu1 %v4181_v55  ;;  %v9814_v50 = vpop.f32.mrf.mxu1  ;;  %v4187_v55 = vsel %vm4075_vm1, %v9806_v42, -inf }
 0x326   :  { %v4184_v51 = vsel %vm4075_vm1, %v9814_v50, -inf }
 0x327   :  { %4179 = vmax.xlane.f32.xlu0 %v4178_v34  ;;  %v9820_v34 = vpop.f32.mrf.mxu0  ;;  %v9822_v49 = vpop.f32.mrf.mxu1 }
 0x328   :  { %v4208_v8 = vsel %vm4075_vm1, %v9820_v34, -inf }
 0x329   :  { %4206 = vmax.xlane.f32.xlu1 %v4205_v37  ;;  %v4211_v37 = vsel %vm4075_vm1, %v9812_v44, -inf  ;;  %v9830_v14 = vpop.f32.mrf.mxu1 }
 0x32a   :  { %v4190_v6 = vsel %vm4075_vm1, %v9830_v14, -inf }
 0x32b   :  { %4203 = vmax.xlane.f32.xlu0 %v4202_v52  ;;  %v9828_v52 = vpop.f32.mrf.mxu0 }
 0x32d   :  { %4188 = vmax.xlane.f32.xlu1 %v4187_v55  ;;  %v4193_v55 = vsel %vm4075_vm1, %v9822_v49, -inf }
 0x32f   :  { %4185 = vmax.xlane.f32.xlu0 %v4184_v51  ;;  %v9836_v51 = vpop.f32.mrf.mxu0 }
 0x330   :  { %v4214_v15 = vsel %vm4075_vm1, %v9836_v51, -inf }
 0x331   :  { %4212 = vmax.xlane.f32.xlu1 %v4211_v37  ;;  %v4217_v37 = vsel %vm4075_vm1, %v9828_v52, -inf }
 0x333   :  { %4209 = vmax.xlane.f32.xlu0 %v4208_v8 }
 0x335   :  { %4194 = vmax.xlane.f32.xlu1 %v4193_v55 }
 0x337   :  { %4191 = vmax.xlane.f32.xlu0 %v4190_v6 }
 0x339   :  { %4218 = vmax.xlane.f32.xlu1 %v4217_v37 }
 0x33b   :  { %4215 = vmax.xlane.f32.xlu0 %v4214_v15 }
 0x33c   :  { %v9842_v47 = vpop.f32.mrf.mxu0  ;;  %v9844_v8 = vpop.f32.mrf.mxu1 }
 0x33d   :  { %10870 = vst [vmem:[#allocation64_spill] sm:$0xff] %v9842_v47  ;;  %v4223_v55 = vsel %vm4075_vm1, %v9844_v8, -inf  ;;  %v4247_v15 = vsel %vm4075_vm1, %v9842_v47, -inf }
 0x33e   :  { %4224 = vmax.xlane.f32.xlu1 %v4223_v55  ;;  %v9848_v24 = vpop.f32.mrf.mxu1  ;;  %v9852_v13 = vpop.f32.mrf.mxu0 }
 0x33f   :  { %10871 = vst [vmem:[#allocation65_spill] sm:$0xff] %v9848_v24  ;;  %v4220_v6 = vsel %vm4075_vm1, %v9848_v24, -inf  ;;  %10872 = vst [vmem:[#allocation66_spill] sm:$0xff] %v9852_v13  ;;  %v4244_v20 = vsel %vm4075_vm1, %v9852_v13, -inf }
 0x340   :  { %4221 = vmax.xlane.f32.xlu0 %v4220_v6 }
 0x341   :  { %v9854_v37 = vpop.f32.mrf.mxu1  ;;  %v9860_v12 = vpop.f32.mrf.mxu0 }
 0x342   :  { %10873 = vst [vmem:[#allocation67_spill] sm:$0xff] %v9854_v37  ;;  %4248 = vmax.xlane.f32.xlu1 %v4247_v15  ;;  %10874 = vst [vmem:[#allocation68_spill] sm:$0xff] %v9860_v12  ;;  %v4229_v33 = vsel %vm4075_vm1, %v9854_v37, -inf  ;;  %v4253_v15 = vsel %vm4075_vm1, %v9860_v12, -inf }
 0x343   :  { %v9862_v55 = vpop.f32.mrf.mxu1  ;;  %v9868_v23 = vpop.f32.mrf.mxu0 }
 0x344   :  { %10875 = vst [vmem:[#allocation69_spill] sm:$0xff] %v9862_v55  ;;  %4245 = vmax.xlane.f32.xlu0 %v4244_v20  ;;  %v4226_v6 = vsel %vm4075_vm1, %v9862_v55, -inf  ;;  %10876 = vst [vmem:[#allocation70_spill] sm:$0xff] %v9868_v23  ;;  %v4250_v19 = vsel %vm4075_vm1, %v9868_v23, -inf }
 0x346   :  { %4230 = vmax.xlane.f32.xlu1 %v4229_v33 }
 0x347   :  { %v9870_v27 = vpop.f32.mrf.mxu1  ;;  %v9876_v20 = vpop.f32.mrf.mxu0 }
 0x348   :  { %10877 = vst [vmem:[#allocation71_spill] sm:$0xff] %v9870_v27  ;;  %4227 = vmax.xlane.f32.xlu0 %v4226_v6  ;;  %10878 = vst [vmem:[#allocation72_spill] sm:$0xff] %v9876_v20  ;;  %v4235_v33 = vsel %vm4075_vm1, %v9870_v27, -inf }
 0x349   :  { %v9878_v28 = vpop.f32.mrf.mxu1  ;;  %v9884_v6 = vpop.f32.mrf.mxu0 }
 0x34a   :  { %4254 = vmax.xlane.f32.xlu1 %v4253_v15  ;;  %10879 = vst [vmem:[#allocation73_spill] sm:$0xff] %v9878_v28  ;;  %v4232_v43 = vsel %vm4075_vm1, %v9878_v28, -inf  ;;  %10880 = vst [vmem:[#allocation74_spill] sm:$0xff] %v9884_v6  ;;  %v4259_v15 = vsel %vm4075_vm1, %v9876_v20, -inf  ;;  %v4256_v23 = vsel %vm4075_vm1, %v9884_v6, -inf }
 0x34c   :  { %4251 = vmax.xlane.f32.xlu0 %v4250_v19 }
 0x34d   :  { %v9886_v55 = vpop.f32.mrf.mxu1  ;;  %v9892_v19 = vpop.f32.mrf.mxu0 }
 0x34e   :  { %4236 = vmax.xlane.f32.xlu1 %v4235_v33  ;;  %10881 = vst [vmem:[#allocation75_spill] sm:$0xff] %v9886_v55  ;;  %10882 = vst [vmem:[#allocation76_spill] sm:$0xff] %v9892_v19  ;;  %v4241_v33 = vsel %vm4075_vm1, %v9886_v55, -inf }
 0x34f   :  { %v9894_v12 = vpop.f32.mrf.mxu1 }
 0x350   :  { %4233 = vmax.xlane.f32.xlu0 %v4232_v43  ;;  %10883 = vst [vmem:[#allocation77_spill] sm:$0xff] %v9894_v12  ;;  %v4238_v28 = vsel %vm4075_vm1, %v9894_v12, -inf  ;;  %v9900_v43 = vpop.f32.mrf.mxu0 }
 0x351   :  { %10884 = vst [vmem:[#allocation78_spill] sm:$0xff] %v9900_v43  ;;  %v4262_v6 = vsel %vm4075_vm1, %v9900_v43, -inf }
 0x352   :  { %4260 = vmax.xlane.f32.xlu1 %v4259_v15  ;;  %v4265_v15 = vsel %vm4075_vm1, %v9892_v19, -inf }
 0x354   :  { %4257 = vmax.xlane.f32.xlu0 %v4256_v23 }
 0x356   :  { %4242 = vmax.xlane.f32.xlu1 %v4241_v33 }
 0x358   :  { %4239 = vmax.xlane.f32.xlu0 %v4238_v28 }
 0x35a   :  { %4266 = vmax.xlane.f32.xlu1 %v4265_v15 }
 0x35c   :  { %4263 = vmax.xlane.f32.xlu0 %v4262_v6 }
 0x364   :  { %v4105_v20 = vpop.xlane.xlu1 %4104  ;;  %v4081_v23 = vpop.xlane.xlu0 %4080 }
 0x365   :  { %v4277_v27 = vsub.f32 %v9652_v10, %v4105_v20  ;;  %v4269_v33 = vsub.f32 %v9650_v9, %v4081_v23 }
 0x367   :  { %v4334_v55 = vmul.f32 1.442695, %v4269_v33  ;;  %v4350_v37 = vmul.f32 1.442695, %v4277_v27 }
 0x368   :  { %v4102_v12 = vpop.xlane.xlu1 %4101  ;;  %v4078_v13 = vpop.xlane.xlu0 %4077 }
 0x369   :  { %v4276_v28 = vsub.f32 %v9658_v46, %v4102_v12  ;;  %v4268_v47 = vsub.f32 %v9660_v5, %v4078_v13  ;;  %8249 = vpow2.f32 %v4334_v55 }
 0x36a   :  { %8251 = vpow2.f32 %v4350_v37 }
 0x36b   :  { %v4332_v15 = vmul.f32 1.442695, %v4268_v47  ;;  %v4348_v19 = vmul.f32 1.442695, %v4276_v28 }
 0x36c   :  { %v4087_v43 = vpop.xlane.xlu1 %4086  ;;  %v4084_v6 = vpop.xlane.xlu0 %4083 }
 0x36d   :  { %v4271_v24 = vsub.f32 %v9662_v11, %v4087_v43  ;;  %v4270_v10 = vsub.f32 %v9670_v17, %v4084_v6  ;;  %8253 = vpow2.f32 %v4332_v15 }
 0x36e   :  { %8255 = vpow2.f32 %v4348_v19 }
 0x36f   :  { %v4338_v9 = vmul.f32 1.442695, %v4271_v24  ;;  %v4336_v27 = vmul.f32 1.442695, %v4270_v10 }
 0x370   :  { %v4111_v20 = vpop.xlane.xlu1 %4110  ;;  %v4108_v23 = vpop.xlane.xlu0 %4107 }
 0x371   :  { %8257 = vpow2.f32 %v4338_v9  ;;  %v4279_v12 = vsub.f32 %v9668_v32, %v4111_v20  ;;  %v4278_v13 = vsub.f32 %v9676_v22, %v4108_v23 }
 0x372   :  { %8259 = vpow2.f32 %v4336_v27 }
 0x373   :  { %v4354_v47 = vmul.f32 1.442695, %v4279_v12  ;;  %v4352_v46 = vmul.f32 1.442695, %v4278_v13 }
 0x374   :  { %v4093_v5 = vpop.xlane.xlu1 %4092  ;;  %v4090_v37 = vpop.xlane.xlu0 %4089 }
 0x375   :  { %8261 = vpow2.f32 %v4354_v47  ;;  %v4273_v11 = vsub.f32 %v9678_v25, %v4093_v5  ;;  %v4272_v17 = vsub.f32 %v9686_v16, %v4090_v37 }
 0x376   :  { %v9916_v24 = vpop.eup %8249  ;;  %8263 = vpow2.f32 %v4352_v46 }
 0x377   :  { %v4342_v55 = vmul.f32 1.442695, %v4273_v11  ;;  %v4340_v19 = vmul.f32 1.442695, %v4272_v17  ;;  %v4463_v32 = vsel %vm4075_vm1, %v9916_v24, 0.0  ;;  %v9920_v22 = vpop.eup %8251 }
 0x378   :  { %v4117_v43 = vpop.xlane.xlu1 %4116  ;;  %v4114_v33 = vpop.xlane.xlu0 %4113  ;;  %4464 = vadd.xlane.f32.xlu1 %v4463_v32  ;;  %v4487_v27 = vsel %vm4075_vm1, %v9920_v22, 0.0 }
 0x379   :  { %8265 = vpow2.f32 %v4342_v55  ;;  %v4281_v28 = vsub.f32 %v9684_v40, %v4117_v43  ;;  %v4280_v15 = vsub.f32 %v9692_v18, %v4114_v33 }
 0x37a   :  { %v9924_v25 = vpop.eup %8253  ;;  %8267 = vpow2.f32 %v4340_v19 }
 0x37b   :  { %v4358_v16 = vmul.f32 1.442695, %v4281_v28  ;;  %v4356_v6 = vmul.f32 1.442695, %v4280_v15  ;;  %v4460_v20 = vsel %vm4075_vm1, %v9924_v25, 0.0  ;;  %v9930_v23 = vpop.eup %8255 }
 0x37c   :  { %v4099_v10 = vpop.xlane.xlu1 %4098  ;;  %v4096_v9 = vpop.xlane.xlu0 %4095  ;;  %4488 = vadd.xlane.f32.xlu1 %v4487_v27  ;;  %4461 = vadd.xlane.f32.xlu0 %v4460_v20  ;;  %v4484_v11 = vsel %vm4075_vm1, %v9930_v23, 0.0 }
 0x37d   :  { %8269 = vpow2.f32 %v4358_v16  ;;  %v4275_v40 = vsub.f32 %v9694_v21, %v4099_v10  ;;  %v4274_v18 = vsub.f32 %v9702_v41, %v4096_v9 }
 0x37e   :  { %v9934_v12 = vpop.eup %8257  ;;  %8271 = vpow2.f32 %v4356_v6 }
 0x37f   :  { %v4346_v13 = vmul.f32 1.442695, %v4275_v40  ;;  %v4469_v47 = vsel %vm4075_vm1, %v9934_v12, 0.0  ;;  %v4344_v46 = vmul.f32 1.442695, %v4274_v18  ;;  %v9940_v17 = vpop.eup %8259 }
 0x380   :  { %v4123_v5 = vpop.xlane.xlu1 %4122  ;;  %v4120_v37 = vpop.xlane.xlu0 %4119  ;;  %4470 = vadd.xlane.f32.xlu1 %v4469_v47  ;;  %4485 = vadd.xlane.f32.xlu0 %v4484_v11  ;;  %v4466_v32 = vsel %vm4075_vm1, %v9940_v17, 0.0 }
 0x381   :  { %8273 = vpow2.f32 %v4346_v13  ;;  %v4283_v21 = vsub.f32 %v9700_v26, %v4123_v5  ;;  %v4282_v41 = vsub.f32 %v9708_v30, %v4120_v37 }
 0x382   :  { %v9944_v55 = vpop.eup %8261  ;;  %8275 = vpow2.f32 %v4344_v46 }
 0x383   :  { %v4362_v19 = vmul.f32 1.442695, %v4283_v21  ;;  %v4360_v43 = vmul.f32 1.442695, %v4282_v41  ;;  %v4493_v33 = vsel %vm4075_vm1, %v9944_v55, 0.0  ;;  %v9950_v28 = vpop.eup %8263 }
 0x384   :  { %4494 = vadd.xlane.f32.xlu1 %v4493_v33  ;;  %4467 = vadd.xlane.f32.xlu0 %v4466_v32  ;;  %v4490_v27 = vsel %vm4075_vm1, %v9950_v28, 0.0 }
 0x385   :  { %8277 = vpow2.f32 %v4362_v19  ;;  %v4129_v15 = vpop.xlane.xlu1 %4128 }
 0x386   :  { %v9952_v26 = vpop.eup %8265  ;;  %v4285_v30 = vsub.f32 %v9714_v54, %v4129_v15  ;;  %8279 = vpow2.f32 %v4360_v43 }
 0x387   :  { %v4126_v16 = vpop.xlane.xlu0 %4125  ;;  %v4475_v6 = vsel %vm4075_vm1, %v9952_v26, 0.0  ;;  %v9960_v20 = vpop.eup %8267 }
 0x388   :  { %v4366_v10 = vmul.f32 1.442695, %v4285_v30  ;;  %v4284_v9 = vsub.f32 %v9720_v60, %v4126_v16  ;;  %4476 = vadd.xlane.f32.xlu1 %v4475_v6  ;;  %4491 = vadd.xlane.f32.xlu0 %v4490_v27  ;;  %v4472_v37 = vsel %vm4075_vm1, %v9960_v20, 0.0 }
 0x389   :  { %v4153_v40 = vpop.xlane.xlu1 %4152 }
 0x38a   :  { %v9962_v18 = vpop.eup %8269  ;;  %8281 = vpow2.f32 %v4366_v10  ;;  %v4364_v54 = vmul.f32 1.442695, %v4284_v9  ;;  %v4293_v13 = vsub.f32 %v9716_v61, %v4153_v40 }
 0x38b   :  { %v4150_v47 = vpop.xlane.xlu0 %4149  ;;  %v4499_v46 = vsel %vm4075_vm1, %v9962_v18, 0.0  ;;  %v9970_v11 = vpop.eup %8271 }
 0x38c   :  { %8283 = vpow2.f32 %v4364_v54  ;;  %v4382_v60 = vmul.f32 1.442695, %v4293_v13  ;;  %v4292_v5 = vsub.f32 %v9724_v59, %v4150_v47  ;;  %4500 = vadd.xlane.f32.xlu1 %v4499_v46  ;;  %4473 = vadd.xlane.f32.xlu0 %v4472_v37  ;;  %v4496_v15 = vsel %vm4075_vm1, %v9970_v11, 0.0 }
 0x38d   :  { %v4135_v21 = vpop.xlane.xlu1 %4134 }
 0x38e   :  { %v9972_v41 = vpop.eup %8273  ;;  %8285 = vpow2.f32 %v4382_v60  ;;  %v4380_v61 = vmul.f32 1.442695, %v4292_v5  ;;  %v4287_v19 = vsub.f32 %v9726_v63, %v4135_v21 }
 0x38f   :  { %v4132_v43 = vpop.xlane.xlu0 %4131  ;;  %v4481_v33 = vsel %vm4075_vm1, %v9972_v41, 0.0  ;;  %v9980_v30 = vpop.eup %8275 }
 0x390   :  { %8287 = vpow2.f32 %v4380_v61  ;;  %v4370_v59 = vmul.f32 1.442695, %v4287_v19  ;;  %v4286_v32 = vsub.f32 %v9734_v1, %v4132_v43  ;;  %4482 = vadd.xlane.f32.xlu1 %v4481_v33  ;;  %4497 = vadd.xlane.f32.xlu0 %v4496_v15  ;;  %v4478_v13 = vsel %vm4075_vm1, %v9980_v30, 0.0 }
 0x391   :  { %v4159_v16 = vpop.xlane.xlu1 %4158 }
 0x392   :  { %v9982_v6 = vpop.eup %8277  ;;  %8289 = vpow2.f32 %v4370_v59  ;;  %v4368_v63 = vmul.f32 1.442695, %v4286_v32  ;;  %v4295_v10 = vsub.f32 %v9732_v58, %v4159_v16 }
 0x393   :  { %v4156_v9 = vpop.xlane.xlu0 %4155  ;;  %v4505_v27 = vsel %vm4075_vm1, %v9982_v6, 0.0  ;;  %v9987_v40 = vpop.eup %8279 }
 0x394   :  { %8291 = vpow2.f32 %v4368_v63  ;;  %v4386_v1 = vmul.f32 1.442695, %v4295_v10  ;;  %v4294_v54 = vsub.f32 %v9740_v0, %v4156_v9  ;;  %4506 = vadd.xlane.f32.xlu1 %v4505_v27  ;;  %4479 = vadd.xlane.f32.xlu0 %v4478_v13  ;;  %v4502_v37 = vsel %vm4075_vm1, %v9987_v40, 0.0 }
 0x395   :  { %v4141_v47 = vpop.xlane.xlu1 %4140 }
 0x396   :  { %8293 = vpow2.f32 %v4386_v1  ;;  %v4384_v46 = vmul.f32 1.442695, %v4294_v54  ;;  %v4289_v58 = vsub.f32 %v9742_v62, %v4141_v47 }
 0x397   :  { %v9993_v60 = vpop.eup %8281  ;;  %v4138_v5 = vpop.xlane.xlu0 %4137 }
 0x398   :  { %8295 = vpow2.f32 %v4384_v46  ;;  %v4374_v21 = vmul.f32 1.442695, %v4289_v58  ;;  %v4288_v0 = vsub.f32 %v9750_v3, %v4138_v5  ;;  %v4511_v61 = vsel %vm4075_vm1, %v9993_v60, 0.0  ;;  %4503 = vadd.xlane.f32.xlu0 %v4502_v37 }
 0x399   :  { %v10000_v19 = vpop.eup %8283  ;;  %v4165_v43 = vpop.xlane.xlu1 %4164  ;;  %4512 = vadd.xlane.f32.xlu1 %v4511_v61 }
 0x39a   :  { %8297 = vpow2.f32 %v4374_v21  ;;  %v4372_v62 = vmul.f32 1.442695, %v4288_v0  ;;  %v4297_v33 = vsub.f32 %v9748_v57, %v4165_v43  ;;  %v4508_v15 = vsel %vm4075_vm1, %v10000_v19, 0.0 }
 0x39b   :  { %v10003_v59 = vpop.eup %8285  ;;  %v4162_v32 = vpop.xlane.xlu0 %4161 }
 0x39c   :  { %8299 = vpow2.f32 %v4372_v62  ;;  %v4390_v3 = vmul.f32 1.442695, %v4297_v33  ;;  %v4296_v16 = vsub.f32 %v9756_v56, %v4162_v32  ;;  %v4535_v63 = vsel %vm4075_vm1, %v10003_v59, 0.0  ;;  %4509 = vadd.xlane.f32.xlu0 %v4508_v15 }
 0x39d   :  { %v10010_v10 = vpop.eup %8287  ;;  %v4147_v9 = vpop.xlane.xlu1 %4146  ;;  %4536 = vadd.xlane.f32.xlu1 %v4535_v63 }
 0x39e   :  { %8301 = vpow2.f32 %v4390_v3  ;;  %v4388_v57 = vmul.f32 1.442695, %v4296_v16  ;;  %v4291_v27 = vsub.f32 %v9758_v2, %v4147_v9  ;;  %v4532_v13 = vsel %vm4075_vm1, %v10010_v10, 0.0 }
 0x39f   :  { %v10013_v1 = vpop.eup %8289  ;;  %v4144_v54 = vpop.xlane.xlu0 %4143 }
 0x3a0   :  { %8303 = vpow2.f32 %v4388_v57  ;;  %v4378_v56 = vmul.f32 1.442695, %v4291_v27  ;;  %v4290_v47 = vsub.f32 %v9766_v39, %v4144_v54  ;;  %v4517_v46 = vsel %vm4075_vm1, %v10013_v1, 0.0  ;;  %4533 = vadd.xlane.f32.xlu0 %v4532_v13 }
 0x3a1   :  { %v10020_v58 = vpop.eup %8291  ;;  %v4171_v5 = vpop.xlane.xlu1 %4170  ;;  %4518 = vadd.xlane.f32.xlu1 %v4517_v46 }
 0x3a2   :  { %8305 = vpow2.f32 %v4378_v56  ;;  %v4376_v2 = vmul.f32 1.442695, %v4290_v47  ;;  %v4299_v37 = vsub.f32 %v9764_v4, %v4171_v5  ;;  %v4514_v61 = vsel %vm4075_vm1, %v10020_v58, 0.0 }
 0x3a3   :  { %v10023_v21 = vpop.eup %8293  ;;  %v4168_v0 = vpop.xlane.xlu0 %4167 }
 0x3a4   :  { %8307 = vpow2.f32 %v4376_v2  ;;  %v4394_v39 = vmul.f32 1.442695, %v4299_v37  ;;  %v4298_v43 = vsub.f32 %v9772_v35, %v4168_v0  ;;  %v4541_v62 = vsel %vm4075_vm1, %v10023_v21, 0.0  ;;  %4515 = vadd.xlane.f32.xlu0 %v4514_v61 }
 0x3a5   :  { %v10030_v33 = vpop.eup %8295  ;;  %4542 = vadd.xlane.f32.xlu1 %v4541_v62 }
 0x3a6   :  { %8309 = vpow2.f32 %v4394_v39  ;;  %v4392_v32 = vmul.f32 1.442695, %v4298_v43  ;;  %v4177_v4 = vpop.xlane.xlu1 %4176  ;;  %v4538_v35 = vsel %vm4075_vm1, %v10030_v33, 0.0 }
 0x3a7   :  { %v10032_v15 = vpop.eup %8297  ;;  %v4301_v3 = vsub.f32 %v9780_v31, %v4177_v4 }
 0x3a8   :  { %8311 = vpow2.f32 %v4392_v32  ;;  %v4174_v16 = vpop.xlane.xlu0 %4173  ;;  %v4523_v63 = vsel %vm4075_vm1, %v10032_v15, 0.0  ;;  %4539 = vadd.xlane.f32.xlu0 %v4538_v35 }
 0x3a9   :  { %v10039_v9 = vpop.eup %8299  ;;  %v4398_v57 = vmul.f32 1.442695, %v4301_v3  ;;  %v4300_v27 = vsub.f32 %v9784_v48, %v4174_v16  ;;  %4524 = vadd.xlane.f32.xlu1 %v4523_v63 }
 0x3aa   :  { %v4201_v54 = vpop.xlane.xlu1 %4200  ;;  %v4520_v5 = vsel %vm4075_vm1, %v10039_v9, 0.0 }
 0x3ab   :  { %v10042_v13 = vpop.eup %8301  ;;  %8313 = vpow2.f32 %v4398_v57  ;;  %v4396_v31 = vmul.f32 1.442695, %v4300_v27  ;;  %v4309_v56 = vsub.f32 %v9778_v29, %v4201_v54 }
 0x3ac   :  { %v4198_v47 = vpop.xlane.xlu0 %4197  ;;  %v4547_v46 = vsel %vm4075_vm1, %v10042_v13, 0.0  ;;  %4521 = vadd.xlane.f32.xlu0 %v4520_v5 }
 0x3ad   :  { %v10049_v2 = vpop.eup %8303  ;;  %8315 = vpow2.f32 %v4396_v31  ;;  %v4414_v48 = vmul.f32 1.442695, %v4309_v56  ;;  %v4308_v37 = vsub.f32 %v9788_v38, %v4198_v47  ;;  %4548 = vadd.xlane.f32.xlu1 %v4547_v46 }
 0x3ae   :  { %v4183_v0 = vpop.xlane.xlu1 %4182  ;;  %v4544_v32 = vsel %vm4075_vm1, %v10049_v2, 0.0 }
 0x3af   :  { %v10052_v61 = vpop.eup %8305  ;;  %8317 = vpow2.f32 %v4414_v48  ;;  %v4412_v29 = vmul.f32 1.442695, %v4308_v37  ;;  %v4303_v39 = vsub.f32 %v9790_v53, %v4183_v0 }
 0x3b0   :  { %v4180_v43 = vpop.xlane.xlu0 %4179  ;;  %v4529_v62 = vsel %vm4075_vm1, %v10052_v61, 0.0  ;;  %4545 = vadd.xlane.f32.xlu0 %v4544_v32 }
 0x3b1   :  { %v10059_v4 = vpop.eup %8307  ;;  %8319 = vpow2.f32 %v4412_v29  ;;  %v4402_v38 = vmul.f32 1.442695, %v4303_v39  ;;  %v4302_v3 = vsub.f32 %v9798_v7, %v4180_v43  ;;  %4530 = vadd.xlane.f32.xlu1 %v4529_v62 }
 0x3b2   :  { %v4207_v16 = vpop.xlane.xlu1 %4206  ;;  %v4526_v54 = vsel %vm4075_vm1, %v10059_v4, 0.0 }
 0x3b3   :  { %v10062_v63 = vpop.eup %8309  ;;  %8321 = vpow2.f32 %v4402_v38  ;;  %v4400_v53 = vmul.f32 1.442695, %v4302_v3  ;;  %v4311_v35 = vsub.f32 %v9796_v36, %v4207_v16 }
 0x3b4   :  { %v4204_v57 = vpop.xlane.xlu0 %4203  ;;  %v4553_v27 = vsel %vm4075_vm1, %v10062_v63, 0.0  ;;  %4527 = vadd.xlane.f32.xlu0 %v4526_v54 }
 0x3b5   :  { %v10069_v31 = vpop.eup %8311  ;;  %8323 = vpow2.f32 %v4400_v53  ;;  %v4418_v7 = vmul.f32 1.442695, %v4311_v35  ;;  %v4310_v56 = vsub.f32 %v9804_v45, %v4204_v57  ;;  %4554 = vadd.xlane.f32.xlu1 %v4553_v27 }
 0x3b6   :  { %v4189_v47 = vpop.xlane.xlu1 %4188  ;;  %v4550_v37 = vsel %vm4075_vm1, %v10069_v31, 0.0 }
 0x3b7   :  { %8325 = vpow2.f32 %v4418_v7  ;;  %v4416_v46 = vmul.f32 1.442695, %v4310_v56  ;;  %v4305_v36 = vsub.f32 %v9806_v42, %v4189_v47 }
 0x3b8   :  { %v10073_v5 = vpop.eup %8313  ;;  %v4186_v48 = vpop.xlane.xlu0 %4185  ;;  %4551 = vadd.xlane.f32.xlu0 %v4550_v37 }
 0x3b9   :  { %8327 = vpow2.f32 %v4416_v46  ;;  %v4406_v0 = vmul.f32 1.442695, %v4305_v36  ;;  %v4304_v29 = vsub.f32 %v9814_v50, %v4186_v48  ;;  %v4559_v45 = vsel %vm4075_vm1, %v10073_v5, 0.0 }
 0x3ba   :  { %v10080_v39 = vpop.eup %8315  ;;  %v4213_v43 = vpop.xlane.xlu1 %4212  ;;  %4560 = vadd.xlane.f32.xlu1 %v4559_v45 }
 0x3bb   :  { %8329 = vpow2.f32 %v4406_v0  ;;  %v4404_v42 = vmul.f32 1.442695, %v4304_v29  ;;  %v4313_v62 = vsub.f32 %v9812_v44, %v4213_v43  ;;  %v4556_v3 = vsel %vm4075_vm1, %v10080_v39, 0.0 }
 0x3bc   :  { %v10083_v32 = vpop.eup %8317  ;;  %v4210_v38 = vpop.xlane.xlu0 %4209  ;;  %4557 = vadd.xlane.f32.xlu0 %v4556_v3 }
 0x3bd   :  { %8331 = vpow2.f32 %v4404_v42  ;;  %v4422_v50 = vmul.f32 1.442695, %v4313_v62  ;;  %v4312_v16 = vsub.f32 %v9820_v34, %v4210_v38  ;;  %v4583_v53 = vsel %vm4075_vm1, %v10083_v32, 0.0 }
 0x3be   :  { %v10090_v35 = vpop.eup %8319  ;;  %v4195_v57 = vpop.xlane.xlu1 %4194  ;;  %4584 = vadd.xlane.f32.xlu1 %v4583_v53 }
 0x3bf   :  { %8333 = vpow2.f32 %v4422_v50  ;;  %v4420_v44 = vmul.f32 1.442695, %v4312_v16  ;;  %v4307_v27 = vsub.f32 %v9822_v49, %v4195_v57  ;;  %v4580_v56 = vsel %vm4075_vm1, %v10090_v35, 0.0 }
 0x3c0   :  { %v10093_v54 = vpop.eup %8321  ;;  %v4192_v7 = vpop.xlane.xlu0 %4191  ;;  %4581 = vadd.xlane.f32.xlu0 %v4580_v56 }
 0x3c1   :  { %8335 = vpow2.f32 %v4420_v44  ;;  %v4410_v34 = vmul.f32 1.442695, %v4307_v27  ;;  %v4306_v47 = vsub.f32 %v9830_v14, %v4192_v7  ;;  %v4565_v46 = vsel %vm4075_vm1, %v10093_v54, 0.0  ;;  %v10885_v27 = vld [vmem:[#allocation65_spill] sm:$0xff] }
 0x3c2   :  { %v10100_v36 = vpop.eup %8323  ;;  %v4219_v48 = vpop.xlane.xlu1 %4218  ;;  %4566 = vadd.xlane.f32.xlu1 %v4565_v46 }
 0x3c3   :  { %8337 = vpow2.f32 %v4410_v34  ;;  %v4408_v49 = vmul.f32 1.442695, %v4306_v47  ;;  %v4315_v37 = vsub.f32 %v9828_v52, %v4219_v48  ;;  %v4562_v45 = vsel %vm4075_vm1, %v10100_v36, 0.0  ;;  %v10886_v47 = vld [vmem:[#allocation64_spill] sm:$0xff] }
 0x3c4   :  { %v10103_v0 = vpop.eup %8325  ;;  %v4216_v29 = vpop.xlane.xlu0 %4215  ;;  %4563 = vadd.xlane.f32.xlu0 %v4562_v45 }
 0x3c5   :  { %8339 = vpow2.f32 %v4408_v49  ;;  %v4426_v14 = vmul.f32 1.442695, %v4315_v37  ;;  %v4314_v43 = vsub.f32 %v9836_v51, %v4216_v29  ;;  %v4589_v42 = vsel %vm4075_vm1, %v10103_v0, 0.0 }
 0x3c6   :  { %v10110_v62 = vpop.eup %8327  ;;  %4590 = vadd.xlane.f32.xlu1 %v4589_v42 }
 0x3c7   :  { %8341 = vpow2.f32 %v4426_v14  ;;  %v4424_v38 = vmul.f32 1.442695, %v4314_v43  ;;  %v4225_v52 = vpop.xlane.xlu1 %4224  ;;  %v4586_v16 = vsel %vm4075_vm1, %v10110_v62, 0.0  ;;  %v10887_v14 = vld [vmem:[#allocation66_spill] sm:$0xff] }
 0x3c8   :  { %v10112_v3 = vpop.eup %8329  ;;  %v4317_v50 = vsub.f32 %v9844_v8, %v4225_v52  ;;  %4587 = vadd.xlane.f32.xlu0 %v4586_v16 }
 0x3c9   :  { %8343 = vpow2.f32 %v4424_v38  ;;  %v4222_v53 = vpop.xlane.xlu0 %4221  ;;  %v4571_v51 = vsel %vm4075_vm1, %v10112_v3, 0.0 }
 0x3ca   :  { %v10119_v57 = vpop.eup %8331  ;;  %v4430_v44 = vmul.f32 1.442695, %v4317_v50  ;;  %v4316_v7 = vsub.f32 %v10885_v27, %v4222_v53  ;;  %4572 = vadd.xlane.f32.xlu1 %v4571_v51  ;;  %v10888_v50 = vld [vmem:[#allocation67_spill] sm:$0xff] }
 0x3cb   :  { %v4249_v56 = vpop.xlane.xlu1 %4248  ;;  %v4568_v48 = vsel %vm4075_vm1, %v10119_v57, 0.0 }
 0x3cc   :  { %v10122_v34 = vpop.eup %8333  ;;  %8345 = vpow2.f32 %v4430_v44  ;;  %v4428_v8 = vmul.f32 1.442695, %v4316_v7  ;;  %v4325_v46 = vsub.f32 %v10886_v47, %v4249_v56  ;;  %4569 = vadd.xlane.f32.xlu0 %v4568_v48  ;;  %v10889_v56 = vld [vmem:[#allocation69_spill] sm:$0xff] }
 0x3cd   :  { %v4246_v49 = vpop.xlane.xlu0 %4245  ;;  %v4595_v37 = vsel %vm4075_vm1, %v10122_v34, 0.0 }
 0x3ce   :  { %v10129_v29 = vpop.eup %8335  ;;  %8347 = vpow2.f32 %v4428_v8  ;;  %v4446_v45 = vmul.f32 1.442695, %v4325_v46  ;;  %v4324_v43 = vsub.f32 %v10887_v14, %v4246_v49  ;;  %4596 = vadd.xlane.f32.xlu1 %v4595_v37  ;;  %v10890_v49 = vld [vmem:[#allocation68_spill] sm:$0xff] }
 0x3cf   :  { %v4231_v42 = vpop.xlane.xlu1 %4230  ;;  %v4592_v53 = vsel %vm4075_vm1, %v10129_v29, 0.0 }
 0x3d0   :  { %v10132_v38 = vpop.eup %8337  ;;  %8349 = vpow2.f32 %v4446_v45  ;;  %v4444_v52 = vmul.f32 1.442695, %v4324_v43  ;;  %v4319_v16 = vsub.f32 %v10888_v50, %v4231_v42  ;;  %4593 = vadd.xlane.f32.xlu0 %v4592_v53  ;;  %v10891_v50 = vld [vmem:[#allocation70_spill] sm:$0xff] }
 0x3d1   :  { %v4228_v51 = vpop.xlane.xlu0 %4227  ;;  %v4577_v44 = vsel %vm4075_vm1, %v10132_v38, 0.0 }
 0x3d2   :  { %v10139_v27 = vpop.eup %8339  ;;  %8351 = vpow2.f32 %v4444_v52  ;;  %v4434_v7 = vmul.f32 1.442695, %v4319_v16  ;;  %v4318_v8 = vsub.f32 %v10889_v56, %v4228_v51  ;;  %4578 = vadd.xlane.f32.xlu1 %v4577_v44  ;;  %v10892_v44 = vld [vmem:[#allocation71_spill] sm:$0xff] }
 0x3d3   :  { %v4255_v47 = vpop.xlane.xlu1 %4254  ;;  %v4574_v45 = vsel %vm4075_vm1, %v10139_v27, 0.0 }
 0x3d4   :  { %v10142_v46 = vpop.eup %8341  ;;  %8353 = vpow2.f32 %v4434_v7  ;;  %v4432_v48 = vmul.f32 1.442695, %v4318_v8  ;;  %v4327_v37 = vsub.f32 %v10890_v49, %v4255_v47  ;;  %4575 = vadd.xlane.f32.xlu0 %v4574_v45  ;;  %v10894_v45 = vld [vmem:[#allocation73_spill] sm:$0xff] }
 0x3d5   :  { %v4252_v14 = vpop.xlane.xlu0 %4251  ;;  %v4601_v43 = vsel %vm4075_vm1, %v10142_v46, 0.0 }
 0x3d6   :  { %v10149_v42 = vpop.eup %8343  ;;  %8355 = vpow2.f32 %v4432_v48  ;;  %v4450_v52 = vmul.f32 1.442695, %v4327_v37  ;;  %v4326_v16 = vsub.f32 %v10891_v50, %v4252_v14  ;;  %4602 = vadd.xlane.f32.xlu1 %v4601_v43  ;;  %v10896_v50 = vld [vmem:[#allocation72_spill] sm:$0xff] }
 0x3d7   :  { %v4237_v53 = vpop.xlane.xlu1 %4236  ;;  %v4598_v56 = vsel %vm4075_vm1, %v10149_v42, 0.0 }
 0x3d8   :  { %8357 = vpow2.f32 %v4450_v52  ;;  %v4448_v51 = vmul.f32 1.442695, %v4326_v16  ;;  %v4321_v7 = vsub.f32 %v10892_v44, %v4237_v53  ;;  %4599 = vadd.xlane.f32.xlu0 %v4598_v56  ;;  %v10898_v56 = vld [vmem:[#allocation74_spill] sm:$0xff] }
 0x3d9   :  { %v10155_v8 = vpop.eup %8345  ;;  %v4234_v47 = vpop.xlane.xlu0 %4233 }
 0x3da   :  { %10893 = vst [vmem:[#allocation65_spill] sm:$0xff] %v10155_v8  ;;  %8359 = vpow2.f32 %v4448_v51  ;;  %v4438_v49 = vmul.f32 1.442695, %v4321_v7  ;;  %v4320_v48 = vsub.f32 %v10894_v45, %v4234_v47  ;;  %v4607_v37 = vsel %vm4075_vm1, %v10155_v8, 0.0 }
 0x3db   :  { %v10160_v14 = vpop.eup %8347  ;;  %v4261_v43 = vpop.xlane.xlu1 %4260  ;;  %4608 = vadd.xlane.f32.xlu1 %v4607_v37  ;;  %v10900_v37 = vld [vmem:[#allocation75_spill] sm:$0xff] }
 0x3dc   :  { %10895 = vst [vmem:[#allocation64_spill] sm:$0xff] %v10160_v14  ;;  %8361 = vpow2.f32 %v4438_v49  ;;  %v4436_v52 = vmul.f32 1.442695, %v4320_v48  ;;  %v4329_v16 = vsub.f32 %v10896_v50, %v4261_v43  ;;  %v4604_v53 = vsel %vm4075_vm1, %v10160_v14, 0.0 }
 0x3dd   :  { %v10165_v44 = vpop.eup %8349  ;;  %v4258_v51 = vpop.xlane.xlu0 %4257  ;;  %4605 = vadd.xlane.f32.xlu0 %v4604_v53  ;;  %v10901_v53 = vld [vmem:[#allocation77_spill] sm:$0xff] }
 0x3de   :  { %10897 = vst [vmem:[#allocation66_spill] sm:$0xff] %v10165_v44  ;;  %8363 = vpow2.f32 %v4436_v52  ;;  %v4454_v7 = vmul.f32 1.442695, %v4329_v16  ;;  %v4328_v47 = vsub.f32 %v10898_v56, %v4258_v51  ;;  %v4631_v45 = vsel %vm4075_vm1, %v10165_v44, 0.0 }
 0x3df   :  { %v10170_v8 = vpop.eup %8351  ;;  %4632 = vadd.xlane.f32.xlu1 %v4631_v45  ;;  %v4243_v49 = vpop.xlane.xlu1 %4242 }
 0x3e0   :  { %10899 = vst [vmem:[#allocation67_spill] sm:$0xff] %v10170_v8  ;;  %8365 = vpow2.f32 %v4454_v7  ;;  %v4452_v48 = vmul.f32 1.442695, %v4328_v47  ;;  %v4323_v43 = vsub.f32 %v10900_v37, %v4243_v49  ;;  %v4628_v50 = vsel %vm4075_vm1, %v10170_v8, 0.0  ;;  %v10902_v49 = vld [vmem:[#allocation76_spill] sm:$0xff] }
 0x3e1   :  { %v10175_v14 = vpop.eup %8353  ;;  %v4240_v52 = vpop.xlane.xlu0 %4239  ;;  %4629 = vadd.xlane.f32.xlu0 %v4628_v50  ;;  %v10904_v50 = vld [vmem:[#allocation78_spill] sm:$0xff] }
 0x3e2   :  { %8367 = vpow2.f32 %v4452_v48  ;;  %v4442_v16 = vmul.f32 1.442695, %v4323_v43  ;;  %v4322_v51 = vsub.f32 %v10901_v53, %v4240_v52  ;;  %v4613_v56 = vsel %vm4075_vm1, %v10175_v14, 0.0 }
 0x3e3   :  { %v10180_v45 = vpop.eup %8355  ;;  %4614 = vadd.xlane.f32.xlu1 %v4613_v56  ;;  %v4267_v7 = vpop.xlane.xlu1 %4266 }
 0x3e4   :  { %8369 = vpow2.f32 %v4442_v16  ;;  %v4440_v47 = vmul.f32 1.442695, %v4322_v51  ;;  %v4331_v37 = vsub.f32 %v10902_v49, %v4267_v7  ;;  %v4610_v44 = vsel %vm4075_vm1, %v10180_v45, 0.0 }
 0x3e5   :  { %v10185_v8 = vpop.eup %8357  ;;  %v4264_v48 = vpop.xlane.xlu0 %4263  ;;  %4611 = vadd.xlane.f32.xlu0 %v4610_v44 }
 0x3e6   :  { %10903 = vst [vmem:[#allocation69_spill] sm:$0xff] %v10185_v8  ;;  %8371 = vpow2.f32 %v4440_v47  ;;  %v4458_v43 = vmul.f32 1.442695, %v4331_v37  ;;  %v4330_v52 = vsub.f32 %v10904_v50, %v4264_v48  ;;  %v4637_v53 = vsel %vm4075_vm1, %v10185_v8, 0.0 }
 0x3e7   :  { %v10190_v56 = vpop.eup %8359  ;;  %4638 = vadd.xlane.f32.xlu1 %v4637_v53 }
 0x3e8   :  { %10905 = vst [vmem:[#allocation68_spill] sm:$0xff] %v10190_v56  ;;  %8373 = vpow2.f32 %v4458_v43  ;;  %v4456_v16 = vmul.f32 1.442695, %v4330_v52  ;;  %v4634_v51 = vsel %vm4075_vm1, %v10190_v56, 0.0 }
 0x3e9   :  { %v10194_v7 = vpop.eup %8361  ;;  %4635 = vadd.xlane.f32.xlu0 %v4634_v51 }
 0x3ea   :  { %10906 = vst [vmem:[#allocation70_spill] sm:$0xff] %v10194_v7  ;;  %8375 = vpow2.f32 %v4456_v16  ;;  %v4619_v44 = vsel %vm4075_vm1, %v10194_v7, 0.0 }
 0x3eb   :  { %v10198_v47 = vpop.eup %8363  ;;  %4620 = vadd.xlane.f32.xlu1 %v4619_v44 }
 0x3ec   :  { %10907 = vst [vmem:[#allocation71_spill] sm:$0xff] %v10198_v47  ;;  %v4616_v49 = vsel %vm4075_vm1, %v10198_v47, 0.0 }
 0x3ed   :  { %v10202_v37 = vpop.eup %8365  ;;  %4617 = vadd.xlane.f32.xlu0 %v4616_v49 }
 0x3ee   :  { %10908 = vst [vmem:[#allocation73_spill] sm:$0xff] %v10202_v37  ;;  %v4643_v48 = vsel %vm4075_vm1, %v10202_v37, 0.0 }
 0x3ef   :  { %v10206_v43 = vpop.eup %8367  ;;  %4644 = vadd.xlane.f32.xlu1 %v4643_v48 }
 0x3f0   :  { %10909 = vst [vmem:[#allocation72_spill] sm:$0xff] %v10206_v43  ;;  %v4640_v50 = vsel %vm4075_vm1, %v10206_v43, 0.0 }
 0x3f1   :  { %v10210_v52 = vpop.eup %8369  ;;  %4641 = vadd.xlane.f32.xlu0 %v4640_v50 }
 0x3f2   :  { %10910 = vst [vmem:[#allocation74_spill] sm:$0xff] %v10210_v52  ;;  %v4625_v53 = vsel %vm4075_vm1, %v10210_v52, 0.0 }
 0x3f3   :  { %v10214_v16 = vpop.eup %8371  ;;  %4626 = vadd.xlane.f32.xlu1 %v4625_v53 }
 0x3f4   :  { %10911 = vst [vmem:[#allocation75_spill] sm:$0xff] %v10214_v16  ;;  %v4622_v51 = vsel %vm4075_vm1, %v10214_v16, 0.0 }
 0x3f5   :  { %v10218_v44 = vpop.eup %8373  ;;  %4623 = vadd.xlane.f32.xlu0 %v4622_v51 }
 0x3f6   :  { %10912 = vst [vmem:[#allocation77_spill] sm:$0xff] %v10218_v44  ;;  %v4649_v49 = vsel %vm4075_vm1, %v10218_v44, 0.0 }
 0x3f7   :  { %v10222_v48 = vpop.eup %8375  ;;  %4650 = vadd.xlane.f32.xlu1 %v4649_v49 }
 0x3f8   :  { %10913 = vst [vmem:[#allocation76_spill] sm:$0xff] %v10222_v48  ;;  %v4646_v50 = vsel %vm4075_vm1, %v10222_v48, 0.0 }
 0x3f9   :  { %4647 = vadd.xlane.f32.xlu0 %v4646_v50 }
 0x401   :  { %v4465_v52 = vpop.xlane.xlu1 %4464 }
 0x402   :  { %8377 = vrcp.f32 %v4465_v52 }
 0x405   :  { %v4489_v37 = vpop.xlane.xlu1 %4488  ;;  %v4462_v43 = vpop.xlane.xlu0 %4461 }
 0x406   :  { %8379 = vrcp.f32 %v4462_v43 }
 0x407   :  { %8381 = vrcp.f32 %v4489_v37 }
 0x409   :  { %v4471_v53 = vpop.xlane.xlu1 %4470  ;;  %v4486_v16 = vpop.xlane.xlu0 %4485 }
 0x40a   :  { %8383 = vrcp.f32 %v4486_v16 }
 0x40b   :  { %8385 = vrcp.f32 %v4471_v53 }
 0x40d   :  { %v4495_v51 = vpop.xlane.xlu1 %4494  ;;  %v4468_v7 = vpop.xlane.xlu0 %4467 }
 0x40e   :  { %8387 = vrcp.f32 %v4468_v7  ;;  %v10914_v7 = vld [vmem:[#allocation30_spill] sm:$0xff] }
 0x40f   :  { %v8378_v49 = vpop.eup %8377 }
 0x410   :  { %v4717_v43 = vmul.f32 %v8378_v49, %v9916_v24  ;;  %v10918_v49 = vld [vmem:[#allocation24_spill] sm:$0xff] }
 0x411   :  { %v4477_v44 = vpop.xlane.xlu1 %4476  ;;  %v4492_v47 = vpop.xlane.xlu0 %4491 }
 0x412   :  { %8389 = vrcp.f32 %v4492_v47 }
 0x413   :  { %v8380_v8 = vpop.eup %8379  ;;  %8391 = vrcp.f32 %v4495_v51 }
 0x414   :  { %v4716_v56 = vmul.f32 %v8380_v8, %v9924_v25  ;;  %v8382_v52 = vpop.eup %8381  ;;  %v10915_v25 = vld [vmem:[#allocation28_spill] sm:$0xff] }
 0x415   :  { %v4501_v50 = vpop.xlane.xlu1 %4500  ;;  %v4474_v48 = vpop.xlane.xlu0 %4473  ;;  %v4725_v51 = vmul.f32 %v8382_v52, %v9920_v22 }
 0x416   :  { %8393 = vrcp.f32 %v4474_v48  ;;  %7981 = vmatprep.mubr.msk.f32.mxu1 %vm4075_vm1, %v4716_v56  ;;  %v10916_v56 = vld [vmem:[#allocation26_spill] sm:$0xff] }
 0x417   :  { %v8384_v37 = vpop.eup %8383  ;;  %7982 = vmatmul.mubr.msk.f32.vlgmr.msra.gmra.mxu1 %vm4075_vm1, %v4717_v43  ;;  %8395 = vrcp.f32 %v4477_v44  ;;  %v10917_v44 = vld [vmem:[#allocation31_spill] sm:$0xff] }
 0x418   :  { %8022 = vmatpush3.msra.mxu1 %v10914_v7  ;;  %v4724_v53 = vmul.f32 %v8384_v37, %v9930_v23  ;;  %8397 = vrcp.f32 %v4501_v50  ;;  %v8386_v24 = vpop.eup %8385  ;;  %v10919_v50 = vld [vmem:[#allocation29_spill] sm:$0xff]  ;;  %v10920_v37 = vld [vmem:[#allocation22_spill] sm:$0xff] }
 0x419   :  { %v4483_v16 = vpop.xlane.xlu1 %4482  ;;  %v4498_v47 = vpop.xlane.xlu0 %4497  ;;  %8023 = vmatprep.subr.mxu1 %v10915_v25  ;;  %v4719_v43 = vmul.f32 %v8386_v24, %v9934_v12  ;;  %v10922_v12 = vld [vmem:[#allocation20_spill] sm:$0xff] }
 0x41a   :  { %8024 = vmatpush3.msra.mxu1 %v10915_v25  ;;  %8399 = vrcp.f32 %v4498_v47  ;;  %8009 = vmatprep.mubr.msk.f32.mxu0 %vm4075_vm1, %v4724_v53  ;;  %v10921_v47 = vld [vmem:[#allocation27_spill] sm:$0xff] }
 0x41b   :  { %v8388_v8 = vpop.eup %8387  ;;  %8025 = vmatprep.subr.mxu1 %v10916_v56  ;;  %8010 = vmatmul.mubr.msk.f32.vlgmr.msra.gmra.mxu0 %vm4075_vm1, %v4725_v51  ;;  %8401 = vrcp.f32 %v4483_v16  ;;  %v10923_v51 = vld [vmem:[#allocation25_spill] sm:$0xff] }
 0x41c   :  { %8026 = vmatpush3.msra.mxu1 %v10916_v56  ;;  %8050 = vmatpush3.msra.mxu0 %v10917_v44  ;;  %v4718_v48 = vmul.f32 %v8388_v8, %v9940_v17 }
 0x41d   :  { %v4507_v23 = vpop.xlane.xlu1 %4506  ;;  %v4480_v22 = vpop.xlane.xlu0 %4479  ;;  %8027 = vmatprep.subr.mxu1 %v10918_v49  ;;  %8051 = vmatprep.subr.mxu0 %v10919_v50 }
 0x41e   :  { %8028 = vmatpush3.msra.mxu1 %v10918_v49  ;;  %8052 = vmatpush3.msra.mxu0 %v10919_v50  ;;  %8403 = vrcp.f32 %v4480_v22  ;;  %v10926_v49 = vld [vmem:[#allocation16_spill] sm:$0xff]  ;;  %v10927_v50 = vld [vmem:[#allocation21_spill] sm:$0xff] }
 0x41f   :  { %v8390_v52 = vpop.eup %8389  ;;  %7984 = vmatprep.mubr.msk.f32.mxu1 %vm4075_vm1, %v4718_v48  ;;  %8029 = vmatprep.subr.mxu1 %v10920_v37  ;;  %8405 = vrcp.f32 %v4507_v23  ;;  %v10925_v23 = vld [vmem:[#allocation23_spill] sm:$0xff] }
 0x420   :  { %v8392_v7 = vpop.eup %8391  ;;  %8053 = vmatprep.subr.mxu0 %v10921_v47  ;;  %7985 = vmatmul.mubr.msk.f32.gmra.mxu1 %vm4075_vm1, %v4719_v43  ;;  %v4726_v53 = vmul.f32 %v8390_v52, %v9950_v28  ;;  %v10924_v28 = vld [vmem:[#allocation18_spill] sm:$0xff] }
 0x421   :  { %v4504_v16 = vpop.xlane.xlu0 %4503  ;;  %8030 = vmatpush3.msra.mxu1 %v10920_v37  ;;  %8054 = vmatpush3.msra.mxu0 %v10921_v47  ;;  %v4727_v24 = vmul.f32 %v8392_v7, %v9944_v55  ;;  %v10928_v7 = vld [vmem:[#allocation19_spill] sm:$0xff] }
 0x422   :  { %v4513_v17 = vpop.xlane.xlu1 %4512  ;;  %8031 = vmatprep.subr.mxu1 %v10922_v12  ;;  %8055 = vmatprep.subr.mxu0 %v10923_v51  ;;  %8407 = vrcp.f32 %v4504_v16 }
 0x423   :  { %v8394_v25 = vpop.eup %8393  ;;  %8032 = vmatpush3.msra.mxu1 %v10922_v12  ;;  %8056 = vmatpush3.msra.mxu0 %v10923_v51  ;;  %8409 = vrcp.f32 %v4513_v17  ;;  %v10929_v17 = vld [vmem:[#allocation44_spill] sm:$0xff] }
 0x424   :  { %8012 = vmatprep.mubr.msk.f32.mxu0 %vm4075_vm1, %v4726_v53  ;;  %8033 = vmatprep.subr.mxu1 %v10924_v28  ;;  %v8396_v44 = vpop.eup %8395  ;;  %v4720_v22 = vmul.f32 %v8394_v25, %v9960_v20 }
 0x425   :  { %v4510_v56 = vpop.xlane.xlu0 %4509  ;;  %8057 = vmatprep.subr.mxu0 %v10925_v23  ;;  %8013 = vmatmul.mubr.msk.f32.gmra.mxu0 %vm4075_vm1, %v4727_v24  ;;  %v8398_v48 = vpop.eup %8397  ;;  %v4721_v43 = vmul.f32 %v8396_v44, %v9952_v26  ;;  %v10930_v26 = vld [vmem:[#allocation17_spill] sm:$0xff] }
 0x426   :  { %v4537_v8 = vpop.xlane.xlu1 %4536  ;;  %8034 = vmatpush3.msra.mxu1 %v10924_v28  ;;  %8058 = vmatpush3.msra.mxu0 %v10925_v23  ;;  %8411 = vrcp.f32 %v4510_v56  ;;  %v4729_v16 = vmul.f32 %v8398_v48, %v9962_v18  ;;  %v10931_v18 = vld [vmem:[#allocation45_spill] sm:$0xff] }
 0x427   :  { %v8400_v55 = vpop.eup %8399  ;;  %8035 = vmatprep.subr.mxu1 %v10926_v49  ;;  %8059 = vmatprep.subr.mxu0 %v10927_v50  ;;  %8413 = vrcp.f32 %v4537_v8 }
 0x428   :  { %8036 = vmatpush3.msra.mxu1 %v10926_v49  ;;  %8060 = vmatpush3.msra.mxu0 %v10927_v50  ;;  %v4728_v20 = vmul.f32 %v8400_v55, %v9970_v11  ;;  %v8402_v47 = vpop.eup %8401 }
 0x429   :  { %v4534_v37 = vpop.xlane.xlu0 %4533  ;;  %7987 = vmatprep.mubr.msk.f32.mxu1 %vm4075_vm1, %v4720_v22  ;;  %8061 = vmatprep.subr.mxu0 %v10928_v7  ;;  %v4723_v25 = vmul.f32 %v8402_v47, %v9972_v41 }
 0x42a   :  { %v4519_v52 = vpop.xlane.xlu1 %4518  ;;  %8077 = vmatprep.subr.mxu1 %v10929_v17  ;;  %7988 = vmatmul.mubr.msk.f32.gmra.mxu1 %vm4075_vm1, %v4721_v43  ;;  %8415 = vrcp.f32 %v4534_v37 }
 0x42b   :  { %v8404_v53 = vpop.eup %8403  ;;  %8062 = vmatpush3.msra.mxu0 %v10928_v7  ;;  %8015 = vmatprep.mubr.msk.f32.mxu0 %vm4075_vm1, %v4728_v20  ;;  %8417 = vrcp.f32 %v4519_v52  ;;  %v10933_v7 = vld [vmem:[#allocation40_spill] sm:$0xff] }
 0x42c   :  { %8063 = vmatprep.subr.mxu0 %v10930_v26  ;;  %8016 = vmatmul.mubr.msk.f32.gmra.mxu0 %vm4075_vm1, %v4729_v16  ;;  %v4722_v51 = vmul.f32 %v8404_v53, %v9980_v30  ;;  %v8406_v24 = vpop.eup %8405  ;;  %v10935_v16 = vld [vmem:[#allocation47_spill] sm:$0xff] }
 0x42d   :  { %v4516_v12 = vpop.xlane.xlu0 %4515  ;;  %8064 = vmatpush3.msra.mxu0 %v10930_v26  ;;  %v4731_v30 = vmul.f32 %v8406_v24, %v9982_v6 }
 0x42e   :  { %v4543_v11 = vpop.xlane.xlu1 %4542  ;;  %8105 = vmatprep.subr.mxu0 %v10931_v18  ;;  %8419 = vrcp.f32 %v4516_v12  ;;  %7990 = vmatprep.mubr.msk.f32.mxu1 %vm4075_vm1, %v4722_v51 }
 0x42f   :  { %v8408_v28 = vpop.eup %8407  ;;  %7991 = vmatmul.mubr.msk.f32.gmra.mxu1 %vm4075_vm1, %v4723_v25 }
 0x430   :  { %v4730_v44 = vmul.f32 %v8408_v28, %v9987_v40  ;;  %v8410_v23 = vpop.eup %8409 }
 0x431   :  { %v4540_v56 = vpop.xlane.xlu0 %4539  ;;  %v4733_v49 = vmul.f32 %v8410_v23, %v9993_v60 }
 0x432   :  { %v4525_v8 = vpop.xlane.xlu1 %4524  ;;  %8421 = vrcp.f32 %v4540_v56  ;;  %8018 = vmatprep.mubr.msk.f32.mxu0 %vm4075_vm1, %v4730_v44 }
 0x433   :  { %v8412_v41 = vpop.eup %8411  ;;  %8423 = vrcp.f32 %v4543_v11  ;;  %8019 = vmatmul.mubr.msk.f32.gmra.mxu0 %vm4075_vm1, %v4731_v30  ;;  %v10936_v11 = vld [vmem:[#allocation36_spill] sm:$0xff]  ;;  %v10941_v30 = vld [vmem:[#allocation37_spill] sm:$0xff] }
 0x434   :  { %v4732_v55 = vmul.f32 %v8412_v41, %v10000_v19  ;;  %v8414_v50 = vpop.eup %8413  ;;  %v10932_v19 = vld [vmem:[#allocation46_spill] sm:$0xff] }
 0x435   :  { %v4522_v48 = vpop.xlane.xlu0 %4521  ;;  %v4741_v37 = vmul.f32 %v8414_v50, %v10003_v59 }
 0x436   :  { %v4549_v22 = vpop.xlane.xlu1 %4548  ;;  %8425 = vrcp.f32 %v4522_v48  ;;  %8037 = vmatprep.mubr.msk.f32.mxu1 %vm4075_vm1, %v4732_v55  ;;  %v10942_v48 = vld [vmem:[#allocation32_spill] sm:$0xff]  ;;  %v10943_v55 = vld [vmem:[#allocation39_spill] sm:$0xff] }
 0x437   :  { %v8416_v40 = vpop.eup %8415  ;;  %8038 = vmatmul.mubr.msk.f32.vlgmr.msra.gmra.mxu1 %vm4075_vm1, %v4733_v49  ;;  %8427 = vrcp.f32 %v4525_v8 }
 0x438   :  { %8078 = vmatpush3.msra.mxu1 %v10929_v17  ;;  %v4740_v52 = vmul.f32 %v8416_v40, %v10010_v10  ;;  %8429 = vrcp.f32 %v4549_v22  ;;  %v8418_v60 = vpop.eup %8417  ;;  %v10934_v17 = vld [vmem:[#allocation42_spill] sm:$0xff]  ;;  %v10944_v40 = vld [vmem:[#allocation35_spill] sm:$0xff] }
 0x439   :  { %v4546_v43 = vpop.xlane.xlu0 %4545  ;;  %8079 = vmatprep.subr.mxu1 %v10932_v19  ;;  %v4735_v53 = vmul.f32 %v8418_v60, %v10013_v1  ;;  %v10938_v1 = vld [vmem:[#allocation38_spill] sm:$0xff] }
 0x43a   :  { %v4531_v6 = vpop.xlane.xlu1 %4530  ;;  %8080 = vmatpush3.msra.mxu1 %v10932_v19  ;;  %8431 = vrcp.f32 %v4546_v43  ;;  %8065 = vmatprep.mubr.msk.f32.mxu0 %vm4075_vm1, %v4740_v52  ;;  %v10945_v52 = vld [vmem:[#allocation60_spill] sm:$0xff] }
 0x43b   :  { %v8420_v20 = vpop.eup %8419  ;;  %8081 = vmatprep.subr.mxu1 %v10933_v7  ;;  %8066 = vmatmul.mubr.msk.f32.vlgmr.msra.gmra.mxu0 %vm4075_vm1, %v4741_v37  ;;  %8433 = vrcp.f32 %v4531_v6 }
 0x43c   :  { %8082 = vmatpush3.msra.mxu1 %v10933_v7  ;;  %8106 = vmatpush3.msra.mxu0 %v10931_v18  ;;  %v4734_v47 = vmul.f32 %v8420_v20, %v10020_v58  ;;  %v10937_v58 = vld [vmem:[#allocation41_spill] sm:$0xff]  ;;  %v10939_v18 = vld [vmem:[#allocation43_spill] sm:$0xff] }
 0x43d   :  { %v4528_v59 = vpop.xlane.xlu0 %4527  ;;  %8083 = vmatprep.subr.mxu1 %v10934_v17  ;;  %8107 = vmatprep.subr.mxu0 %v10935_v16 }
 0x43e   :  { %v4555_v10 = vpop.xlane.xlu1 %4554  ;;  %8084 = vmatpush3.msra.mxu1 %v10934_v17  ;;  %8108 = vmatpush3.msra.mxu0 %v10935_v16  ;;  %8435 = vrcp.f32 %v4528_v59  ;;  %v10947_v59 = vld [vmem:[#allocation61_spill] sm:$0xff] }
 0x43f   :  { %v8422_v26 = vpop.eup %8421  ;;  %8040 = vmatprep.mubr.msk.f32.mxu1 %vm4075_vm1, %v4734_v47  ;;  %8085 = vmatprep.subr.mxu1 %v10936_v11  ;;  %8437 = vrcp.f32 %v4555_v10 }
 0x440   :  { %v8424_v12 = vpop.eup %8423  ;;  %8109 = vmatprep.subr.mxu0 %v10937_v58  ;;  %8041 = vmatmul.mubr.msk.f32.gmra.mxu1 %vm4075_vm1, %v4735_v53  ;;  %v4742_v25 = vmul.f32 %v8422_v26, %v10030_v33  ;;  %v10940_v33 = vld [vmem:[#allocation34_spill] sm:$0xff] }
 0x441   :  { %v4552_v51 = vpop.xlane.xlu0 %4551  ;;  %8086 = vmatpush3.msra.mxu1 %v10936_v11  ;;  %8110 = vmatpush3.msra.mxu0 %v10937_v58  ;;  %v4743_v8 = vmul.f32 %v8424_v12, %v10023_v21 }
 0x442   :  { %8439 = vrcp.f32 %v4552_v51  ;;  %8087 = vmatprep.subr.mxu1 %v10938_v1  ;;  %8111 = vmatprep.subr.mxu0 %v10939_v18 }
 0x443   :  { %v4561_v24 = vpop.xlane.xlu1 %4560  ;;  %v8426_v28 = vpop.eup %8425  ;;  %8088 = vmatpush3.msra.mxu1 %v10938_v1  ;;  %8112 = vmatpush3.msra.mxu0 %v10939_v18 }
 0x444   :  { %8441 = vrcp.f32 %v4561_v24  ;;  %8068 = vmatprep.mubr.msk.f32.mxu0 %vm4075_vm1, %v4742_v25  ;;  %8089 = vmatprep.subr.mxu1 %v10940_v33  ;;  %v8428_v44 = vpop.eup %8427  ;;  %v4736_v41 = vmul.f32 %v8426_v28, %v10039_v9  ;;  %v10948_v24 = vld [vmem:[#allocation62_spill] sm:$0xff]  ;;  %v10949_v28 = vld [vmem:[#allocation56_spill] sm:$0xff] }
 0x445   :  { %v4558_v56 = vpop.xlane.xlu0 %4557  ;;  %8113 = vmatprep.subr.mxu0 %v10941_v30  ;;  %8069 = vmatmul.mubr.msk.f32.gmra.mxu0 %vm4075_vm1, %v4743_v8  ;;  %v8430_v22 = vpop.eup %8429  ;;  %v4737_v49 = vmul.f32 %v8428_v44, %v10032_v15  ;;  %v10946_v15 = vld [vmem:[#allocation33_spill] sm:$0xff]  ;;  %v10951_v8 = vld [vmem:[#allocation63_spill] sm:$0xff] }
 0x446   :  { %8443 = vrcp.f32 %v4558_v56  ;;  %8090 = vmatpush3.msra.mxu1 %v10940_v33  ;;  %8114 = vmatpush3.msra.mxu0 %v10941_v30  ;;  %v4745_v37 = vmul.f32 %v8430_v22, %v10042_v13 }
 0x447   :  { %v4585_v23 = vpop.xlane.xlu1 %4584  ;;  %v8432_v21 = vpop.eup %8431  ;;  %8091 = vmatprep.subr.mxu1 %v10942_v48  ;;  %8115 = vmatprep.subr.mxu0 %v10943_v55 }
 0x448   :  { %8445 = vrcp.f32 %v4585_v23  ;;  %8092 = vmatpush3.msra.mxu1 %v10942_v48  ;;  %8116 = vmatpush3.msra.mxu0 %v10943_v55  ;;  %v4744_v9 = vmul.f32 %v8432_v21, %v10049_v2  ;;  %v8434_v43 = vpop.eup %8433  ;;  %v10952_v23 = vld [vmem:[#allocation52_spill] sm:$0xff]  ;;  %v10954_v48 = vld [vmem:[#allocation54_spill] sm:$0xff] }
 0x449   :  { %v4582_v50 = vpop.xlane.xlu0 %4581  ;;  %8043 = vmatprep.mubr.msk.f32.mxu1 %vm4075_vm1, %v4736_v41  ;;  %8117 = vmatprep.subr.mxu0 %v10944_v40  ;;  %v4739_v13 = vmul.f32 %v8434_v43, %v10052_v61  ;;  %v10953_v41 = vld [vmem:[#allocation57_spill] sm:$0xff] }
 0x44a   :  { %8447 = vrcp.f32 %v4582_v50  ;;  %8133 = vmatprep.subr.mxu1 %v10945_v52  ;;  %8044 = vmatmul.mubr.msk.f32.gmra.mxu1 %vm4075_vm1, %v4737_v49 }
 0x44b   :  { %v4567_v6 = vpop.xlane.xlu1 %4566  ;;  %v8436_v19 = vpop.eup %8435  ;;  %8118 = vmatpush3.msra.mxu0 %v10944_v40  ;;  %8071 = vmatprep.mubr.msk.f32.mxu0 %vm4075_vm1, %v4744_v9  ;;  %v10957_v40 = vld [vmem:[#allocation53_spill] sm:$0xff] }
 0x44c   :  { %8119 = vmatprep.subr.mxu0 %v10946_v15  ;;  %8449 = vrcp.f32 %v4567_v6  ;;  %8072 = vmatmul.mubr.msk.f32.gmra.mxu0 %vm4075_vm1, %v4745_v37  ;;  %v4738_v60 = vmul.f32 %v8436_v19, %v10059_v4  ;;  %v8438_v20 = vpop.eup %8437  ;;  %v10959_v37 = vld [vmem:[#allocation55_spill] sm:$0xff] }
 0x44d   :  { %v4564_v2 = vpop.xlane.xlu0 %4563  ;;  %8120 = vmatpush3.msra.mxu0 %v10946_v15  ;;  %v4747_v16 = vmul.f32 %v8438_v20, %v10062_v63 }
 0x44e   :  { %8451 = vrcp.f32 %v4564_v2  ;;  %8161 = vmatprep.subr.mxu0 %v10947_v59  ;;  %8046 = vmatprep.mubr.msk.f32.mxu1 %vm4075_vm1, %v4738_v60  ;;  %v10960_v60 = vld [vmem:[#allocation49_spill] sm:$0xff] }
 0x44f   :  { %v4591_v7 = vpop.xlane.xlu1 %4590  ;;  %v8440_v10 = vpop.eup %8439  ;;  %8047 = vmatmul.mubr.msk.f32.gmra.mxu1 %vm4075_vm1, %v4739_v13 }
 0x450   :  { %v4746_v47 = vmul.f32 %v8440_v10, %v10069_v31  ;;  %v10961_v10 = vld [vmem:[#allocation51_spill] sm:$0xff] }
 0x451   :  { %v4588_v17 = vpop.xlane.xlu0 %4587  ;;  %v8442_v4 = vpop.eup %8441 }
 0x452   :  { %8453 = vrcp.f32 %v4588_v17  ;;  %8074 = vmatprep.mubr.msk.f32.mxu0 %vm4075_vm1, %v4746_v47  ;;  %v4749_v11 = vmul.f32 %v8442_v4, %v10073_v5 }
 0x453   :  { %v4573_v53 = vpop.xlane.xlu1 %4572  ;;  %v8444_v26 = vpop.eup %8443  ;;  %8455 = vrcp.f32 %v4591_v7  ;;  %8075 = vmatmul.mubr.msk.f32.gmra.mxu0 %vm4075_vm1, %v4747_v16 }
 0x454   :  { %v4748_v61 = vmul.f32 %v8444_v26, %v10080_v39 }
 0x455   :  { %v4570_v12 = vpop.xlane.xlu0 %4569  ;;  %v8446_v58 = vpop.eup %8445 }
 0x456   :  { %8457 = vrcp.f32 %v4570_v12  ;;  %8093 = vmatprep.mubr.msk.f32.mxu1 %vm4075_vm1, %v4748_v61  ;;  %v4757_v25 = vmul.f32 %v8446_v58, %v10083_v32  ;;  %v10962_v12 = vld [vmem:[#allocation64_spill] sm:$0xff] }
 0x457   :  { %v4597_v51 = vpop.xlane.xlu1 %4596  ;;  %v8448_v63 = vpop.eup %8447  ;;  %8094 = vmatmul.mubr.msk.f32.vlgmr.msra.gmra.mxu1 %vm4075_vm1, %v4749_v11  ;;  %8459 = vrcp.f32 %v4573_v53 }
 0x458   :  { %8134 = vmatpush3.msra.mxu1 %v10945_v52  ;;  %v4756_v31 = vmul.f32 %v8448_v63, %v10090_v35  ;;  %v10950_v35 = vld [vmem:[#allocation58_spill] sm:$0xff] }
 0x459   :  { %8135 = vmatprep.subr.mxu1 %v10948_v24  ;;  %v4594_v39 = vpop.xlane.xlu0 %4593  ;;  %v8450_v5 = vpop.eup %8449 }
 0x45a   :  { %8136 = vmatpush3.msra.mxu1 %v10948_v24  ;;  %8461 = vrcp.f32 %v4594_v39  ;;  %8121 = vmatprep.mubr.msk.f32.mxu0 %vm4075_vm1, %v4756_v31  ;;  %v4751_v44 = vmul.f32 %v8450_v5, %v10093_v54  ;;  %v10955_v54 = vld [vmem:[#allocation59_spill] sm:$0xff]  ;;  %v10965_v5 = vld [vmem:[#allocation66_spill] sm:$0xff] }
 0x45b   :  { %v4579_v1 = vpop.xlane.xlu1 %4578  ;;  %v8452_v18 = vpop.eup %8451  ;;  %8463 = vrcp.f32 %v4597_v51  ;;  %8137 = vmatprep.subr.mxu1 %v10949_v28  ;;  %8122 = vmatmul.mubr.msk.f32.vlgmr.msra.gmra.mxu0 %vm4075_vm1, %v4757_v25  ;;  %v10963_v51 = vld [vmem:[#allocation65_spill] sm:$0xff]  ;;  %v10964_v24 = vld [vmem:[#allocation67_spill] sm:$0xff] }
 0x45c   :  { %8138 = vmatpush3.msra.mxu1 %v10949_v28  ;;  %8162 = vmatpush3.msra.mxu0 %v10947_v59  ;;  %v4750_v32 = vmul.f32 %v8452_v18, %v10100_v36  ;;  %8465 = vrcp.f32 %v4579_v1 }
 0x45d   :  { %8139 = vmatprep.subr.mxu1 %v10950_v35  ;;  %8163 = vmatprep.subr.mxu0 %v10951_v8  ;;  %v4576_v33 = vpop.xlane.xlu0 %4575 }
 0x45e   :  { %8140 = vmatpush3.msra.mxu1 %v10950_v35  ;;  %8164 = vmatpush3.msra.mxu0 %v10951_v8  ;;  %8467 = vrcp.f32 %v4576_v33 }
 0x45f   :  { %v4603_v56 = vpop.xlane.xlu1 %4602  ;;  %v8454_v30 = vpop.eup %8453  ;;  %8096 = vmatprep.mubr.msk.f32.mxu1 %vm4075_vm1, %v4750_v32  ;;  %8141 = vmatprep.subr.mxu1 %v10952_v23 }
 0x460   :  { %v8456_v36 = vpop.eup %8455  ;;  %8165 = vmatprep.subr.mxu0 %v10953_v41  ;;  %8097 = vmatmul.mubr.msk.f32.gmra.mxu1 %vm4075_vm1, %v4751_v44  ;;  %v4758_v22 = vmul.f32 %v8454_v30, %v10110_v62  ;;  %8469 = vrcp.f32 %v4603_v56  ;;  %v10956_v62 = vld [vmem:[#allocation48_spill] sm:$0xff] }
 0x461   :  { %8142 = vmatpush3.msra.mxu1 %v10952_v23  ;;  %8166 = vmatpush3.msra.mxu0 %v10953_v41  ;;  %v4600_v21 = vpop.xlane.xlu0 %4599  ;;  %v4759_v50 = vmul.f32 %v8456_v36, %v10103_v0  ;;  %v10958_v0 = vld [vmem:[#allocation50_spill] sm:$0xff]  ;;  %v10966_v36 = vld [vmem:[#allocation68_spill] sm:$0xff] }
 0x462   :  { %8143 = vmatprep.subr.mxu1 %v10954_v48  ;;  %8167 = vmatprep.subr.mxu0 %v10955_v54  ;;  %8471 = vrcp.f32 %v4600_v21  ;;  %v10967_v21 = vld [vmem:[#allocation69_spill] sm:$0xff] }
 0x463   :  { %v8458_v55 = vpop.eup %8457  ;;  %8144 = vmatpush3.msra.mxu1 %v10954_v48  ;;  %8168 = vmatpush3.msra.mxu0 %v10955_v54 }
 0x464   :  { %v4609_v49 = vpop.xlane.xlu1 %4608  ;;  %8124 = vmatprep.mubr.msk.f32.mxu0 %vm4075_vm1, %v4758_v22  ;;  %8145 = vmatprep.subr.mxu1 %v10956_v62  ;;  %v8460_v9 = vpop.eup %8459  ;;  %v4752_v43 = vmul.f32 %v8458_v55, %v10119_v57 }
 0x465   :  { %8473 = vrcp.f32 %v4609_v49  ;;  %8169 = vmatprep.subr.mxu0 %v10957_v40  ;;  %8125 = vmatmul.mubr.msk.f32.gmra.mxu0 %vm4075_vm1, %v4759_v50  ;;  %v4753_v2 = vmul.f32 %v8460_v9, %v10112_v3  ;;  %v10969_v49 = vld [vmem:[#allocation70_spill] sm:$0xff] }
 0x466   :  { %v4606_v6 = vpop.xlane.xlu0 %4605  ;;  %8146 = vmatpush3.msra.mxu1 %v10956_v62  ;;  %8170 = vmatpush3.msra.mxu0 %v10957_v40  ;;  %v10970_v40 = vld [vmem:[#allocation72_spill] sm:$0xff] }
 0x467   :  { %8475 = vrcp.f32 %v4606_v6  ;;  %v8462_v52 = vpop.eup %8461  ;;  %8147 = vmatprep.subr.mxu1 %v10958_v0  ;;  %8171 = vmatprep.subr.mxu0 %v10959_v37 }
 0x468   :  { %v4633_v19 = vpop.xlane.xlu1 %4632  ;;  %v8464_v15 = vpop.eup %8463  ;;  %8148 = vmatpush3.msra.mxu1 %v10958_v0  ;;  %8172 = vmatpush3.msra.mxu0 %v10959_v37  ;;  %v4760_v57 = vmul.f32 %v8462_v52, %v10129_v29 }
 0x469   :  { %8477 = vrcp.f32 %v4633_v19  ;;  %8099 = vmatprep.mubr.msk.f32.mxu1 %vm4075_vm1, %v4752_v43  ;;  %8173 = vmatprep.subr.mxu0 %v10960_v60  ;;  %v8466_v7 = vpop.eup %8465  ;;  %v4761_v3 = vmul.f32 %v8464_v15, %v10122_v34  ;;  %v10971_v43 = vld [vmem:[#allocation73_spill] sm:$0xff]  ;;  %v10972_v19 = vld [vmem:[#allocation75_spill] sm:$0xff] }
 0x46a   :  { %v4630_v20 = vpop.xlane.xlu0 %4629  ;;  %8100 = vmatmul.mubr.msk.f32.gmra.mxu1 %vm4075_vm1, %v4753_v2  ;;  %8174 = vmatpush3.msra.mxu0 %v10960_v60  ;;  %v4755_v17 = vmul.f32 %v8466_v7, %v10132_v38  ;;  %v10973_v2 = vld [vmem:[#allocation74_spill] sm:$0xff]  ;;  %v10974_v7 = vld [vmem:[#allocation76_spill] sm:$0xff] }
 0x46b   :  { %8479 = vrcp.f32 %v4630_v20  ;;  %v8468_v13 = vpop.eup %8467  ;;  %8175 = vmatprep.subr.mxu0 %v10961_v10  ;;  %8127 = vmatprep.mubr.msk.f32.mxu0 %vm4075_vm1, %v4760_v57 }
 0x46c   :  { %v4615_v59 = vpop.xlane.xlu1 %4614  ;;  %8176 = vmatpush3.msra.mxu0 %v10961_v10  ;;  %v4754_v29 = vmul.f32 %v8468_v13, %v10139_v27  ;;  %v10975_v10 = vld [vmem:[#allocation77_spill] sm:$0xff] }
 0x46d   :  { %8481 = vrcp.f32 %v4615_v59  ;;  %8128 = vmatmul.mubr.msk.f32.gmra.mxu0 %vm4075_vm1, %v4761_v3  ;;  %v8470_v16 = vpop.eup %8469  ;;  %v5958_v3 = vld [vmem:[#allocation4 + $0x18] sm:$0xff] }
 0x46e   :  { %v4612_v47 = vpop.xlane.xlu0 %4611  ;;  %8102 = vmatprep.mubr.msk.f32.mxu1 %vm4075_vm1, %v4754_v29  ;;  %v4763_v27 = vmul.f32 %v8470_v16, %v10142_v46  ;;  %v5957_v29 = vld [vmem:[#allocation4 + $0x10] sm:$0xff]  ;;  %8189 = vmatprep.subr.mxu1 %v5958_v3  ;;  %v6103_v16 = vld [vmem:[%s10687_s6 + $0x38] sm:$0xff] }
 0x46f   :  { %8483 = vrcp.f32 %v4612_v47  ;;  %v8472_v4 = vpop.eup %8471  ;;  %8103 = vmatmul.mubr.msk.f32.gmra.mxu1 %vm4075_vm1, %v4755_v17  ;;  %v5956_v47 = vld [vmem:[#allocation4 + $0x8] sm:$0xff]  ;;  %v5955_v17 = vld [vmem:[#allocation4] sm:$0xff]  ;;  %8209 = vmatprep.subr.mxu0 %v6103_v16 }
 0x470   :  { %v4639_v53 = vpop.xlane.xlu1 %4638  ;;  %v4762_v34 = vmul.f32 %v8472_v4, %v10149_v42  ;;  %v6102_v4 = vld [vmem:[%s10687_s6 + $0x30] sm:$0xff] }
 0x471   :  { %8485 = vrcp.f32 %v4639_v53  ;;  %v6101_v53 = vld [vmem:[%s10687_s6 + $0x28] sm:$0xff] }
 0x472   :  { %v4636_v26 = vpop.xlane.xlu0 %4635  ;;  %v8474_v61 = vpop.eup %8473  ;;  %8130 = vmatprep.mubr.msk.f32.mxu0 %vm4075_vm1, %v4762_v34  ;;  %v6100_v34 = vld [vmem:[%s10687_s6 + $0x20] sm:$0xff] }
 0x473   :  { %8487 = vrcp.f32 %v4636_v26  ;;  %8131 = vmatmul.mubr.msk.f32.gmra.mxu0 %vm4075_vm1, %v4763_v27  ;;  %v4765_v63 = vmul.f32 %v8474_v61, %v10963_v51  ;;  %v6099_v26 = vld [vmem:[%s10687_s6 + $0x18] sm:$0xff] }
 0x474   :  { %v8476_v11 = vpop.eup %8475  ;;  %v4621_v38 = vpop.xlane.xlu1 %4620 }
 0x475   :  { %v4764_v58 = vmul.f32 %v8476_v11, %v10962_v12  ;;  %8489 = vrcp.f32 %v4621_v38 }
 0x476   :  { %v4618_v31 = vpop.xlane.xlu0 %4617  ;;  %v8478_v25 = vpop.eup %8477 }
 0x477   :  { %8491 = vrcp.f32 %v4618_v31  ;;  %8149 = vmatprep.mubr.msk.f32.mxu1 %vm4075_vm1, %v4764_v58  ;;  %v4773_v1 = vmul.f32 %v8478_v25, %v10965_v5 }
 0x478   :  { %v8480_v42 = vpop.eup %8479  ;;  %v4645_v46 = vpop.xlane.xlu1 %4644  ;;  %8150 = vmatmul.mubr.msk.f32.vlgmr.msra.gmra.mxu1 %vm4075_vm1, %v4765_v63 }
 0x479   :  { %v4772_v39 = vmul.f32 %v8480_v42, %v10964_v24  ;;  %8493 = vrcp.f32 %v4645_v46  ;;  %8190 = vmatpush3.msra.mxu1 %v5958_v3 }
 0x47a   :  { %v4642_v18 = vpop.xlane.xlu0 %4641  ;;  %v8482_v28 = vpop.eup %8481  ;;  %8191 = vmatprep.subr.mxu1 %v5957_v29 }
 0x47b   :  { %8495 = vrcp.f32 %v4642_v18  ;;  %8177 = vmatprep.mubr.msk.f32.mxu0 %vm4075_vm1, %v4772_v39  ;;  %v4767_v56 = vmul.f32 %v8482_v28, %v10175_v14  ;;  %v10968_v14 = vld [vmem:[#allocation71_spill] sm:$0xff]  ;;  %8192 = vmatpush3.msra.mxu1 %v5957_v29 }
 0x47c   :  { %v8484_v32 = vpop.eup %8483  ;;  %v4627_v35 = vpop.xlane.xlu1 %4626  ;;  %8178 = vmatmul.mubr.msk.f32.vlgmr.msra.gmra.mxu0 %vm4075_vm1, %v4773_v1  ;;  %8193 = vmatprep.subr.mxu1 %v5956_v47 }
 0x47d   :  { %v4766_v8 = vmul.f32 %v8484_v32, %v10180_v45  ;;  %8497 = vrcp.f32 %v4627_v35  ;;  %8194 = vmatpush3.msra.mxu1 %v5956_v47  ;;  %8210 = vmatpush3.msra.mxu0 %v6103_v16 }
 0x47e   :  { %v4624_v33 = vpop.xlane.xlu0 %4623  ;;  %v8486_v44 = vpop.eup %8485  ;;  %8195 = vmatprep.subr.mxu1 %v5955_v17  ;;  %8211 = vmatprep.subr.mxu0 %v6102_v4 }
 0x47f   :  { %8499 = vrcp.f32 %v4624_v33  ;;  %8152 = vmatprep.mubr.msk.f32.mxu1 %vm4075_vm1, %v4766_v8  ;;  %v4775_v48 = vmul.f32 %v8486_v44, %v10967_v21  ;;  %8196 = vmatpush3.msra.mxu1 %v5955_v17 }
 0x480   :  { %v8488_v30 = vpop.eup %8487  ;;  %v4651_v23 = vpop.xlane.xlu1 %4650  ;;  %8153 = vmatmul.mubr.msk.f32.gmra.mxu1 %vm4075_vm1, %v4767_v56  ;;  %8212 = vmatpush3.msra.mxu0 %v6102_v4 }
 0x481   :  { %v4774_v41 = vmul.f32 %v8488_v30, %v10966_v36  ;;  %8501 = vrcp.f32 %v4651_v23  ;;  %8213 = vmatprep.subr.mxu0 %v6101_v53 }
 0x482   :  { %v4648_v22 = vpop.xlane.xlu0 %4647  ;;  %v8490_v54 = vpop.eup %8489  ;;  %8214 = vmatpush3.msra.mxu0 %v6101_v53 }
 0x483   :  { %8503 = vrcp.f32 %v4648_v22  ;;  %8180 = vmatprep.mubr.msk.f32.mxu0 %vm4075_vm1, %v4774_v41  ;;  %v4769_v50 = vmul.f32 %v8490_v54, %v10969_v49  ;;  %8215 = vmatprep.subr.mxu0 %v6100_v34 }
 0x484   :  { %v8492_v45 = vpop.eup %8491  ;;  %8181 = vmatmul.mubr.msk.f32.gmra.mxu0 %vm4075_vm1, %v4775_v48 }
 0x485   :  { %v4768_v55 = vmul.f32 %v8492_v45, %v10968_v14  ;;  %8216 = vmatpush3.msra.mxu0 %v6100_v34 }
 0x486   :  { %v8494_v62 = vpop.eup %8493  ;;  %8217 = vmatprep.subr.mxu0 %v6099_v26 }
 0x487   :  { %8155 = vmatprep.mubr.msk.f32.mxu1 %vm4075_vm1, %v4768_v55  ;;  %v4777_v52 = vmul.f32 %v8494_v62, %v10971_v43  ;;  %8218 = vmatpush3.msra.mxu0 %v6099_v26 }
 0x488   :  { %v8496_v9 = vpop.eup %8495  ;;  %8156 = vmatmul.mubr.msk.f32.gmra.mxu1 %vm4075_vm1, %v4769_v50 }
 0x489   :  { %v4776_v6 = vmul.f32 %v8496_v9, %v10970_v40 }
 0x48a   :  { %v8498_v0 = vpop.eup %8497 }
 0x48b   :  { %8183 = vmatprep.mubr.msk.f32.mxu0 %vm4075_vm1, %v4776_v6  ;;  %v4771_v57 = vmul.f32 %v8498_v0, %v10973_v2 }
 0x48c   :  { %v8500_v37 = vpop.eup %8499  ;;  %8184 = vmatmul.mubr.msk.f32.gmra.mxu0 %vm4075_vm1, %v4777_v52 }
 0x48d   :  { %v4770_v15 = vmul.f32 %v8500_v37, %v10972_v19 }
 0x48e   :  { %v8502_v60 = vpop.eup %8501 }
 0x48f   :  { %8158 = vmatprep.mubr.msk.f32.mxu1 %vm4075_vm1, %v4770_v15  ;;  %v4779_v59 = vmul.f32 %v8502_v60, %v10975_v10 }
 0x490   :  { %v8504_v20 = vpop.eup %8503  ;;  %8159 = vmatmul.mubr.msk.f32.gmra.mxu1 %vm4075_vm1, %v4771_v57 }
 0x491   :  { %v4778_v13 = vmul.f32 %v8504_v20, %v10974_v7 }
 0x493   :  { %8186 = vmatprep.mubr.msk.f32.mxu0 %vm4075_vm1, %v4778_v13 }
 0x494   :  { %8187 = vmatmul.mubr.msk.f32.gmra.mxu0 %vm4075_vm1, %v4779_v59 }
 0x4d7   :  { %v7983_v27 = vpop.f32.mrf.mxu1 }
 0x4d8   :  { %v5827_v37 = vsel %vm73_vm0, %v7983_v27, 0.0 }
 0x4d9   :  { %v4870_v61 = vpop.f32.mrf.mxu1 }
 0x4da   :  { %v5812_v60 = vsel %vm73_vm0, %v4870_v61, 0.0 }
 0x4db   :  { %v8011_v11 = vpop.f32.mrf.mxu0 }
 0x4dc   :  { %v5828_v43 = vsel %vm73_vm0, %v8011_v11, 0.0 }
 0x4dd   :  { %v4999_v12 = vpop.f32.mrf.mxu0  ;;  %v5829_v2 = vadd.f32 %v5828_v43, %v5827_v37 }
 0x4de   :  { %v5813_v19 = vsel %vm73_vm0, %v4999_v12, 0.0 }
 0x4df   :  { %v5814_v13 = vadd.f32 %v5813_v19, %v5812_v60 }
 0x4e0   :  { %v7986_v38 = vpop.f32.mrf.mxu1 }
 0x4e1   :  { %v5857_v61 = vsel %vm73_vm0, %v7986_v38, 0.0 }
 0x4e2   :  { %v4880_v58 = vpop.f32.mrf.mxu1 }
 0x4e3   :  { %v5842_v11 = vsel %vm73_vm0, %v4880_v58, 0.0 }
 0x4e5   :  { %v8014_v51 = vpop.f32.mrf.mxu0 }
 0x4e6   :  { %v5858_v47 = vsel %vm73_vm0, %v8014_v51, 0.0 }
 0x4e7   :  { %v5009_v31 = vpop.f32.mrf.mxu0  ;;  %v5859_v51 = vadd.f32 %v5858_v47, %v5857_v61 }
 0x4e8   :  { %v5843_v34 = vsel %vm73_vm0, %v5009_v31, 0.0 }
 0x4e9   :  { %v5844_v43 = vadd.f32 %v5843_v34, %v5842_v11 }
 0x4ea   :  { %v10463_v63 = vpop.f32.mrf.mxu1 }
 0x4eb   :  { %v5887_v31 = vsel %vm73_vm0, %v10463_v63, 0.0 }
 0x4ec   :  { %v10465_v25 = vpop.f32.mrf.mxu1  ;;  %v10467_v42 = vpop.f32.mrf.mxu0 }
 0x4ed   :  { %v5872_v58 = vsel %vm73_vm0, %v10465_v25, 0.0 }
 0x4ee   :  { %v10471_v24 = vpop.f32.mrf.mxu0 }
 0x4ef   :  { %v10469_v46 = vpop.f32.mrf.mxu1 }
 0x4f1   :  { %v10473_v39 = vpop.f32.mrf.mxu1 }
 0x4f3   :  { %v10475_v5 = vpop.f32.mrf.mxu0 }
 0x4f5   :  { %v10477_v18 = vpop.f32.mrf.mxu0 }
 0x4f7   :  { %v8039_v1 = vpop.f32.mrf.mxu1 }
 0x4f8   :  { %v5830_v15 = vsel %vm73_vm0, %v8039_v1, 0.0 }
 0x4f9   :  { %v5128_v28 = vpop.f32.mrf.mxu1  ;;  %v5831_v10 = vadd.f32 %v5830_v15, %v5829_v2  ;;  %v5888_v15 = vsel %vm73_vm0, %v10467_v42, 0.0  ;;  %v10555_v42 = vld [vmem:[%s10685_s4] ss:$0 sm:$0xff] }
 0x4fa   :  { %v5815_v20 = vsel %vm73_vm0, %v5128_v28, 0.0 }
 0x4fb   :  { %v8067_v32 = vpop.f32.mrf.mxu0  ;;  %v5816_v17 = vadd.f32 %v5815_v20, %v5814_v13 }
 0x4fc   :  { %v5832_v7 = vsel %vm73_vm0, %v8067_v32, 0.0 }
 0x4fd   :  { %v5257_v8 = vpop.f32.mrf.mxu0  ;;  %v5833_v16 = vadd.f32 %v5832_v7, %v5831_v10  ;;  %v5873_v7 = vsel %vm73_vm0, %v10471_v24, 0.0 }
 0x4fe   :  { %v5817_v3 = vsel %vm73_vm0, %v5257_v8, 0.0 }
 0x4ff   :  { %v5818_v12 = vadd.f32 %v5817_v3, %v5816_v17  ;;  %v5889_v17 = vadd.f32 %v5888_v15, %v5887_v31 }
 0x500   :  { %v8042_v35 = vpop.f32.mrf.mxu1 }
 0x501   :  { %v5860_v32 = vsel %vm73_vm0, %v8042_v35, 0.0 }
 0x502   :  { %v5138_v33 = vpop.f32.mrf.mxu1  ;;  %v5861_v2 = vadd.f32 %v5860_v32, %v5859_v51 }
 0x503   :  { %v5845_v19 = vsel %vm73_vm0, %v5138_v33, 0.0 }
 0x505   :  { %v8070_v56 = vpop.f32.mrf.mxu0 }
 0x506   :  { %v5862_v35 = vsel %vm73_vm0, %v8070_v56, 0.0  ;;  %v5846_v56 = vadd.f32 %v5845_v19, %v5844_v43 }
 0x507   :  { %v10481_v30 = vpop.f32.mrf.mxu0  ;;  %v5863_v10 = vadd.f32 %v5862_v35, %v5861_v2  ;;  %v10977_v35 = vld [vmem:[#allocation9_spill] sm:$0xff] }
 0x508   :  { %v5847_v13 = vsel %vm73_vm0, %v10481_v30, 0.0 }
 0x509   :  { %v5848_v34 = vadd.f32 %v5847_v13, %v5846_v56  ;;  %v5903_v13 = vsel %vm73_vm0, %v10477_v18, 0.0 }
 0x50a   :  { %v10479_v44 = vpop.f32.mrf.mxu1 }
 0x50b   :  { %v5890_v11 = vsel %vm73_vm0, %v10479_v44, 0.0 }
 0x50c   :  { %v10483_v23 = vpop.f32.mrf.mxu1  ;;  %v10485_v36 = vpop.f32.mrf.mxu0  ;;  %v5891_v31 = vadd.f32 %v5890_v11, %v5889_v17 }
 0x50d   :  { %v5875_v44 = vsel %vm73_vm0, %v10483_v23, 0.0 }
 0x50e   :  { %v10489_v22 = vpop.f32.mrf.mxu0 }
 0x50f   :  { %v10487_v41 = vpop.f32.mrf.mxu1  ;;  %v5877_v19 = vsel %vm73_vm0, %v10489_v22, 0.0 }
 0x511   :  { %v10491_v21 = vpop.f32.mrf.mxu1 }
 0x513   :  { %v10493_v48 = vpop.f32.mrf.mxu0 }
 0x515   :  { %v10495_v45 = vpop.f32.mrf.mxu0 }
 0x517   :  { %v8095_v54 = vpop.f32.mrf.mxu1 }
 0x518   :  { %v5834_v29 = vsel %vm73_vm0, %v8095_v54, 0.0 }
 0x519   :  { %v5386_v14 = vpop.f32.mrf.mxu1  ;;  %v5835_v1 = vadd.f32 %v5834_v29, %v5833_v16  ;;  %v5874_v16 = vadd.f32 %v5873_v7, %v5872_v58 }
 0x51a   :  { %v5819_v26 = vsel %vm73_vm0, %v5386_v14, 0.0 }
 0x51b   :  { %v8123_v55 = vpop.f32.mrf.mxu0  ;;  %v5820_v14 = vadd.f32 %v5819_v26, %v5818_v12  ;;  %v5876_v15 = vadd.f32 %v5875_v44, %v5874_v16 }
 0x51c   :  { %v5836_v27 = vsel %vm73_vm0, %v8123_v55, 0.0 }
 0x51d   :  { %v5515_v50 = vpop.f32.mrf.mxu0  ;;  %v5837_v55 = vadd.f32 %v5836_v27, %v5835_v1 }
 0x51e   :  { %v5821_v8 = vsel %vm73_vm0, %v5515_v50, 0.0 }
 0x51f   :  { %v5822_v60 = vadd.f32 %v5821_v8, %v5820_v14 }
 0x520   :  { %v8098_v49 = vpop.f32.mrf.mxu1 }
 0x521   :  { %v5864_v25 = vsel %vm73_vm0, %v8098_v49, 0.0 }
 0x522   :  { %v10497_v62 = vpop.f32.mrf.mxu1  ;;  %v5865_v26 = vadd.f32 %v5864_v25, %v5863_v10  ;;  %v5878_v25 = vadd.f32 %v5877_v19, %v5876_v15 }
 0x523   :  { %v5849_v24 = vsel %vm73_vm0, %v10497_v62, 0.0 }
 0x525   :  { %v10499_v9 = vpop.f32.mrf.mxu0 }
 0x526   :  { %v5866_v30 = vsel %vm73_vm0, %v10499_v9, 0.0  ;;  %v5917_v9 = vsel %vm73_vm0, %v10469_v46, 0.0 }
 0x527   :  { %v10503_v6 = vpop.f32.mrf.mxu0  ;;  %v5867_v51 = vadd.f32 %v5866_v30, %v5865_v26  ;;  %v10978_v26 = vld [vmem:[#allocation10_spill] sm:$0xff] }
 0x528   :  { %v5851_v12 = vsel %vm73_vm0, %v10503_v6, 0.0  ;;  %v5892_v6 = vsel %vm73_vm0, %v10485_v36, 0.0 }
 0x529   :  { %v5893_v36 = vadd.f32 %v5892_v6, %v5891_v31 }
 0x52a   :  { %v10501_v40 = vpop.f32.mrf.mxu1 }
 0x52c   :  { %v10506_v52 = vpop.f32.mrf.mxu1 }
 0x52d   :  { %v10508_v0 = vpop.f32.mrf.mxu0  ;;  %v5879_v22 = vsel %vm73_vm0, %v10506_v52, 0.0 }
 0x52f   :  { %v10513_v57 = vpop.f32.mrf.mxu1  ;;  %v10518_v59 = vpop.f32.mrf.mxu0 }
 0x530   :  { %v5881_v52 = vsel %vm73_vm0, %v10518_v59, 0.0 }
 0x531   :  { %v10523_v4 = vpop.f32.mrf.mxu1 }
 0x533   :  { %v10525_v53 = vpop.f32.mrf.mxu0 }
 0x535   :  { %v10537_v37 = vpop.f32.mrf.mxu0 }
 0x538   :  { %v8151_v28 = vpop.f32.mrf.mxu1 }
 0x539   :  { %v5838_v54 = vsel %vm73_vm0, %v8151_v28, 0.0  ;;  %v5850_v28 = vadd.f32 %v5849_v24, %v5848_v34 }
 0x53a   :  { %v5644_v38 = vpop.f32.mrf.mxu1  ;;  %v5839_v63 = vadd.f32 %v5838_v54, %v5837_v55  ;;  %v5902_v54 = vsel %vm73_vm0, %v10473_v39, 0.0  ;;  %v10976_v55 = vld [vmem:[#allocation8_spill] sm:$0xff]  ;;  %v5894_v39 = vsel %vm73_vm0, %v10501_v40, 0.0  ;;  %v5896_v40 = vsel %vm73_vm0, %v10508_v0, 0.0 }
 0x53b   :  { %v5823_v50 = vsel %vm73_vm0, %v5644_v38, 0.0  ;;  %v5852_v14 = vadd.f32 %v5851_v12, %v5850_v28  ;;  %v5904_v30 = vadd.f32 %v5903_v13, %v5902_v54  ;;  %v5907_v12 = vsel %vm73_vm0, %v10495_v45, 0.0 }
 0x53c   :  { %v8179_v20 = vpop.f32.mrf.mxu0  ;;  %v5824_v3 = vadd.f32 %v5823_v50, %v5822_v60  ;;  %v5909_v54 = vsel %vm73_vm0, %v10523_v4, 0.0  ;;  %v5926_v45 = vsel %vm73_vm0, %v10525_v53, 0.0 }
 0x53d   :  { %v5840_v33 = vsel %vm73_vm0, %v8179_v20, 0.0  ;;  %v5918_v20 = vsel %vm73_vm0, %v10475_v5, 0.0  ;;  %v5920_v5 = vsel %vm73_vm0, %v10487_v41, 0.0  ;;  %v5922_v41 = vsel %vm73_vm0, %v10493_v48, 0.0 }
 0x53e   :  { %v5841_v29 = vadd.f32 %v5840_v33, %v5839_v63  ;;  %v5773_v47 = vpop.f32.mrf.mxu0  ;;  %v5895_v33 = vadd.f32 %v5894_v39, %v5893_v36  ;;  %v10981_v36 = vld [vmem:[#allocation14_spill] sm:$0xff] }
 0x53f   :  { %v5825_v49 = vsel %vm73_vm0, %v5773_v47, 0.0  ;;  %v5880_v47 = vadd.f32 %v5879_v22, %v5878_v25  ;;  %v10982_v25 = vld [vmem:[#allocation13_spill] sm:$0xff] }
 0x540   :  { %v5826_v27 = vadd.f32 %v5825_v49, %v5824_v3  ;;  %v8154_v61 = vpop.f32.mrf.mxu1  ;;  %v5940_v1 = vadd.f32 %v10555_v42, %v5841_v29  ;;  %v5919_v29 = vadd.f32 %v5918_v20, %v5917_v9  ;;  %v5897_v17 = vadd.f32 %v5896_v40, %v5895_v33 }
 0x541   :  { %v5868_v62 = vsel %vm73_vm0, %v8154_v61, 0.0  ;;  %v5905_v49 = vsel %vm73_vm0, %v10491_v21, 0.0  ;;  %v5882_v34 = vadd.f32 %v5881_v52, %v5880_v47  ;;  %v6097_v52 = vld [vmem:[%s10687_s6 + $0x8] sm:$0xff] }
 0x542   :  { %v5939_v32 = vadd.f32 %v10555_v42, %v5826_v27  ;;  %v5654_v8 = vpop.f32.mrf.mxu1  ;;  %v5869_v38 = vadd.f32 %v5868_v62, %v5867_v51  ;;  %v5948_v50 = vadd.f32 %v5940_v1, %v10977_v35  ;;  %v5921_v59 = vadd.f32 %v5920_v5, %v5919_v29  ;;  %v10979_v62 = vld [vmem:[#allocation12_spill] sm:$0xff]  ;;  %v10980_v35 = vld [vmem:[#allocation11_spill] sm:$0xff]  ;;  %v6098_v5 = vld [vmem:[%s10687_s6 + $0x10] sm:$0xff] }
 0x543   :  { %v5853_v43 = vsel %vm73_vm0, %v5654_v8, 0.0  ;;  %v5924_v1 = vsel %vm73_vm0, %v10513_v57, 0.0  ;;  %v5906_v28 = vadd.f32 %v5905_v49, %v5904_v30  ;;  %8219 = vmatprep.subr.mxu0 %v6098_v5 }
 0x544   :  { %v5947_v46 = vadd.f32 %v5939_v32, %v10976_v55  ;;  %v8182_v58 = vpop.f32.mrf.mxu0  ;;  %v5854_v2 = vadd.f32 %v5853_v43, %v5852_v14  ;;  %v5923_v48 = vadd.f32 %v5922_v41, %v5921_v59  ;;  %v5911_v14 = vsel %vm73_vm0, %v10537_v37, 0.0  ;;  %8220 = vmatpush3.msra.mxu0 %v6098_v5 }
 0x545   :  { %v5870_v23 = vsel %vm73_vm0, %v8182_v58, 0.0  ;;  %v5908_v57 = vadd.f32 %v5907_v12, %v5906_v28  ;;  %8221 = vmatprep.subr.mxu0 %v6097_v52 }
 0x546   :  { %v5871_v60 = vadd.f32 %v5870_v23, %v5869_v38  ;;  %v5783_v63 = vpop.f32.mrf.mxu0  ;;  %8197 = vmatprep.mubr.msk.f32.mxu1 %vm73_vm0, %v5947_v46  ;;  %v5925_v6 = vadd.f32 %v5924_v1, %v5923_v48  ;;  %8222 = vmatpush3.msra.mxu0 %v6097_v52 }
 0x547   :  { %v5855_v7 = vsel %vm73_vm0, %v5783_v63, 0.0  ;;  %8198 = vmatmul.mubr.msk.f32.vlgmr.msra.gmra.mxu1 %vm73_vm0, %v5948_v50  ;;  %v5910_v38 = vadd.f32 %v5909_v54, %v5908_v57 }
 0x548   :  { %v5856_v56 = vadd.f32 %v5855_v7, %v5854_v2  ;;  %v8157_v10 = vpop.f32.mrf.mxu1  ;;  %v5942_v3 = vadd.f32 %v10555_v42, %v5871_v60  ;;  %v5927_v4 = vadd.f32 %v5926_v45, %v5925_v6 }
 0x549   :  { %v5898_v0 = vsel %vm73_vm0, %v8157_v10, 0.0  ;;  %v5912_v39 = vadd.f32 %v5911_v14, %v5910_v38 }
 0x54a   :  { %v5941_v24 = vadd.f32 %v10555_v42, %v5856_v56  ;;  %v5664_v18 = vpop.f32.mrf.mxu1  ;;  %v5899_v61 = vadd.f32 %v5898_v0, %v5897_v17  ;;  %v5950_v9 = vadd.f32 %v5942_v3, %v10979_v62  ;;  %v10983_v56 = vld [vmem:[#allocation15_spill] sm:$0xff] }
 0x54b   :  { %v5883_v16 = vsel %vm73_vm0, %v5664_v18, 0.0 }
 0x54c   :  { %v5949_v27 = vadd.f32 %v5941_v24, %v10978_v26  ;;  %v8185_v11 = vpop.f32.mrf.mxu0  ;;  %v5884_v51 = vadd.f32 %v5883_v16, %v5882_v34 }
 0x54d   :  { %v5900_v21 = vsel %vm73_vm0, %v8185_v11, 0.0 }
 0x54e   :  { %v5901_v32 = vadd.f32 %v5900_v21, %v5899_v61  ;;  %v5793_v8 = vpop.f32.mrf.mxu0  ;;  %8200 = vmatprep.mubr.msk.f32.mxu1 %vm73_vm0, %v5949_v27 }
 0x54f   :  { %v5885_v44 = vsel %vm73_vm0, %v5793_v8, 0.0  ;;  %8201 = vmatmul.mubr.msk.f32.gmra.mxu1 %vm73_vm0, %v5950_v9 }
 0x550   :  { %v5886_v43 = vadd.f32 %v5885_v44, %v5884_v51  ;;  %v8160_v31 = vpop.f32.mrf.mxu1  ;;  %v5944_v55 = vadd.f32 %v10555_v42, %v5901_v32 }
 0x551   :  { %v5928_v46 = vsel %vm73_vm0, %v8160_v31, 0.0 }
 0x552   :  { %v5943_v58 = vadd.f32 %v10555_v42, %v5886_v43  ;;  %v5674_v53 = vpop.f32.mrf.mxu1  ;;  %v5929_v23 = vadd.f32 %v5928_v46, %v5927_v4  ;;  %v5952_v2 = vadd.f32 %v5944_v55, %v10981_v36 }
 0x553   :  { %v5913_v19 = vsel %vm73_vm0, %v5674_v53, 0.0 }
 0x554   :  { %v5951_v50 = vadd.f32 %v5943_v58, %v10980_v35  ;;  %v8188_v15 = vpop.f32.mrf.mxu0  ;;  %v5914_v60 = vadd.f32 %v5913_v19, %v5912_v39 }
 0x555   :  { %v5930_v37 = vsel %vm73_vm0, %v8188_v15, 0.0 }
 0x556   :  { %v5931_v63 = vadd.f32 %v5930_v37, %v5929_v23  ;;  %v5803_v20 = vpop.f32.mrf.mxu0  ;;  %8203 = vmatprep.mubr.msk.f32.mxu1 %vm73_vm0, %v5951_v50 }
 0x557   :  { %v5915_v22 = vsel %vm73_vm0, %v5803_v20, 0.0  ;;  %8204 = vmatmul.mubr.msk.f32.gmra.mxu1 %vm73_vm0, %v5952_v2 }
 0x558   :  { %v5916_v40 = vadd.f32 %v5915_v22, %v5914_v60  ;;  %v5946_v7 = vadd.f32 %v10555_v42, %v5931_v63 }
 0x55a   :  { %v5945_v13 = vadd.f32 %v10555_v42, %v5916_v40  ;;  %v5954_v10 = vadd.f32 %v5946_v7, %v10983_v56  ;;  %v6096_v42 = vld [vmem:[%s10687_s6] sm:$0xff] }
 0x55b   :  { %8223 = vmatprep.subr.mxu0 %v6096_v42 }
 0x55c   :  { %v5953_v33 = vadd.f32 %v5945_v13, %v10982_v25  ;;  %8224 = vmatpush3.msra.mxu0 %v6096_v42 }
 0x55e   :  { %8206 = vmatprep.mubr.msk.f32.mxu1 %vm73_vm0, %v5953_v33 }
 0x55f   :  { %8207 = vmatmul.mubr.msk.f32.gmra.mxu1 %vm73_vm0, %v5954_v10 }
 0x607   :  { %v8199_v3 = vpop.f32.mrf.mxu1 }
 0x608   :  { %v6089_v47 = vmax.f32 %v8199_v3, 0.0 }
 0x609   :  { %v6049_v0 = vpop.f32.mrf.mxu1 }
 0x60a   :  { %v6088_v29 = vmax.f32 %v6049_v0, 0.0 }
 0x60c   :  { %8225 = vmatprep.mubr.msk.f32.mxu0 %vm4075_vm1, %v6088_v29 }
 0x60d   :  { %8226 = vmatmul.mubr.msk.f32.vlgmr.msra.gmra.mxu0 %vm4075_vm1, %v6089_v47 }
 0x60f   :  { %v8202_v17 = vpop.f32.mrf.mxu1 }
 0x610   :  { %v6091_v30 = vmax.f32 %v8202_v17, 0.0 }
 0x611   :  { %v6059_v24 = vpop.f32.mrf.mxu1 }
 0x612   :  { %v6090_v18 = vmax.f32 %v6059_v24, 0.0 }
 0x614   :  { %8228 = vmatprep.mubr.msk.f32.mxu0 %vm4075_vm1, %v6090_v18 }
 0x615   :  { %8229 = vmatmul.mubr.msk.f32.gmra.mxu0 %vm4075_vm1, %v6091_v30 }
 0x617   :  { %v8205_v49 = vpop.f32.mrf.mxu1 }
 0x618   :  { %v6093_v59 = vmax.f32 %v8205_v49, 0.0 }
 0x619   :  { %v6069_v41 = vpop.f32.mrf.mxu1 }
 0x61a   :  { %v6092_v16 = vmax.f32 %v6069_v41, 0.0 }
 0x61c   :  { %8231 = vmatprep.mubr.msk.f32.mxu0 %vm4075_vm1, %v6092_v16 }
 0x61d   :  { %8232 = vmatmul.mubr.msk.f32.gmra.mxu0 %vm4075_vm1, %v6093_v59 }
 0x61f   :  { %v8208_v34 = vpop.f32.mrf.mxu1 }
 0x620   :  { %v6095_v61 = vmax.f32 %v8208_v34, 0.0 }
 0x621   :  { %v6079_v26 = vpop.f32.mrf.mxu1 }
 0x622   :  { %v6094_v27 = vmax.f32 %v6079_v26, 0.0 }
 0x624   :  { %8234 = vmatprep.mubr.msk.f32.mxu0 %vm4075_vm1, %v6094_v27 }
 0x625   :  { %8235 = vmatmul.mubr.msk.f32.gmra.mxu0 %vm4075_vm1, %v6095_v61 }
 0x6cd   :  { %v8227_v11 = vpop.f32.mrf.mxu0 }
 0x6ce   :  { %6234 = vst [vmem:[%s10688_s7 + $0x8] sm:$0xff] %v8227_v11 }
 0x6cf   :  { %v6194_v12 = vpop.f32.mrf.mxu0 }
 0x6d0   :  { %6233 = vst [vmem:[%s10688_s7] sm:$0xff] %v6194_v12 }
 0x6d5   :  { %v8230_v1 = vpop.f32.mrf.mxu0 }
 0x6d6   :  { %6236 = vst [vmem:[%s10688_s7 + $0x18] sm:$0xff] %v8230_v1 }
 0x6d7   :  { %v6204_v62 = vpop.f32.mrf.mxu0 }
 0x6d8   :  { %6235 = vst [vmem:[%s10688_s7 + $0x10] sm:$0xff] %v6204_v62 }
 0x6dd   :  { %v8233_v9 = vpop.f32.mrf.mxu0 }
 0x6de   :  { %6238 = vst [vmem:[%s10688_s7 + $0x28] sm:$0xff] %v8233_v9 }
 0x6df   :  { %v6214_v21 = vpop.f32.mrf.mxu0 }
 0x6e0   :  { %6237 = vst [vmem:[%s10688_s7 + $0x20] sm:$0xff] %v6214_v21 }
 0x6e5   :  { %v8236_v28 = vpop.f32.mrf.mxu0 }
 0x6e6   :  { %6240 = vst [vmem:[%s10688_s7 + $0x38] sm:$0xff] %v8236_v28 }
 0x6e7   :  { %v6224_v48 = vpop.f32.mrf.mxu0 }
 0x6e8   :  { %6239 = vst [vmem:[%s10688_s7 + $0x30] sm:$0xff] %v6224_v48 }
 0x6e9   :  { %6245 = vsyncpa [#allocation3], 1 }
 0x6ea   :  { %6246 = vsyncpa [#allocation5], 1 }

</bundles_post_ra>
